<compile_context>
chip_gen: v6e
topology: v6e:2x2x1
jax: 0.10.0
libtpu: 0.0.40
codegen_flags: <defaults>
</compile_context>

<pallas_src>
import functools

import jax
import jax.numpy as jnp
import numpy as np
from jax.experimental import pallas as pl
from jax.experimental.pallas import tpu as pltpu  # noqa: F401  (TPU backend)


# ----------------------------------------------------------------------------
# Fused Pallas kernel: 2-layer LSTM + relu + fc_1 + relu + flatten + fc_2
# ----------------------------------------------------------------------------
def _lstm_fused_kernel(T, B, x_ref, wih0_ref, whh0_ref, b0_ref,
                       wih1_ref, whh1_ref, b1_ref,
                       w1_ref, b1fc_ref, w2_ref, b2fc_ref, out_ref):
  """PyTorch gate order (i, f, g, o); weights stored per-gate: (4, in, H).

  x_ref is (T*B, F) with t-major rows (row = t*B + b).
  """
  H = whh0_ref.shape[-1]

  # Load everything once (all tiny); keep the time loop pure register math.
  x = x_ref[...].astype(jnp.float32)                       # (T*B, F)
  w1 = w1_ref[...].astype(jnp.float32)                     # (H, hidden)
  b1fc = b1fc_ref[...].astype(jnp.float32)                 # (1, hidden)

  wih0 = [wih0_ref[k].astype(jnp.float32) for k in range(4)]   # (F, H) each
  whh0 = [whh0_ref[k].astype(jnp.float32) for k in range(4)]   # (H, H) each
  b0 = [b0_ref[k].astype(jnp.float32) for k in range(4)]       # (1, H) each
  wih1 = [wih1_ref[k].astype(jnp.float32) for k in range(4)]
  whh1 = [whh1_ref[k].astype(jnp.float32) for k in range(4)]
  b1 = [b1_ref[k].astype(jnp.float32) for k in range(4)]

  # Layer-0 input projections batched over all timesteps (off the recurrent
  # critical path).  Fused (b_ih + b_hh) bias is folded in here so the serial
  # recurrence only adds the h @ Whh term.  Math order per element is
  # identical to the per-step version (same contraction over F).
  xp0 = [jnp.dot(x, wih0[k], preferred_element_type=jnp.float32) + b0[k]
         for k in range(4)]                                 # each (T*B, H)

  def cell(pre_in, h, c, whh):
    """pre_in[k] already holds x@Wih + bias; add the recurrent term and gate."""
    def gate(k):
      return pre_in[k] + jnp.dot(h, whh[k], preferred_element_type=jnp.float32)
    i = jax.nn.sigmoid(gate(0))
    f = jax.nn.sigmoid(gate(1))
    g = jnp.tanh(gate(2))
    o = jax.nn.sigmoid(gate(3))
    c_new = f * c + i * g
    h_new = o * jnp.tanh(c_new)
    return h_new, c_new

  zero = jnp.zeros((B, H), jnp.float32)
  h0, c0, h1, c1 = zero, zero, zero, zero
  acc = jnp.zeros(out_ref.shape, jnp.float32)               # fc_2 accumulator

  # Statically unrolled time loop — no grid, no per-step pipeline overhead.
  for t in range(T):
    # Layer 0: per-step pre-activation is a static row slice of the batched proj.
    pre0 = [xp0[k][t * B:(t + 1) * B, :] for k in range(4)]
    h0, c0 = cell(pre0, h0, c0, whh0)
    # Layer 1 (inter-layer LSTM dropout is identity at eval).  Its input
    # projection depends on h0_t, so it stays in-loop to keep the two layer
    # recurrences pipelined instead of serialized back-to-back.
    pre1 = [jnp.dot(h0, wih1[k], preferred_element_type=jnp.float32) + b1[k]
            for k in range(4)]
    h1, c1 = cell(pre1, h1, c1, whh1)
    # Head: relu -> fc_1 -> (dropout identity) -> relu, fused in the loop.
    f1 = jnp.maximum(
        jnp.dot(jnp.maximum(h1, 0.0), w1, preferred_element_type=jnp.float32)
        + b1fc, 0.0)                                        # (B, hidden)
    # fc_2 over the flattened (B, T*hidden) activations == sum_t f1_t @ W2[t]
    acc = acc + jnp.dot(f1, w2_ref[t].astype(jnp.float32),
                        preferred_element_type=jnp.float32)

  out_ref[...] = (acc + b2fc_ref[...].astype(jnp.float32)).astype(out_ref.dtype)


# ----------------------------------------------------------------------------
# Wrapper
# ----------------------------------------------------------------------------
def lstm_model_forward(x, params):
  """Full forward matching the PyTorch module (eval mode). x: (B, T, F)."""
  B, T, F = x.shape
  H = params["whh0_g"].shape[-1]
  hidden = params["w1_t"].shape[-1]
  out_size = params["w2r"].shape[-1]

  # Layout plumbing only (256 B here): t-major rows so the kernel's batched
  # layer-0 projection yields per-step values via static sublane row slices.
  x_flat = jnp.transpose(x, (1, 0, 2)).reshape(T * B, F)

  args = (x_flat, params["wih0_g"], params["whh0_g"], params["b0_g"],
          params["wih1_g"], params["whh1_g"], params["b1_g"],
          params["w1_t"], params["b1_fc"], params["w2r"], params["b2_fc"])

  flops = int(T * (2 * B * 4 * H * (F + H)          # layer-0 gate matmuls
                   + 2 * B * 4 * H * (H + H)        # layer-1 gate matmuls
                   + 2 * B * H * hidden             # fc_1
                   + 2 * B * hidden * out_size))    # fc_2 accumulation
  transcendentals = int(T * B * 2 * 5 * H)          # 3 sigmoid + 2 tanh per cell
  bytes_accessed = int(sum(a.size * a.dtype.itemsize for a in args)
                       + B * out_size * x.dtype.itemsize)

  kernel = functools.partial(_lstm_fused_kernel, T, B)
  return pl.pallas_call(
      kernel,
      out_shape=jax.ShapeDtypeStruct((B, out_size), x.dtype),
      cost_estimate=pl.CostEstimate(flops=flops,
                                    transcendentals=transcendentals,
                                    bytes_accessed=bytes_accessed),
  )(*args)


# ----------------------------------------------------------------------------
# Deterministic parameter init (PyTorch-style uniform) + pure-JAX reference
# ----------------------------------------------------------------------------
def init_params(key, feature_count, in_size, out_size, hidden_size_lstm, hidden_size):
  H, F, T = hidden_size_lstm, feature_count, in_size
  ks = jax.random.split(key, 12)
  kH = 1.0 / np.sqrt(H)
  k1 = 1.0 / np.sqrt(H)                        # fc_1 fan-in = hidden_size_lstm
  k2 = 1.0 / np.sqrt(hidden_size * T)          # fc_2 fan-in = hidden * in_size
  u = lambda k, s, lim: jax.random.uniform(k, s, jnp.float32, -lim, lim)

  # nn.LSTM parameters (layer 0 input = F, layer 1 input = H), PyTorch layout.
  wih0 = u(ks[0], (4 * H, F), kH)
  whh0 = u(ks[1], (4 * H, H), kH)
  bih0 = u(ks[2], (4 * H,), kH)
  bhh0 = u(ks[3], (4 * H,), kH)
  wih1 = u(ks[4], (4 * H, H), kH)
  whh1 = u(ks[5], (4 * H, H), kH)
  bih1 = u(ks[6], (4 * H,), kH)
  bhh1 = u(ks[7], (4 * H,), kH)
  # fc_1 / fc_2
  w1 = u(ks[8], (hidden_size, H), k1)
  b1 = u(ks[9], (hidden_size,), k1)
  w2 = u(ks[10], (out_size, hidden_size * T), k2)
  b2 = u(ks[11], (out_size,), k2)

  def per_gate(w):  # (4H, in) -> (4, in, H): one (in, H) matrix per gate
    return jnp.transpose(w.reshape(4, H, -1), (0, 2, 1))

  return {
      # fused-kernel layout (per-gate weights, fused biases, reshaped fc_2)
      "wih0_g": per_gate(wih0), "whh0_g": per_gate(whh0),
      "b0_g": (bih0 + bhh0).reshape(4, 1, H),
      "wih1_g": per_gate(wih1), "whh1_g": per_gate(whh1),
      "b1_g": (bih1 + bhh1).reshape(4, 1, H),
      "w1_t": w1.T, "b1_fc": b1[None, :],
      "w2r": w2.T.reshape(T, hidden_size, out_size), "b2_fc": b2[None, :],
      # reference (concatenated) layout, derived from the same base weights
      "wih0_t": wih0.T, "whh0_t": whh0.T, "b0": (bih0 + bhh0)[None, :],
      "wih1_t": wih1.T, "whh1_t": whh1.T, "b1": (bih1 + bhh1)[None, :],
      "w2_t": w2.T,
  }


def reference_forward(x, p):
  """Pure-JAX reference with identical math (concatenated-gate layout)."""
  B, T, F = x.shape
  Hl = p["whh0_t"].shape[0]

  def cell(x_t, h, c, wih_t, whh_t, b):
    g = x_t @ wih_t + h @ whh_t + b
    i = jax.nn.sigmoid(g[:, :Hl])
    f = jax.nn.sigmoid(g[:, Hl:2 * Hl])
    gg = jnp.tanh(g[:, 2 * Hl:3 * Hl])
    o = jax.nn.sigmoid(g[:, 3 * Hl:])
    c = f * c + i * gg
    return o * jnp.tanh(c), c

  def step(carry, x_t):
    h0, c0, h1, c1 = carry
    h0, c0 = cell(x_t, h0, c0, p["wih0_t"], p["whh0_t"], p["b0"])
    h1, c1 = cell(h0, h1, c1, p["wih1_t"], p["whh1_t"], p["b1"])
    return (h0, c0, h1, c1), h1

  z = jnp.zeros((B, Hl), jnp.float32)
  _, ys = jax.lax.scan(step, (z, z, z, z), jnp.transpose(x, (1, 0, 2)))
  out = jnp.transpose(ys, (1, 0, 2))                        # (B, T, Hl)
  out = jnp.maximum(out, 0.0)
  out = jnp.maximum(out @ p["w1_t"] + p["b1_fc"], 0.0)      # (B, T, hidden)
  out = out.reshape(B, -1)
  return out @ p["w2_t"] + p["b2_fc"]


# ----------------------------------------------------------------------------
if __name__ == "__main__":
  # Small shapes consistent with the module: x is (batch, seq=in_size, feature_count)
  B, in_size, feature_count = 2, 8, 4
  hidden_size_lstm, hidden_size, out_size = 32, 16, 8

  key = jax.random.PRNGKey(0)
  kx, kp = jax.random.split(key)
  x = jax.random.normal(kx, (B, in_size, feature_count), jnp.float32)
  params = init_params(kp, feature_count, in_size, out_size,
                       hidden_size_lstm, hidden_size)

  fwd = jax.jit(functools.partial(lstm_model_forward, params=params))
  y = fwd(x)
  jax.block_until_ready(y)

  y_ref = reference_forward(x, params)
  np.testing.assert_allclose(np.asarray(y), np.asarray(y_ref), rtol=1e-4, atol=1e-4)
  assert y.shape == (B, out_size)
  print("KERNEL_OK")
</pallas_src>

<mosaic_0001>
module attributes {stable_mosaic.version = 11 : i64} {
  func.func @_lstm_fused_kernel(%arg0: memref<16x4xf32, #tpu.memory_space<vmem>>, %arg1: memref<4x4x32xf32, #tpu.memory_space<vmem>>, %arg2: memref<4x32x32xf32, #tpu.memory_space<vmem>>, %arg3: memref<4x1x32xf32, #tpu.memory_space<vmem>>, %arg4: memref<4x32x32xf32, #tpu.memory_space<vmem>>, %arg5: memref<4x32x32xf32, #tpu.memory_space<vmem>>, %arg6: memref<4x1x32xf32, #tpu.memory_space<vmem>>, %arg7: memref<32x16xf32, #tpu.memory_space<vmem>>, %arg8: memref<1x16xf32, #tpu.memory_space<vmem>>, %arg9: memref<8x16x8xf32, #tpu.memory_space<vmem>>, %arg10: memref<1x8xf32, #tpu.memory_space<vmem>>, %arg11: memref<2x8xf32, #tpu.memory_space<vmem>>) attributes {dimension_semantics = [], scalar_prefetch = 0 : i64, scratch_operands = 0 : i64, tpu.core_type = #tpu.core_type<tc>} {
    %c0 = arith.constant 0 : index
    %c0_0 = arith.constant 0 : index
    %0 = vector.load %arg0[%c0, %c0_0] : memref<16x4xf32, #tpu.memory_space<vmem>>, vector<16x4xf32>
    %c0_1 = arith.constant 0 : index
    %c0_2 = arith.constant 0 : index
    %1 = vector.load %arg7[%c0_1, %c0_2] : memref<32x16xf32, #tpu.memory_space<vmem>>, vector<32x16xf32>
    %c0_3 = arith.constant 0 : index
    %c0_4 = arith.constant 0 : index
    %2 = vector.load %arg8[%c0_3, %c0_4] : memref<1x16xf32, #tpu.memory_space<vmem>>, vector<1x16xf32>
    %c0_5 = arith.constant 0 : index
    %c0_6 = arith.constant 0 : index
    %c0_7 = arith.constant 0 : index
    %3 = vector.load %arg1[%c0_5, %c0_6, %c0_7] : memref<4x4x32xf32, #tpu.memory_space<vmem>>, vector<1x4x32xf32>
    %4 = vector.shape_cast %3 : vector<1x4x32xf32> to vector<4x32xf32>
    %c1 = arith.constant 1 : index
    %c0_8 = arith.constant 0 : index
    %c0_9 = arith.constant 0 : index
    %5 = vector.load %arg1[%c1, %c0_8, %c0_9] : memref<4x4x32xf32, #tpu.memory_space<vmem>>, vector<1x4x32xf32>
    %6 = vector.shape_cast %5 : vector<1x4x32xf32> to vector<4x32xf32>
    %c2 = arith.constant 2 : index
    %c0_10 = arith.constant 0 : index
    %c0_11 = arith.constant 0 : index
    %7 = vector.load %arg1[%c2, %c0_10, %c0_11] : memref<4x4x32xf32, #tpu.memory_space<vmem>>, vector<1x4x32xf32>
    %8 = vector.shape_cast %7 : vector<1x4x32xf32> to vector<4x32xf32>
    %c3 = arith.constant 3 : index
    %c0_12 = arith.constant 0 : index
    %c0_13 = arith.constant 0 : index
    %9 = vector.load %arg1[%c3, %c0_12, %c0_13] : memref<4x4x32xf32, #tpu.memory_space<vmem>>, vector<1x4x32xf32>
    %10 = vector.shape_cast %9 : vector<1x4x32xf32> to vector<4x32xf32>
    %c0_14 = arith.constant 0 : index
    %c0_15 = arith.constant 0 : index
    %c0_16 = arith.constant 0 : index
    %11 = vector.load %arg2[%c0_14, %c0_15, %c0_16] : memref<4x32x32xf32, #tpu.memory_space<vmem>>, vector<1x32x32xf32>
    %12 = vector.shape_cast %11 : vector<1x32x32xf32> to vector<32x32xf32>
    %c1_17 = arith.constant 1 : index
    %c0_18 = arith.constant 0 : index
    %c0_19 = arith.constant 0 : index
    %13 = vector.load %arg2[%c1_17, %c0_18, %c0_19] : memref<4x32x32xf32, #tpu.memory_space<vmem>>, vector<1x32x32xf32>
    %14 = vector.shape_cast %13 : vector<1x32x32xf32> to vector<32x32xf32>
    %c2_20 = arith.constant 2 : index
    %c0_21 = arith.constant 0 : index
    %c0_22 = arith.constant 0 : index
    %15 = vector.load %arg2[%c2_20, %c0_21, %c0_22] : memref<4x32x32xf32, #tpu.memory_space<vmem>>, vector<1x32x32xf32>
    %16 = vector.shape_cast %15 : vector<1x32x32xf32> to vector<32x32xf32>
    %c3_23 = arith.constant 3 : index
    %c0_24 = arith.constant 0 : index
    %c0_25 = arith.constant 0 : index
    %17 = vector.load %arg2[%c3_23, %c0_24, %c0_25] : memref<4x32x32xf32, #tpu.memory_space<vmem>>, vector<1x32x32xf32>
    %18 = vector.shape_cast %17 : vector<1x32x32xf32> to vector<32x32xf32>
    %c0_26 = arith.constant 0 : index
    %c0_27 = arith.constant 0 : index
    %c0_28 = arith.constant 0 : index
    %19 = vector.load %arg3[%c0_26, %c0_27, %c0_28] : memref<4x1x32xf32, #tpu.memory_space<vmem>>, vector<1x1x32xf32>
    %20 = vector.shape_cast %19 : vector<1x1x32xf32> to vector<1x32xf32>
    %c1_29 = arith.constant 1 : index
    %c0_30 = arith.constant 0 : index
    %c0_31 = arith.constant 0 : index
    %21 = vector.load %arg3[%c1_29, %c0_30, %c0_31] : memref<4x1x32xf32, #tpu.memory_space<vmem>>, vector<1x1x32xf32>
    %22 = vector.shape_cast %21 : vector<1x1x32xf32> to vector<1x32xf32>
    %c2_32 = arith.constant 2 : index
    %c0_33 = arith.constant 0 : index
    %c0_34 = arith.constant 0 : index
    %23 = vector.load %arg3[%c2_32, %c0_33, %c0_34] : memref<4x1x32xf32, #tpu.memory_space<vmem>>, vector<1x1x32xf32>
    %24 = vector.shape_cast %23 : vector<1x1x32xf32> to vector<1x32xf32>
    %c3_35 = arith.constant 3 : index
    %c0_36 = arith.constant 0 : index
    %c0_37 = arith.constant 0 : index
    %25 = vector.load %arg3[%c3_35, %c0_36, %c0_37] : memref<4x1x32xf32, #tpu.memory_space<vmem>>, vector<1x1x32xf32>
    %26 = vector.shape_cast %25 : vector<1x1x32xf32> to vector<1x32xf32>
    %c0_38 = arith.constant 0 : index
    %c0_39 = arith.constant 0 : index
    %c0_40 = arith.constant 0 : index
    %27 = vector.load %arg4[%c0_38, %c0_39, %c0_40] : memref<4x32x32xf32, #tpu.memory_space<vmem>>, vector<1x32x32xf32>
    %28 = vector.shape_cast %27 : vector<1x32x32xf32> to vector<32x32xf32>
    %c1_41 = arith.constant 1 : index
    %c0_42 = arith.constant 0 : index
    %c0_43 = arith.constant 0 : index
    %29 = vector.load %arg4[%c1_41, %c0_42, %c0_43] : memref<4x32x32xf32, #tpu.memory_space<vmem>>, vector<1x32x32xf32>
    %30 = vector.shape_cast %29 : vector<1x32x32xf32> to vector<32x32xf32>
    %c2_44 = arith.constant 2 : index
    %c0_45 = arith.constant 0 : index
    %c0_46 = arith.constant 0 : index
    %31 = vector.load %arg4[%c2_44, %c0_45, %c0_46] : memref<4x32x32xf32, #tpu.memory_space<vmem>>, vector<1x32x32xf32>
    %32 = vector.shape_cast %31 : vector<1x32x32xf32> to vector<32x32xf32>
    %c3_47 = arith.constant 3 : index
    %c0_48 = arith.constant 0 : index
    %c0_49 = arith.constant 0 : index
    %33 = vector.load %arg4[%c3_47, %c0_48, %c0_49] : memref<4x32x32xf32, #tpu.memory_space<vmem>>, vector<1x32x32xf32>
    %34 = vector.shape_cast %33 : vector<1x32x32xf32> to vector<32x32xf32>
    %c0_50 = arith.constant 0 : index
    %c0_51 = arith.constant 0 : index
    %c0_52 = arith.constant 0 : index
    %35 = vector.load %arg5[%c0_50, %c0_51, %c0_52] : memref<4x32x32xf32, #tpu.memory_space<vmem>>, vector<1x32x32xf32>
    %36 = vector.shape_cast %35 : vector<1x32x32xf32> to vector<32x32xf32>
    %c1_53 = arith.constant 1 : index
    %c0_54 = arith.constant 0 : index
    %c0_55 = arith.constant 0 : index
    %37 = vector.load %arg5[%c1_53, %c0_54, %c0_55] : memref<4x32x32xf32, #tpu.memory_space<vmem>>, vector<1x32x32xf32>
    %38 = vector.shape_cast %37 : vector<1x32x32xf32> to vector<32x32xf32>
    %c2_56 = arith.constant 2 : index
    %c0_57 = arith.constant 0 : index
    %c0_58 = arith.constant 0 : index
    %39 = vector.load %arg5[%c2_56, %c0_57, %c0_58] : memref<4x32x32xf32, #tpu.memory_space<vmem>>, vector<1x32x32xf32>
    %40 = vector.shape_cast %39 : vector<1x32x32xf32> to vector<32x32xf32>
    %c3_59 = arith.constant 3 : index
    %c0_60 = arith.constant 0 : index
    %c0_61 = arith.constant 0 : index
    %41 = vector.load %arg5[%c3_59, %c0_60, %c0_61] : memref<4x32x32xf32, #tpu.memory_space<vmem>>, vector<1x32x32xf32>
    %42 = vector.shape_cast %41 : vector<1x32x32xf32> to vector<32x32xf32>
    %c0_62 = arith.constant 0 : index
    %c0_63 = arith.constant 0 : index
    %c0_64 = arith.constant 0 : index
    %43 = vector.load %arg6[%c0_62, %c0_63, %c0_64] : memref<4x1x32xf32, #tpu.memory_space<vmem>>, vector<1x1x32xf32>
    %44 = vector.shape_cast %43 : vector<1x1x32xf32> to vector<1x32xf32>
    %c1_65 = arith.constant 1 : index
    %c0_66 = arith.constant 0 : index
    %c0_67 = arith.constant 0 : index
    %45 = vector.load %arg6[%c1_65, %c0_66, %c0_67] : memref<4x1x32xf32, #tpu.memory_space<vmem>>, vector<1x1x32xf32>
    %46 = vector.shape_cast %45 : vector<1x1x32xf32> to vector<1x32xf32>
    %c2_68 = arith.constant 2 : index
    %c0_69 = arith.constant 0 : index
    %c0_70 = arith.constant 0 : index
    %47 = vector.load %arg6[%c2_68, %c0_69, %c0_70] : memref<4x1x32xf32, #tpu.memory_space<vmem>>, vector<1x1x32xf32>
    %48 = vector.shape_cast %47 : vector<1x1x32xf32> to vector<1x32xf32>
    %c3_71 = arith.constant 3 : index
    %c0_72 = arith.constant 0 : index
    %c0_73 = arith.constant 0 : index
    %49 = vector.load %arg6[%c3_71, %c0_72, %c0_73] : memref<4x1x32xf32, #tpu.memory_space<vmem>>, vector<1x1x32xf32>
    %50 = vector.shape_cast %49 : vector<1x1x32xf32> to vector<1x32xf32>
    %cst = arith.constant dense<0.000000e+00> : vector<16x32xf32>
    %51 = tpu.matmul %0, %4, %cst {dimension_numbers = #tpu.dot_dimension_numbers<[1], [0], [0], [1], [0, 0, 1, 1], [], []>} : vector<16x4xf32>, vector<4x32xf32>, vector<16x32xf32> -> vector<16x32xf32>
    %52 = vector.broadcast %20 : vector<1x32xf32> to vector<16x32xf32>
    %53 = arith.addf %51, %52 : vector<16x32xf32>
    %cst_74 = arith.constant dense<0.000000e+00> : vector<16x32xf32>
    %54 = tpu.matmul %0, %6, %cst_74 {dimension_numbers = #tpu.dot_dimension_numbers<[1], [0], [0], [1], [0, 0, 1, 1], [], []>} : vector<16x4xf32>, vector<4x32xf32>, vector<16x32xf32> -> vector<16x32xf32>
    %55 = vector.broadcast %22 : vector<1x32xf32> to vector<16x32xf32>
    %56 = arith.addf %54, %55 : vector<16x32xf32>
    %cst_75 = arith.constant dense<0.000000e+00> : vector<16x32xf32>
    %57 = tpu.matmul %0, %8, %cst_75 {dimension_numbers = #tpu.dot_dimension_numbers<[1], [0], [0], [1], [0, 0, 1, 1], [], []>} : vector<16x4xf32>, vector<4x32xf32>, vector<16x32xf32> -> vector<16x32xf32>
    %58 = vector.broadcast %24 : vector<1x32xf32> to vector<16x32xf32>
    %59 = arith.addf %57, %58 : vector<16x32xf32>
    %cst_76 = arith.constant dense<0.000000e+00> : vector<16x32xf32>
    %60 = tpu.matmul %0, %10, %cst_76 {dimension_numbers = #tpu.dot_dimension_numbers<[1], [0], [0], [1], [0, 0, 1, 1], [], []>} : vector<16x4xf32>, vector<4x32xf32>, vector<16x32xf32> -> vector<16x32xf32>
    %61 = vector.broadcast %26 : vector<1x32xf32> to vector<16x32xf32>
    %62 = arith.addf %60, %61 : vector<16x32xf32>
    %cst_77 = arith.constant 0.000000e+00 : f32
    %63 = vector.broadcast %cst_77 : f32 to vector<2x32xf32>
    %cst_78 = arith.constant 0.000000e+00 : f32
    %64 = vector.broadcast %cst_78 : f32 to vector<2x8xf32>
    %65 = vector.extract_strided_slice %53 {offsets = [0, 0], sizes = [2, 32], strides = [1, 1]} : vector<16x32xf32> to vector<2x32xf32>
    %66 = vector.extract_strided_slice %56 {offsets = [0, 0], sizes = [2, 32], strides = [1, 1]} : vector<16x32xf32> to vector<2x32xf32>
    %67 = vector.extract_strided_slice %59 {offsets = [0, 0], sizes = [2, 32], strides = [1, 1]} : vector<16x32xf32> to vector<2x32xf32>
    %68 = vector.extract_strided_slice %62 {offsets = [0, 0], sizes = [2, 32], strides = [1, 1]} : vector<16x32xf32> to vector<2x32xf32>
    %cst_79 = arith.constant dense<0.000000e+00> : vector<2x32xf32>
    %69 = tpu.matmul %63, %12, %cst_79 {dimension_numbers = #tpu.dot_dimension_numbers<[1], [0], [0], [1], [0, 0, 1, 1], [], []>} : vector<2x32xf32>, vector<32x32xf32>, vector<2x32xf32> -> vector<2x32xf32>
    %70 = arith.addf %65, %69 : vector<2x32xf32>
    %71 = arith.negf %70 : vector<2x32xf32>
    %72 = math.exp %71 : vector<2x32xf32>
    %cst_80 = arith.constant 1.000000e+00 : f32
    %73 = vector.broadcast %cst_80 : f32 to vector<2x32xf32>
    %74 = arith.addf %73, %72 : vector<2x32xf32>
    %75 = arith.divf %73, %74 : vector<2x32xf32>
    %cst_81 = arith.constant dense<0.000000e+00> : vector<2x32xf32>
    %76 = tpu.matmul %63, %14, %cst_81 {dimension_numbers = #tpu.dot_dimension_numbers<[1], [0], [0], [1], [0, 0, 1, 1], [], []>} : vector<2x32xf32>, vector<32x32xf32>, vector<2x32xf32> -> vector<2x32xf32>
    %77 = arith.addf %66, %76 : vector<2x32xf32>
    %78 = arith.negf %77 : vector<2x32xf32>
    %79 = math.exp %78 : vector<2x32xf32>
    %cst_82 = arith.constant 1.000000e+00 : f32
    %80 = vector.broadcast %cst_82 : f32 to vector<2x32xf32>
    %81 = arith.addf %80, %79 : vector<2x32xf32>
    %82 = arith.divf %80, %81 : vector<2x32xf32>
    %cst_83 = arith.constant dense<0.000000e+00> : vector<2x32xf32>
    %83 = tpu.matmul %63, %16, %cst_83 {dimension_numbers = #tpu.dot_dimension_numbers<[1], [0], [0], [1], [0, 0, 1, 1], [], []>} : vector<2x32xf32>, vector<32x32xf32>, vector<2x32xf32> -> vector<2x32xf32>
    %84 = arith.addf %67, %83 : vector<2x32xf32>
    %85 = math.tanh %84 : vector<2x32xf32>
    %cst_84 = arith.constant dense<0.000000e+00> : vector<2x32xf32>
    %86 = tpu.matmul %63, %18, %cst_84 {dimension_numbers = #tpu.dot_dimension_numbers<[1], [0], [0], [1], [0, 0, 1, 1], [], []>} : vector<2x32xf32>, vector<32x32xf32>, vector<2x32xf32> -> vector<2x32xf32>
    %87 = arith.addf %68, %86 : vector<2x32xf32>
    %88 = arith.negf %87 : vector<2x32xf32>
    %89 = math.exp %88 : vector<2x32xf32>
    %cst_85 = arith.constant 1.000000e+00 : f32
    %90 = vector.broadcast %cst_85 : f32 to vector<2x32xf32>
    %91 = arith.addf %90, %89 : vector<2x32xf32>
    %92 = arith.divf %90, %91 : vector<2x32xf32>
    %93 = arith.mulf %82, %63 : vector<2x32xf32>
    %94 = arith.mulf %75, %85 : vector<2x32xf32>
    %95 = arith.addf %93, %94 : vector<2x32xf32>
    %96 = math.tanh %95 : vector<2x32xf32>
    %97 = arith.mulf %92, %96 : vector<2x32xf32>
    %cst_86 = arith.constant dense<0.000000e+00> : vector<2x32xf32>
    %98 = tpu.matmul %97, %28, %cst_86 {dimension_numbers = #tpu.dot_dimension_numbers<[1], [0], [0], [1], [0, 0, 1, 1], [], []>} : vector<2x32xf32>, vector<32x32xf32>, vector<2x32xf32> -> vector<2x32xf32>
    %99 = vector.broadcast %44 : vector<1x32xf32> to vector<2x32xf32>
    %100 = arith.addf %98, %99 : vector<2x32xf32>
    %cst_87 = arith.constant dense<0.000000e+00> : vector<2x32xf32>
    %101 = tpu.matmul %97, %30, %cst_87 {dimension_numbers = #tpu.dot_dimension_numbers<[1], [0], [0], [1], [0, 0, 1, 1], [], []>} : vector<2x32xf32>, vector<32x32xf32>, vector<2x32xf32> -> vector<2x32xf32>
    %102 = vector.broadcast %46 : vector<1x32xf32> to vector<2x32xf32>
    %103 = arith.addf %101, %102 : vector<2x32xf32>
    %cst_88 = arith.constant dense<0.000000e+00> : vector<2x32xf32>
    %104 = tpu.matmul %97, %32, %cst_88 {dimension_numbers = #tpu.dot_dimension_numbers<[1], [0], [0], [1], [0, 0, 1, 1], [], []>} : vector<2x32xf32>, vector<32x32xf32>, vector<2x32xf32> -> vector<2x32xf32>
    %105 = vector.broadcast %48 : vector<1x32xf32> to vector<2x32xf32>
    %106 = arith.addf %104, %105 : vector<2x32xf32>
    %cst_89 = arith.constant dense<0.000000e+00> : vector<2x32xf32>
    %107 = tpu.matmul %97, %34, %cst_89 {dimension_numbers = #tpu.dot_dimension_numbers<[1], [0], [0], [1], [0, 0, 1, 1], [], []>} : vector<2x32xf32>, vector<32x32xf32>, vector<2x32xf32> -> vector<2x32xf32>
    %108 = vector.broadcast %50 : vector<1x32xf32> to vector<2x32xf32>
    %109 = arith.addf %107, %108 : vector<2x32xf32>
    %cst_90 = arith.constant dense<0.000000e+00> : vector<2x32xf32>
    %110 = tpu.matmul %63, %36, %cst_90 {dimension_numbers = #tpu.dot_dimension_numbers<[1], [0], [0], [1], [0, 0, 1, 1], [], []>} : vector<2x32xf32>, vector<32x32xf32>, vector<2x32xf32> -> vector<2x32xf32>
    %111 = arith.addf %100, %110 : vector<2x32xf32>
    %112 = arith.negf %111 : vector<2x32xf32>
    %113 = math.exp %112 : vector<2x32xf32>
    %cst_91 = arith.constant 1.000000e+00 : f32
    %114 = vector.broadcast %cst_91 : f32 to vector<2x32xf32>
    %115 = arith.addf %114, %113 : vector<2x32xf32>
    %116 = arith.divf %114, %115 : vector<2x32xf32>
    %cst_92 = arith.constant dense<0.000000e+00> : vector<2x32xf32>
    %117 = tpu.matmul %63, %38, %cst_92 {dimension_numbers = #tpu.dot_dimension_numbers<[1], [0], [0], [1], [0, 0, 1, 1], [], []>} : vector<2x32xf32>, vector<32x32xf32>, vector<2x32xf32> -> vector<2x32xf32>
    %118 = arith.addf %103, %117 : vector<2x32xf32>
    %119 = arith.negf %118 : vector<2x32xf32>
    %120 = math.exp %119 : vector<2x32xf32>
    %cst_93 = arith.constant 1.000000e+00 : f32
    %121 = vector.broadcast %cst_93 : f32 to vector<2x32xf32>
    %122 = arith.addf %121, %120 : vector<2x32xf32>
    %123 = arith.divf %121, %122 : vector<2x32xf32>
    %cst_94 = arith.constant dense<0.000000e+00> : vector<2x32xf32>
    %124 = tpu.matmul %63, %40, %cst_94 {dimension_numbers = #tpu.dot_dimension_numbers<[1], [0], [0], [1], [0, 0, 1, 1], [], []>} : vector<2x32xf32>, vector<32x32xf32>, vector<2x32xf32> -> vector<2x32xf32>
    %125 = arith.addf %106, %124 : vector<2x32xf32>
    %126 = math.tanh %125 : vector<2x32xf32>
    %cst_95 = arith.constant dense<0.000000e+00> : vector<2x32xf32>
    %127 = tpu.matmul %63, %42, %cst_95 {dimension_numbers = #tpu.dot_dimension_numbers<[1], [0], [0], [1], [0, 0, 1, 1], [], []>} : vector<2x32xf32>, vector<32x32xf32>, vector<2x32xf32> -> vector<2x32xf32>
    %128 = arith.addf %109, %127 : vector<2x32xf32>
    %129 = arith.negf %128 : vector<2x32xf32>
    %130 = math.exp %129 : vector<2x32xf32>
    %cst_96 = arith.constant 1.000000e+00 : f32
    %131 = vector.broadcast %cst_96 : f32 to vector<2x32xf32>
    %132 = arith.addf %131, %130 : vector<2x32xf32>
    %133 = arith.divf %131, %132 : vector<2x32xf32>
    %134 = arith.mulf %123, %63 : vector<2x32xf32>
    %135 = arith.mulf %116, %126 : vector<2x32xf32>
    %136 = arith.addf %134, %135 : vector<2x32xf32>
    %137 = math.tanh %136 : vector<2x32xf32>
    %138 = arith.mulf %133, %137 : vector<2x32xf32>
    %cst_97 = arith.constant 0.000000e+00 : f32
    %139 = vector.broadcast %cst_97 : f32 to vector<2x32xf32>
    %140 = arith.maximumf %138, %139 : vector<2x32xf32>
    %cst_98 = arith.constant dense<0.000000e+00> : vector<2x16xf32>
    %141 = tpu.matmul %140, %1, %cst_98 {dimension_numbers = #tpu.dot_dimension_numbers<[1], [0], [0], [1], [0, 0, 1, 1], [], []>} : vector<2x32xf32>, vector<32x16xf32>, vector<2x16xf32> -> vector<2x16xf32>
    %142 = vector.broadcast %2 : vector<1x16xf32> to vector<2x16xf32>
    %143 = arith.addf %141, %142 : vector<2x16xf32>
    %cst_99 = arith.constant 0.000000e+00 : f32
    %144 = vector.broadcast %cst_99 : f32 to vector<2x16xf32>
    %145 = arith.maximumf %143, %144 : vector<2x16xf32>
    %c0_100 = arith.constant 0 : index
    %c0_101 = arith.constant 0 : index
    %c0_102 = arith.constant 0 : index
    %146 = vector.load %arg9[%c0_100, %c0_101, %c0_102] : memref<8x16x8xf32, #tpu.memory_space<vmem>>, vector<1x16x8xf32>
    %147 = vector.shape_cast %146 : vector<1x16x8xf32> to vector<16x8xf32>
    %cst_103 = arith.constant dense<0.000000e+00> : vector<2x8xf32>
    %148 = tpu.matmul %145, %147, %cst_103 {dimension_numbers = #tpu.dot_dimension_numbers<[1], [0], [0], [1], [0, 0, 1, 1], [], []>} : vector<2x16xf32>, vector<16x8xf32>, vector<2x8xf32> -> vector<2x8xf32>
    %149 = arith.addf %64, %148 : vector<2x8xf32>
    %150 = vector.extract_strided_slice %53 {offsets = [2, 0], sizes = [2, 32], strides = [1, 1]} : vector<16x32xf32> to vector<2x32xf32>
    %151 = vector.extract_strided_slice %56 {offsets = [2, 0], sizes = [2, 32], strides = [1, 1]} : vector<16x32xf32> to vector<2x32xf32>
    %152 = vector.extract_strided_slice %59 {offsets = [2, 0], sizes = [2, 32], strides = [1, 1]} : vector<16x32xf32> to vector<2x32xf32>
    %153 = vector.extract_strided_slice %62 {offsets = [2, 0], sizes = [2, 32], strides = [1, 1]} : vector<16x32xf32> to vector<2x32xf32>
    %cst_104 = arith.constant dense<0.000000e+00> : vector<2x32xf32>
    %154 = tpu.matmul %97, %12, %cst_104 {dimension_numbers = #tpu.dot_dimension_numbers<[1], [0], [0], [1], [0, 0, 1, 1], [], []>} : vector<2x32xf32>, vector<32x32xf32>, vector<2x32xf32> -> vector<2x32xf32>
    %155 = arith.addf %150, %154 : vector<2x32xf32>
    %156 = arith.negf %155 : vector<2x32xf32>
    %157 = math.exp %156 : vector<2x32xf32>
    %cst_105 = arith.constant 1.000000e+00 : f32
    %158 = vector.broadcast %cst_105 : f32 to vector<2x32xf32>
    %159 = arith.addf %158, %157 : vector<2x32xf32>
    %160 = arith.divf %158, %159 : vector<2x32xf32>
    %cst_106 = arith.constant dense<0.000000e+00> : vector<2x32xf32>
    %161 = tpu.matmul %97, %14, %cst_106 {dimension_numbers = #tpu.dot_dimension_numbers<[1], [0], [0], [1], [0, 0, 1, 1], [], []>} : vector<2x32xf32>, vector<32x32xf32>, vector<2x32xf32> -> vector<2x32xf32>
    %162 = arith.addf %151, %161 : vector<2x32xf32>
    %163 = arith.negf %162 : vector<2x32xf32>
    %164 = math.exp %163 : vector<2x32xf32>
    %cst_107 = arith.constant 1.000000e+00 : f32
    %165 = vector.broadcast %cst_107 : f32 to vector<2x32xf32>
    %166 = arith.addf %165, %164 : vector<2x32xf32>
    %167 = arith.divf %165, %166 : vector<2x32xf32>
    %cst_108 = arith.constant dense<0.000000e+00> : vector<2x32xf32>
    %168 = tpu.matmul %97, %16, %cst_108 {dimension_numbers = #tpu.dot_dimension_numbers<[1], [0], [0], [1], [0, 0, 1, 1], [], []>} : vector<2x32xf32>, vector<32x32xf32>, vector<2x32xf32> -> vector<2x32xf32>
    %169 = arith.addf %152, %168 : vector<2x32xf32>
    %170 = math.tanh %169 : vector<2x32xf32>
    %cst_109 = arith.constant dense<0.000000e+00> : vector<2x32xf32>
    %171 = tpu.matmul %97, %18, %cst_109 {dimension_numbers = #tpu.dot_dimension_numbers<[1], [0], [0], [1], [0, 0, 1, 1], [], []>} : vector<2x32xf32>, vector<32x32xf32>, vector<2x32xf32> -> vector<2x32xf32>
    %172 = arith.addf %153, %171 : vector<2x32xf32>
    %173 = arith.negf %172 : vector<2x32xf32>
    %174 = math.exp %173 : vector<2x32xf32>
    %cst_110 = arith.constant 1.000000e+00 : f32
    %175 = vector.broadcast %cst_110 : f32 to vector<2x32xf32>
    %176 = arith.addf %175, %174 : vector<2x32xf32>
    %177 = arith.divf %175, %176 : vector<2x32xf32>
    %178 = arith.mulf %167, %95 : vector<2x32xf32>
    %179 = arith.mulf %160, %170 : vector<2x32xf32>
    %180 = arith.addf %178, %179 : vector<2x32xf32>
    %181 = math.tanh %180 : vector<2x32xf32>
    %182 = arith.mulf %177, %181 : vector<2x32xf32>
    %cst_111 = arith.constant dense<0.000000e+00> : vector<2x32xf32>
    %183 = tpu.matmul %182, %28, %cst_111 {dimension_numbers = #tpu.dot_dimension_numbers<[1], [0], [0], [1], [0, 0, 1, 1], [], []>} : vector<2x32xf32>, vector<32x32xf32>, vector<2x32xf32> -> vector<2x32xf32>
    %184 = vector.broadcast %44 : vector<1x32xf32> to vector<2x32xf32>
    %185 = arith.addf %183, %184 : vector<2x32xf32>
    %cst_112 = arith.constant dense<0.000000e+00> : vector<2x32xf32>
    %186 = tpu.matmul %182, %30, %cst_112 {dimension_numbers = #tpu.dot_dimension_numbers<[1], [0], [0], [1], [0, 0, 1, 1], [], []>} : vector<2x32xf32>, vector<32x32xf32>, vector<2x32xf32> -> vector<2x32xf32>
    %187 = vector.broadcast %46 : vector<1x32xf32> to vector<2x32xf32>
    %188 = arith.addf %186, %187 : vector<2x32xf32>
    %cst_113 = arith.constant dense<0.000000e+00> : vector<2x32xf32>
    %189 = tpu.matmul %182, %32, %cst_113 {dimension_numbers = #tpu.dot_dimension_numbers<[1], [0], [0], [1], [0, 0, 1, 1], [], []>} : vector<2x32xf32>, vector<32x32xf32>, vector<2x32xf32> -> vector<2x32xf32>
    %190 = vector.broadcast %48 : vector<1x32xf32> to vector<2x32xf32>
    %191 = arith.addf %189, %190 : vector<2x32xf32>
    %cst_114 = arith.constant dense<0.000000e+00> : vector<2x32xf32>
    %192 = tpu.matmul %182, %34, %cst_114 {dimension_numbers = #tpu.dot_dimension_numbers<[1], [0], [0], [1], [0, 0, 1, 1], [], []>} : vector<2x32xf32>, vector<32x32xf32>, vector<2x32xf32> -> vector<2x32xf32>
    %193 = vector.broadcast %50 : vector<1x32xf32> to vector<2x32xf32>
    %194 = arith.addf %192, %193 : vector<2x32xf32>
    %cst_115 = arith.constant dense<0.000000e+00> : vector<2x32xf32>
    %195 = tpu.matmul %138, %36, %cst_115 {dimension_numbers = #tpu.dot_dimension_numbers<[1], [0], [0], [1], [0, 0, 1, 1], [], []>} : vector<2x32xf32>, vector<32x32xf32>, vector<2x32xf32> -> vector<2x32xf32>
    %196 = arith.addf %185, %195 : vector<2x32xf32>
    %197 = arith.negf %196 : vector<2x32xf32>
    %198 = math.exp %197 : vector<2x32xf32>
    %cst_116 = arith.constant 1.000000e+00 : f32
    %199 = vector.broadcast %cst_116 : f32 to vector<2x32xf32>
    %200 = arith.addf %199, %198 : vector<2x32xf32>
    %201 = arith.divf %199, %200 : vector<2x32xf32>
    %cst_117 = arith.constant dense<0.000000e+00> : vector<2x32xf32>
    %202 = tpu.matmul %138, %38, %cst_117 {dimension_numbers = #tpu.dot_dimension_numbers<[1], [0], [0], [1], [0, 0, 1, 1], [], []>} : vector<2x32xf32>, vector<32x32xf32>, vector<2x32xf32> -> vector<2x32xf32>
    %203 = arith.addf %188, %202 : vector<2x32xf32>
    %204 = arith.negf %203 : vector<2x32xf32>
    %205 = math.exp %204 : vector<2x32xf32>
    %cst_118 = arith.constant 1.000000e+00 : f32
    %206 = vector.broadcast %cst_118 : f32 to vector<2x32xf32>
    %207 = arith.addf %206, %205 : vector<2x32xf32>
    %208 = arith.divf %206, %207 : vector<2x32xf32>
    %cst_119 = arith.constant dense<0.000000e+00> : vector<2x32xf32>
    %209 = tpu.matmul %138, %40, %cst_119 {dimension_numbers = #tpu.dot_dimension_numbers<[1], [0], [0], [1], [0, 0, 1, 1], [], []>} : vector<2x32xf32>, vector<32x32xf32>, vector<2x32xf32> -> vector<2x32xf32>
    %210 = arith.addf %191, %209 : vector<2x32xf32>
    %211 = math.tanh %210 : vector<2x32xf32>
    %cst_120 = arith.constant dense<0.000000e+00> : vector<2x32xf32>
    %212 = tpu.matmul %138, %42, %cst_120 {dimension_numbers = #tpu.dot_dimension_numbers<[1], [0], [0], [1], [0, 0, 1, 1], [], []>} : vector<2x32xf32>, vector<32x32xf32>, vector<2x32xf32> -> vector<2x32xf32>
    %213 = arith.addf %194, %212 : vector<2x32xf32>
    %214 = arith.negf %213 : vector<2x32xf32>
    %215 = math.exp %214 : vector<2x32xf32>
    %cst_121 = arith.constant 1.000000e+00 : f32
    %216 = vector.broadcast %cst_121 : f32 to vector<2x32xf32>
    %217 = arith.addf %216, %215 : vector<2x32xf32>
    %218 = arith.divf %216, %217 : vector<2x32xf32>
    %219 = arith.mulf %208, %136 : vector<2x32xf32>
    %220 = arith.mulf %201, %211 : vector<2x32xf32>
    %221 = arith.addf %219, %220 : vector<2x32xf32>
    %222 = math.tanh %221 : vector<2x32xf32>
    %223 = arith.mulf %218, %222 : vector<2x32xf32>
    %cst_122 = arith.constant 0.000000e+00 : f32
    %224 = vector.broadcast %cst_122 : f32 to vector<2x32xf32>
    %225 = arith.maximumf %223, %224 : vector<2x32xf32>
    %cst_123 = arith.constant dense<0.000000e+00> : vector<2x16xf32>
    %226 = tpu.matmul %225, %1, %cst_123 {dimension_numbers = #tpu.dot_dimension_numbers<[1], [0], [0], [1], [0, 0, 1, 1], [], []>} : vector<2x32xf32>, vector<32x16xf32>, vector<2x16xf32> -> vector<2x16xf32>
    %227 = vector.broadcast %2 : vector<1x16xf32> to vector<2x16xf32>
    %228 = arith.addf %226, %227 : vector<2x16xf32>
    %cst_124 = arith.constant 0.000000e+00 : f32
    %229 = vector.broadcast %cst_124 : f32 to vector<2x16xf32>
    %230 = arith.maximumf %228, %229 : vector<2x16xf32>
    %c1_125 = arith.constant 1 : index
    %c0_126 = arith.constant 0 : index
    %c0_127 = arith.constant 0 : index
    %231 = vector.load %arg9[%c1_125, %c0_126, %c0_127] : memref<8x16x8xf32, #tpu.memory_space<vmem>>, vector<1x16x8xf32>
    %232 = vector.shape_cast %231 : vector<1x16x8xf32> to vector<16x8xf32>
    %cst_128 = arith.constant dense<0.000000e+00> : vector<2x8xf32>
    %233 = tpu.matmul %230, %232, %cst_128 {dimension_numbers = #tpu.dot_dimension_numbers<[1], [0], [0], [1], [0, 0, 1, 1], [], []>} : vector<2x16xf32>, vector<16x8xf32>, vector<2x8xf32> -> vector<2x8xf32>
    %234 = arith.addf %149, %233 : vector<2x8xf32>
    %235 = vector.extract_strided_slice %53 {offsets = [4, 0], sizes = [2, 32], strides = [1, 1]} : vector<16x32xf32> to vector<2x32xf32>
    %236 = vector.extract_strided_slice %56 {offsets = [4, 0], sizes = [2, 32], strides = [1, 1]} : vector<16x32xf32> to vector<2x32xf32>
    %237 = vector.extract_strided_slice %59 {offsets = [4, 0], sizes = [2, 32], strides = [1, 1]} : vector<16x32xf32> to vector<2x32xf32>
    %238 = vector.extract_strided_slice %62 {offsets = [4, 0], sizes = [2, 32], strides = [1, 1]} : vector<16x32xf32> to vector<2x32xf32>
    %cst_129 = arith.constant dense<0.000000e+00> : vector<2x32xf32>
    %239 = tpu.matmul %182, %12, %cst_129 {dimension_numbers = #tpu.dot_dimension_numbers<[1], [0], [0], [1], [0, 0, 1, 1], [], []>} : vector<2x32xf32>, vector<32x32xf32>, vector<2x32xf32> -> vector<2x32xf32>
    %240 = arith.addf %235, %239 : vector<2x32xf32>
    %241 = arith.negf %240 : vector<2x32xf32>
    %242 = math.exp %241 : vector<2x32xf32>
    %cst_130 = arith.constant 1.000000e+00 : f32
    %243 = vector.broadcast %cst_130 : f32 to vector<2x32xf32>
    %244 = arith.addf %243, %242 : vector<2x32xf32>
    %245 = arith.divf %243, %244 : vector<2x32xf32>
    %cst_131 = arith.constant dense<0.000000e+00> : vector<2x32xf32>
    %246 = tpu.matmul %182, %14, %cst_131 {dimension_numbers = #tpu.dot_dimension_numbers<[1], [0], [0], [1], [0, 0, 1, 1], [], []>} : vector<2x32xf32>, vector<32x32xf32>, vector<2x32xf32> -> vector<2x32xf32>
    %247 = arith.addf %236, %246 : vector<2x32xf32>
    %248 = arith.negf %247 : vector<2x32xf32>
    %249 = math.exp %248 : vector<2x32xf32>
    %cst_132 = arith.constant 1.000000e+00 : f32
    %250 = vector.broadcast %cst_132 : f32 to vector<2x32xf32>
    %251 = arith.addf %250, %249 : vector<2x32xf32>
    %252 = arith.divf %250, %251 : vector<2x32xf32>
    %cst_133 = arith.constant dense<0.000000e+00> : vector<2x32xf32>
    %253 = tpu.matmul %182, %16, %cst_133 {dimension_numbers = #tpu.dot_dimension_numbers<[1], [0], [0], [1], [0, 0, 1, 1], [], []>} : vector<2x32xf32>, vector<32x32xf32>, vector<2x32xf32> -> vector<2x32xf32>
    %254 = arith.addf %237, %253 : vector<2x32xf32>
    %255 = math.tanh %254 : vector<2x32xf32>
    %cst_134 = arith.constant dense<0.000000e+00> : vector<2x32xf32>
    %256 = tpu.matmul %182, %18, %cst_134 {dimension_numbers = #tpu.dot_dimension_numbers<[1], [0], [0], [1], [0, 0, 1, 1], [], []>} : vector<2x32xf32>, vector<32x32xf32>, vector<2x32xf32> -> vector<2x32xf32>
    %257 = arith.addf %238, %256 : vector<2x32xf32>
    %258 = arith.negf %257 : vector<2x32xf32>
    %259 = math.exp %258 : vector<2x32xf32>
    %cst_135 = arith.constant 1.000000e+00 : f32
    %260 = vector.broadcast %cst_135 : f32 to vector<2x32xf32>
    %261 = arith.addf %260, %259 : vector<2x32xf32>
    %262 = arith.divf %260, %261 : vector<2x32xf32>
    %263 = arith.mulf %252, %180 : vector<2x32xf32>
    %264 = arith.mulf %245, %255 : vector<2x32xf32>
    %265 = arith.addf %263, %264 : vector<2x32xf32>
    %266 = math.tanh %265 : vector<2x32xf32>
    %267 = arith.mulf %262, %266 : vector<2x32xf32>
    %cst_136 = arith.constant dense<0.000000e+00> : vector<2x32xf32>
    %268 = tpu.matmul %267, %28, %cst_136 {dimension_numbers = #tpu.dot_dimension_numbers<[1], [0], [0], [1], [0, 0, 1, 1], [], []>} : vector<2x32xf32>, vector<32x32xf32>, vector<2x32xf32> -> vector<2x32xf32>
    %269 = vector.broadcast %44 : vector<1x32xf32> to vector<2x32xf32>
    %270 = arith.addf %268, %269 : vector<2x32xf32>
    %cst_137 = arith.constant dense<0.000000e+00> : vector<2x32xf32>
    %271 = tpu.matmul %267, %30, %cst_137 {dimension_numbers = #tpu.dot_dimension_numbers<[1], [0], [0], [1], [0, 0, 1, 1], [], []>} : vector<2x32xf32>, vector<32x32xf32>, vector<2x32xf32> -> vector<2x32xf32>
    %272 = vector.broadcast %46 : vector<1x32xf32> to vector<2x32xf32>
    %273 = arith.addf %271, %272 : vector<2x32xf32>
    %cst_138 = arith.constant dense<0.000000e+00> : vector<2x32xf32>
    %274 = tpu.matmul %267, %32, %cst_138 {dimension_numbers = #tpu.dot_dimension_numbers<[1], [0], [0], [1], [0, 0, 1, 1], [], []>} : vector<2x32xf32>, vector<32x32xf32>, vector<2x32xf32> -> vector<2x32xf32>
    %275 = vector.broadcast %48 : vector<1x32xf32> to vector<2x32xf32>
    %276 = arith.addf %274, %275 : vector<2x32xf32>
    %cst_139 = arith.constant dense<0.000000e+00> : vector<2x32xf32>
    %277 = tpu.matmul %267, %34, %cst_139 {dimension_numbers = #tpu.dot_dimension_numbers<[1], [0], [0], [1], [0, 0, 1, 1], [], []>} : vector<2x32xf32>, vector<32x32xf32>, vector<2x32xf32> -> vector<2x32xf32>
    %278 = vector.broadcast %50 : vector<1x32xf32> to vector<2x32xf32>
    %279 = arith.addf %277, %278 : vector<2x32xf32>
    %cst_140 = arith.constant dense<0.000000e+00> : vector<2x32xf32>
    %280 = tpu.matmul %223, %36, %cst_140 {dimension_numbers = #tpu.dot_dimension_numbers<[1], [0], [0], [1], [0, 0, 1, 1], [], []>} : vector<2x32xf32>, vector<32x32xf32>, vector<2x32xf32> -> vector<2x32xf32>
    %281 = arith.addf %270, %280 : vector<2x32xf32>
    %282 = arith.negf %281 : vector<2x32xf32>
    %283 = math.exp %282 : vector<2x32xf32>
    %cst_141 = arith.constant 1.000000e+00 : f32
    %284 = vector.broadcast %cst_141 : f32 to vector<2x32xf32>
    %285 = arith.addf %284, %283 : vector<2x32xf32>
    %286 = arith.divf %284, %285 : vector<2x32xf32>
    %cst_142 = arith.constant dense<0.000000e+00> : vector<2x32xf32>
    %287 = tpu.matmul %223, %38, %cst_142 {dimension_numbers = #tpu.dot_dimension_numbers<[1], [0], [0], [1], [0, 0, 1, 1], [], []>} : vector<2x32xf32>, vector<32x32xf32>, vector<2x32xf32> -> vector<2x32xf32>
    %288 = arith.addf %273, %287 : vector<2x32xf32>
    %289 = arith.negf %288 : vector<2x32xf32>
    %290 = math.exp %289 : vector<2x32xf32>
    %cst_143 = arith.constant 1.000000e+00 : f32
    %291 = vector.broadcast %cst_143 : f32 to vector<2x32xf32>
    %292 = arith.addf %291, %290 : vector<2x32xf32>
    %293 = arith.divf %291, %292 : vector<2x32xf32>
    %cst_144 = arith.constant dense<0.000000e+00> : vector<2x32xf32>
    %294 = tpu.matmul %223, %40, %cst_144 {dimension_numbers = #tpu.dot_dimension_numbers<[1], [0], [0], [1], [0, 0, 1, 1], [], []>} : vector<2x32xf32>, vector<32x32xf32>, vector<2x32xf32> -> vector<2x32xf32>
    %295 = arith.addf %276, %294 : vector<2x32xf32>
    %296 = math.tanh %295 : vector<2x32xf32>
    %cst_145 = arith.constant dense<0.000000e+00> : vector<2x32xf32>
    %297 = tpu.matmul %223, %42, %cst_145 {dimension_numbers = #tpu.dot_dimension_numbers<[1], [0], [0], [1], [0, 0, 1, 1], [], []>} : vector<2x32xf32>, vector<32x32xf32>, vector<2x32xf32> -> vector<2x32xf32>
    %298 = arith.addf %279, %297 : vector<2x32xf32>
    %299 = arith.negf %298 : vector<2x32xf32>
    %300 = math.exp %299 : vector<2x32xf32>
    %cst_146 = arith.constant 1.000000e+00 : f32
    %301 = vector.broadcast %cst_146 : f32 to vector<2x32xf32>
    %302 = arith.addf %301, %300 : vector<2x32xf32>
    %303 = arith.divf %301, %302 : vector<2x32xf32>
    %304 = arith.mulf %293, %221 : vector<2x32xf32>
    %305 = arith.mulf %286, %296 : vector<2x32xf32>
    %306 = arith.addf %304, %305 : vector<2x32xf32>
    %307 = math.tanh %306 : vector<2x32xf32>
    %308 = arith.mulf %303, %307 : vector<2x32xf32>
    %cst_147 = arith.constant 0.000000e+00 : f32
    %309 = vector.broadcast %cst_147 : f32 to vector<2x32xf32>
    %310 = arith.maximumf %308, %309 : vector<2x32xf32>
    %cst_148 = arith.constant dense<0.000000e+00> : vector<2x16xf32>
    %311 = tpu.matmul %310, %1, %cst_148 {dimension_numbers = #tpu.dot_dimension_numbers<[1], [0], [0], [1], [0, 0, 1, 1], [], []>} : vector<2x32xf32>, vector<32x16xf32>, vector<2x16xf32> -> vector<2x16xf32>
    %312 = vector.broadcast %2 : vector<1x16xf32> to vector<2x16xf32>
    %313 = arith.addf %311, %312 : vector<2x16xf32>
    %cst_149 = arith.constant 0.000000e+00 : f32
    %314 = vector.broadcast %cst_149 : f32 to vector<2x16xf32>
    %315 = arith.maximumf %313, %314 : vector<2x16xf32>
    %c2_150 = arith.constant 2 : index
    %c0_151 = arith.constant 0 : index
    %c0_152 = arith.constant 0 : index
    %316 = vector.load %arg9[%c2_150, %c0_151, %c0_152] : memref<8x16x8xf32, #tpu.memory_space<vmem>>, vector<1x16x8xf32>
    %317 = vector.shape_cast %316 : vector<1x16x8xf32> to vector<16x8xf32>
    %cst_153 = arith.constant dense<0.000000e+00> : vector<2x8xf32>
    %318 = tpu.matmul %315, %317, %cst_153 {dimension_numbers = #tpu.dot_dimension_numbers<[1], [0], [0], [1], [0, 0, 1, 1], [], []>} : vector<2x16xf32>, vector<16x8xf32>, vector<2x8xf32> -> vector<2x8xf32>
    %319 = arith.addf %234, %318 : vector<2x8xf32>
    %320 = vector.extract_strided_slice %53 {offsets = [6, 0], sizes = [2, 32], strides = [1, 1]} : vector<16x32xf32> to vector<2x32xf32>
    %321 = vector.extract_strided_slice %56 {offsets = [6, 0], sizes = [2, 32], strides = [1, 1]} : vector<16x32xf32> to vector<2x32xf32>
    %322 = vector.extract_strided_slice %59 {offsets = [6, 0], sizes = [2, 32], strides = [1, 1]} : vector<16x32xf32> to vector<2x32xf32>
    %323 = vector.extract_strided_slice %62 {offsets = [6, 0], sizes = [2, 32], strides = [1, 1]} : vector<16x32xf32> to vector<2x32xf32>
    %cst_154 = arith.constant dense<0.000000e+00> : vector<2x32xf32>
    %324 = tpu.matmul %267, %12, %cst_154 {dimension_numbers = #tpu.dot_dimension_numbers<[1], [0], [0], [1], [0, 0, 1, 1], [], []>} : vector<2x32xf32>, vector<32x32xf32>, vector<2x32xf32> -> vector<2x32xf32>
    %325 = arith.addf %320, %324 : vector<2x32xf32>
    %326 = arith.negf %325 : vector<2x32xf32>
    %327 = math.exp %326 : vector<2x32xf32>
    %cst_155 = arith.constant 1.000000e+00 : f32
    %328 = vector.broadcast %cst_155 : f32 to vector<2x32xf32>
    %329 = arith.addf %328, %327 : vector<2x32xf32>
    %330 = arith.divf %328, %329 : vector<2x32xf32>
    %cst_156 = arith.constant dense<0.000000e+00> : vector<2x32xf32>
    %331 = tpu.matmul %267, %14, %cst_156 {dimension_numbers = #tpu.dot_dimension_numbers<[1], [0], [0], [1], [0, 0, 1, 1], [], []>} : vector<2x32xf32>, vector<32x32xf32>, vector<2x32xf32> -> vector<2x32xf32>
    %332 = arith.addf %321, %331 : vector<2x32xf32>
    %333 = arith.negf %332 : vector<2x32xf32>
    %334 = math.exp %333 : vector<2x32xf32>
    %cst_157 = arith.constant 1.000000e+00 : f32
    %335 = vector.broadcast %cst_157 : f32 to vector<2x32xf32>
    %336 = arith.addf %335, %334 : vector<2x32xf32>
    %337 = arith.divf %335, %336 : vector<2x32xf32>
    %cst_158 = arith.constant dense<0.000000e+00> : vector<2x32xf32>
    %338 = tpu.matmul %267, %16, %cst_158 {dimension_numbers = #tpu.dot_dimension_numbers<[1], [0], [0], [1], [0, 0, 1, 1], [], []>} : vector<2x32xf32>, vector<32x32xf32>, vector<2x32xf32> -> vector<2x32xf32>
    %339 = arith.addf %322, %338 : vector<2x32xf32>
    %340 = math.tanh %339 : vector<2x32xf32>
    %cst_159 = arith.constant dense<0.000000e+00> : vector<2x32xf32>
    %341 = tpu.matmul %267, %18, %cst_159 {dimension_numbers = #tpu.dot_dimension_numbers<[1], [0], [0], [1], [0, 0, 1, 1], [], []>} : vector<2x32xf32>, vector<32x32xf32>, vector<2x32xf32> -> vector<2x32xf32>
    %342 = arith.addf %323, %341 : vector<2x32xf32>
    %343 = arith.negf %342 : vector<2x32xf32>
    %344 = math.exp %343 : vector<2x32xf32>
    %cst_160 = arith.constant 1.000000e+00 : f32
    %345 = vector.broadcast %cst_160 : f32 to vector<2x32xf32>
    %346 = arith.addf %345, %344 : vector<2x32xf32>
    %347 = arith.divf %345, %346 : vector<2x32xf32>
    %348 = arith.mulf %337, %265 : vector<2x32xf32>
    %349 = arith.mulf %330, %340 : vector<2x32xf32>
    %350 = arith.addf %348, %349 : vector<2x32xf32>
    %351 = math.tanh %350 : vector<2x32xf32>
    %352 = arith.mulf %347, %351 : vector<2x32xf32>
    %cst_161 = arith.constant dense<0.000000e+00> : vector<2x32xf32>
    %353 = tpu.matmul %352, %28, %cst_161 {dimension_numbers = #tpu.dot_dimension_numbers<[1], [0], [0], [1], [0, 0, 1, 1], [], []>} : vector<2x32xf32>, vector<32x32xf32>, vector<2x32xf32> -> vector<2x32xf32>
    %354 = vector.broadcast %44 : vector<1x32xf32> to vector<2x32xf32>
    %355 = arith.addf %353, %354 : vector<2x32xf32>
    %cst_162 = arith.constant dense<0.000000e+00> : vector<2x32xf32>
    %356 = tpu.matmul %352, %30, %cst_162 {dimension_numbers = #tpu.dot_dimension_numbers<[1], [0], [0], [1], [0, 0, 1, 1], [], []>} : vector<2x32xf32>, vector<32x32xf32>, vector<2x32xf32> -> vector<2x32xf32>
    %357 = vector.broadcast %46 : vector<1x32xf32> to vector<2x32xf32>
    %358 = arith.addf %356, %357 : vector<2x32xf32>
    %cst_163 = arith.constant dense<0.000000e+00> : vector<2x32xf32>
    %359 = tpu.matmul %352, %32, %cst_163 {dimension_numbers = #tpu.dot_dimension_numbers<[1], [0], [0], [1], [0, 0, 1, 1], [], []>} : vector<2x32xf32>, vector<32x32xf32>, vector<2x32xf32> -> vector<2x32xf32>
    %360 = vector.broadcast %48 : vector<1x32xf32> to vector<2x32xf32>
    %361 = arith.addf %359, %360 : vector<2x32xf32>
    %cst_164 = arith.constant dense<0.000000e+00> : vector<2x32xf32>
    %362 = tpu.matmul %352, %34, %cst_164 {dimension_numbers = #tpu.dot_dimension_numbers<[1], [0], [0], [1], [0, 0, 1, 1], [], []>} : vector<2x32xf32>, vector<32x32xf32>, vector<2x32xf32> -> vector<2x32xf32>
    %363 = vector.broadcast %50 : vector<1x32xf32> to vector<2x32xf32>
    %364 = arith.addf %362, %363 : vector<2x32xf32>
    %cst_165 = arith.constant dense<0.000000e+00> : vector<2x32xf32>
    %365 = tpu.matmul %308, %36, %cst_165 {dimension_numbers = #tpu.dot_dimension_numbers<[1], [0], [0], [1], [0, 0, 1, 1], [], []>} : vector<2x32xf32>, vector<32x32xf32>, vector<2x32xf32> -> vector<2x32xf32>
    %366 = arith.addf %355, %365 : vector<2x32xf32>
    %367 = arith.negf %366 : vector<2x32xf32>
    %368 = math.exp %367 : vector<2x32xf32>
    %cst_166 = arith.constant 1.000000e+00 : f32
    %369 = vector.broadcast %cst_166 : f32 to vector<2x32xf32>
    %370 = arith.addf %369, %368 : vector<2x32xf32>
    %371 = arith.divf %369, %370 : vector<2x32xf32>
    %cst_167 = arith.constant dense<0.000000e+00> : vector<2x32xf32>
    %372 = tpu.matmul %308, %38, %cst_167 {dimension_numbers = #tpu.dot_dimension_numbers<[1], [0], [0], [1], [0, 0, 1, 1], [], []>} : vector<2x32xf32>, vector<32x32xf32>, vector<2x32xf32> -> vector<2x32xf32>
    %373 = arith.addf %358, %372 : vector<2x32xf32>
    %374 = arith.negf %373 : vector<2x32xf32>
    %375 = math.exp %374 : vector<2x32xf32>
    %cst_168 = arith.constant 1.000000e+00 : f32
    %376 = vector.broadcast %cst_168 : f32 to vector<2x32xf32>
    %377 = arith.addf %376, %375 : vector<2x32xf32>
    %378 = arith.divf %376, %377 : vector<2x32xf32>
    %cst_169 = arith.constant dense<0.000000e+00> : vector<2x32xf32>
    %379 = tpu.matmul %308, %40, %cst_169 {dimension_numbers = #tpu.dot_dimension_numbers<[1], [0], [0], [1], [0, 0, 1, 1], [], []>} : vector<2x32xf32>, vector<32x32xf32>, vector<2x32xf32> -> vector<2x32xf32>
    %380 = arith.addf %361, %379 : vector<2x32xf32>
    %381 = math.tanh %380 : vector<2x32xf32>
    %cst_170 = arith.constant dense<0.000000e+00> : vector<2x32xf32>
    %382 = tpu.matmul %308, %42, %cst_170 {dimension_numbers = #tpu.dot_dimension_numbers<[1], [0], [0], [1], [0, 0, 1, 1], [], []>} : vector<2x32xf32>, vector<32x32xf32>, vector<2x32xf32> -> vector<2x32xf32>
    %383 = arith.addf %364, %382 : vector<2x32xf32>
    %384 = arith.negf %383 : vector<2x32xf32>
    %385 = math.exp %384 : vector<2x32xf32>
    %cst_171 = arith.constant 1.000000e+00 : f32
    %386 = vector.broadcast %cst_171 : f32 to vector<2x32xf32>
    %387 = arith.addf %386, %385 : vector<2x32xf32>
    %388 = arith.divf %386, %387 : vector<2x32xf32>
    %389 = arith.mulf %378, %306 : vector<2x32xf32>
    %390 = arith.mulf %371, %381 : vector<2x32xf32>
    %391 = arith.addf %389, %390 : vector<2x32xf32>
    %392 = math.tanh %391 : vector<2x32xf32>
    %393 = arith.mulf %388, %392 : vector<2x32xf32>
    %cst_172 = arith.constant 0.000000e+00 : f32
    %394 = vector.broadcast %cst_172 : f32 to vector<2x32xf32>
    %395 = arith.maximumf %393, %394 : vector<2x32xf32>
    %cst_173 = arith.constant dense<0.000000e+00> : vector<2x16xf32>
    %396 = tpu.matmul %395, %1, %cst_173 {dimension_numbers = #tpu.dot_dimension_numbers<[1], [0], [0], [1], [0, 0, 1, 1], [], []>} : vector<2x32xf32>, vector<32x16xf32>, vector<2x16xf32> -> vector<2x16xf32>
    %397 = vector.broadcast %2 : vector<1x16xf32> to vector<2x16xf32>
    %398 = arith.addf %396, %397 : vector<2x16xf32>
    %cst_174 = arith.constant 0.000000e+00 : f32
    %399 = vector.broadcast %cst_174 : f32 to vector<2x16xf32>
    %400 = arith.maximumf %398, %399 : vector<2x16xf32>
    %c3_175 = arith.constant 3 : index
    %c0_176 = arith.constant 0 : index
    %c0_177 = arith.constant 0 : index
    %401 = vector.load %arg9[%c3_175, %c0_176, %c0_177] : memref<8x16x8xf32, #tpu.memory_space<vmem>>, vector<1x16x8xf32>
    %402 = vector.shape_cast %401 : vector<1x16x8xf32> to vector<16x8xf32>
    %cst_178 = arith.constant dense<0.000000e+00> : vector<2x8xf32>
    %403 = tpu.matmul %400, %402, %cst_178 {dimension_numbers = #tpu.dot_dimension_numbers<[1], [0], [0], [1], [0, 0, 1, 1], [], []>} : vector<2x16xf32>, vector<16x8xf32>, vector<2x8xf32> -> vector<2x8xf32>
    %404 = arith.addf %319, %403 : vector<2x8xf32>
    %405 = vector.extract_strided_slice %53 {offsets = [8, 0], sizes = [2, 32], strides = [1, 1]} : vector<16x32xf32> to vector<2x32xf32>
    %406 = vector.extract_strided_slice %56 {offsets = [8, 0], sizes = [2, 32], strides = [1, 1]} : vector<16x32xf32> to vector<2x32xf32>
    %407 = vector.extract_strided_slice %59 {offsets = [8, 0], sizes = [2, 32], strides = [1, 1]} : vector<16x32xf32> to vector<2x32xf32>
    %408 = vector.extract_strided_slice %62 {offsets = [8, 0], sizes = [2, 32], strides = [1, 1]} : vector<16x32xf32> to vector<2x32xf32>
    %cst_179 = arith.constant dense<0.000000e+00> : vector<2x32xf32>
    %409 = tpu.matmul %352, %12, %cst_179 {dimension_numbers = #tpu.dot_dimension_numbers<[1], [0], [0], [1], [0, 0, 1, 1], [], []>} : vector<2x32xf32>, vector<32x32xf32>, vector<2x32xf32> -> vector<2x32xf32>
    %410 = arith.addf %405, %409 : vector<2x32xf32>
    %411 = arith.negf %410 : vector<2x32xf32>
    %412 = math.exp %411 : vector<2x32xf32>
    %cst_180 = arith.constant 1.000000e+00 : f32
    %413 = vector.broadcast %cst_180 : f32 to vector<2x32xf32>
    %414 = arith.addf %413, %412 : vector<2x32xf32>
    %415 = arith.divf %413, %414 : vector<2x32xf32>
    %cst_181 = arith.constant dense<0.000000e+00> : vector<2x32xf32>
    %416 = tpu.matmul %352, %14, %cst_181 {dimension_numbers = #tpu.dot_dimension_numbers<[1], [0], [0], [1], [0, 0, 1, 1], [], []>} : vector<2x32xf32>, vector<32x32xf32>, vector<2x32xf32> -> vector<2x32xf32>
    %417 = arith.addf %406, %416 : vector<2x32xf32>
    %418 = arith.negf %417 : vector<2x32xf32>
    %419 = math.exp %418 : vector<2x32xf32>
    %cst_182 = arith.constant 1.000000e+00 : f32
    %420 = vector.broadcast %cst_182 : f32 to vector<2x32xf32>
    %421 = arith.addf %420, %419 : vector<2x32xf32>
    %422 = arith.divf %420, %421 : vector<2x32xf32>
    %cst_183 = arith.constant dense<0.000000e+00> : vector<2x32xf32>
    %423 = tpu.matmul %352, %16, %cst_183 {dimension_numbers = #tpu.dot_dimension_numbers<[1], [0], [0], [1], [0, 0, 1, 1], [], []>} : vector<2x32xf32>, vector<32x32xf32>, vector<2x32xf32> -> vector<2x32xf32>
    %424 = arith.addf %407, %423 : vector<2x32xf32>
    %425 = math.tanh %424 : vector<2x32xf32>
    %cst_184 = arith.constant dense<0.000000e+00> : vector<2x32xf32>
    %426 = tpu.matmul %352, %18, %cst_184 {dimension_numbers = #tpu.dot_dimension_numbers<[1], [0], [0], [1], [0, 0, 1, 1], [], []>} : vector<2x32xf32>, vector<32x32xf32>, vector<2x32xf32> -> vector<2x32xf32>
    %427 = arith.addf %408, %426 : vector<2x32xf32>
    %428 = arith.negf %427 : vector<2x32xf32>
    %429 = math.exp %428 : vector<2x32xf32>
    %cst_185 = arith.constant 1.000000e+00 : f32
    %430 = vector.broadcast %cst_185 : f32 to vector<2x32xf32>
    %431 = arith.addf %430, %429 : vector<2x32xf32>
    %432 = arith.divf %430, %431 : vector<2x32xf32>
    %433 = arith.mulf %422, %350 : vector<2x32xf32>
    %434 = arith.mulf %415, %425 : vector<2x32xf32>
    %435 = arith.addf %433, %434 : vector<2x32xf32>
    %436 = math.tanh %435 : vector<2x32xf32>
    %437 = arith.mulf %432, %436 : vector<2x32xf32>
    %cst_186 = arith.constant dense<0.000000e+00> : vector<2x32xf32>
    %438 = tpu.matmul %437, %28, %cst_186 {dimension_numbers = #tpu.dot_dimension_numbers<[1], [0], [0], [1], [0, 0, 1, 1], [], []>} : vector<2x32xf32>, vector<32x32xf32>, vector<2x32xf32> -> vector<2x32xf32>
    %439 = vector.broadcast %44 : vector<1x32xf32> to vector<2x32xf32>
    %440 = arith.addf %438, %439 : vector<2x32xf32>
    %cst_187 = arith.constant dense<0.000000e+00> : vector<2x32xf32>
    %441 = tpu.matmul %437, %30, %cst_187 {dimension_numbers = #tpu.dot_dimension_numbers<[1], [0], [0], [1], [0, 0, 1, 1], [], []>} : vector<2x32xf32>, vector<32x32xf32>, vector<2x32xf32> -> vector<2x32xf32>
    %442 = vector.broadcast %46 : vector<1x32xf32> to vector<2x32xf32>
    %443 = arith.addf %441, %442 : vector<2x32xf32>
    %cst_188 = arith.constant dense<0.000000e+00> : vector<2x32xf32>
    %444 = tpu.matmul %437, %32, %cst_188 {dimension_numbers = #tpu.dot_dimension_numbers<[1], [0], [0], [1], [0, 0, 1, 1], [], []>} : vector<2x32xf32>, vector<32x32xf32>, vector<2x32xf32> -> vector<2x32xf32>
    %445 = vector.broadcast %48 : vector<1x32xf32> to vector<2x32xf32>
    %446 = arith.addf %444, %445 : vector<2x32xf32>
    %cst_189 = arith.constant dense<0.000000e+00> : vector<2x32xf32>
    %447 = tpu.matmul %437, %34, %cst_189 {dimension_numbers = #tpu.dot_dimension_numbers<[1], [0], [0], [1], [0, 0, 1, 1], [], []>} : vector<2x32xf32>, vector<32x32xf32>, vector<2x32xf32> -> vector<2x32xf32>
    %448 = vector.broadcast %50 : vector<1x32xf32> to vector<2x32xf32>
    %449 = arith.addf %447, %448 : vector<2x32xf32>
    %cst_190 = arith.constant dense<0.000000e+00> : vector<2x32xf32>
    %450 = tpu.matmul %393, %36, %cst_190 {dimension_numbers = #tpu.dot_dimension_numbers<[1], [0], [0], [1], [0, 0, 1, 1], [], []>} : vector<2x32xf32>, vector<32x32xf32>, vector<2x32xf32> -> vector<2x32xf32>
    %451 = arith.addf %440, %450 : vector<2x32xf32>
    %452 = arith.negf %451 : vector<2x32xf32>
    %453 = math.exp %452 : vector<2x32xf32>
    %cst_191 = arith.constant 1.000000e+00 : f32
    %454 = vector.broadcast %cst_191 : f32 to vector<2x32xf32>
    %455 = arith.addf %454, %453 : vector<2x32xf32>
    %456 = arith.divf %454, %455 : vector<2x32xf32>
    %cst_192 = arith.constant dense<0.000000e+00> : vector<2x32xf32>
    %457 = tpu.matmul %393, %38, %cst_192 {dimension_numbers = #tpu.dot_dimension_numbers<[1], [0], [0], [1], [0, 0, 1, 1], [], []>} : vector<2x32xf32>, vector<32x32xf32>, vector<2x32xf32> -> vector<2x32xf32>
    %458 = arith.addf %443, %457 : vector<2x32xf32>
    %459 = arith.negf %458 : vector<2x32xf32>
    %460 = math.exp %459 : vector<2x32xf32>
    %cst_193 = arith.constant 1.000000e+00 : f32
    %461 = vector.broadcast %cst_193 : f32 to vector<2x32xf32>
    %462 = arith.addf %461, %460 : vector<2x32xf32>
    %463 = arith.divf %461, %462 : vector<2x32xf32>
    %cst_194 = arith.constant dense<0.000000e+00> : vector<2x32xf32>
    %464 = tpu.matmul %393, %40, %cst_194 {dimension_numbers = #tpu.dot_dimension_numbers<[1], [0], [0], [1], [0, 0, 1, 1], [], []>} : vector<2x32xf32>, vector<32x32xf32>, vector<2x32xf32> -> vector<2x32xf32>
    %465 = arith.addf %446, %464 : vector<2x32xf32>
    %466 = math.tanh %465 : vector<2x32xf32>
    %cst_195 = arith.constant dense<0.000000e+00> : vector<2x32xf32>
    %467 = tpu.matmul %393, %42, %cst_195 {dimension_numbers = #tpu.dot_dimension_numbers<[1], [0], [0], [1], [0, 0, 1, 1], [], []>} : vector<2x32xf32>, vector<32x32xf32>, vector<2x32xf32> -> vector<2x32xf32>
    %468 = arith.addf %449, %467 : vector<2x32xf32>
    %469 = arith.negf %468 : vector<2x32xf32>
    %470 = math.exp %469 : vector<2x32xf32>
    %cst_196 = arith.constant 1.000000e+00 : f32
    %471 = vector.broadcast %cst_196 : f32 to vector<2x32xf32>
    %472 = arith.addf %471, %470 : vector<2x32xf32>
    %473 = arith.divf %471, %472 : vector<2x32xf32>
    %474 = arith.mulf %463, %391 : vector<2x32xf32>
    %475 = arith.mulf %456, %466 : vector<2x32xf32>
    %476 = arith.addf %474, %475 : vector<2x32xf32>
    %477 = math.tanh %476 : vector<2x32xf32>
    %478 = arith.mulf %473, %477 : vector<2x32xf32>
    %cst_197 = arith.constant 0.000000e+00 : f32
    %479 = vector.broadcast %cst_197 : f32 to vector<2x32xf32>
    %480 = arith.maximumf %478, %479 : vector<2x32xf32>
    %cst_198 = arith.constant dense<0.000000e+00> : vector<2x16xf32>
    %481 = tpu.matmul %480, %1, %cst_198 {dimension_numbers = #tpu.dot_dimension_numbers<[1], [0], [0], [1], [0, 0, 1, 1], [], []>} : vector<2x32xf32>, vector<32x16xf32>, vector<2x16xf32> -> vector<2x16xf32>
    %482 = vector.broadcast %2 : vector<1x16xf32> to vector<2x16xf32>
    %483 = arith.addf %481, %482 : vector<2x16xf32>
    %cst_199 = arith.constant 0.000000e+00 : f32
    %484 = vector.broadcast %cst_199 : f32 to vector<2x16xf32>
    %485 = arith.maximumf %483, %484 : vector<2x16xf32>
    %c4 = arith.constant 4 : index
    %c0_200 = arith.constant 0 : index
    %c0_201 = arith.constant 0 : index
    %486 = vector.load %arg9[%c4, %c0_200, %c0_201] : memref<8x16x8xf32, #tpu.memory_space<vmem>>, vector<1x16x8xf32>
    %487 = vector.shape_cast %486 : vector<1x16x8xf32> to vector<16x8xf32>
    %cst_202 = arith.constant dense<0.000000e+00> : vector<2x8xf32>
    %488 = tpu.matmul %485, %487, %cst_202 {dimension_numbers = #tpu.dot_dimension_numbers<[1], [0], [0], [1], [0, 0, 1, 1], [], []>} : vector<2x16xf32>, vector<16x8xf32>, vector<2x8xf32> -> vector<2x8xf32>
    %489 = arith.addf %404, %488 : vector<2x8xf32>
    %490 = vector.extract_strided_slice %53 {offsets = [10, 0], sizes = [2, 32], strides = [1, 1]} : vector<16x32xf32> to vector<2x32xf32>
    %491 = vector.extract_strided_slice %56 {offsets = [10, 0], sizes = [2, 32], strides = [1, 1]} : vector<16x32xf32> to vector<2x32xf32>
    %492 = vector.extract_strided_slice %59 {offsets = [10, 0], sizes = [2, 32], strides = [1, 1]} : vector<16x32xf32> to vector<2x32xf32>
    %493 = vector.extract_strided_slice %62 {offsets = [10, 0], sizes = [2, 32], strides = [1, 1]} : vector<16x32xf32> to vector<2x32xf32>
    %cst_203 = arith.constant dense<0.000000e+00> : vector<2x32xf32>
    %494 = tpu.matmul %437, %12, %cst_203 {dimension_numbers = #tpu.dot_dimension_numbers<[1], [0], [0], [1], [0, 0, 1, 1], [], []>} : vector<2x32xf32>, vector<32x32xf32>, vector<2x32xf32> -> vector<2x32xf32>
    %495 = arith.addf %490, %494 : vector<2x32xf32>
    %496 = arith.negf %495 : vector<2x32xf32>
    %497 = math.exp %496 : vector<2x32xf32>
    %cst_204 = arith.constant 1.000000e+00 : f32
    %498 = vector.broadcast %cst_204 : f32 to vector<2x32xf32>
    %499 = arith.addf %498, %497 : vector<2x32xf32>
    %500 = arith.divf %498, %499 : vector<2x32xf32>
    %cst_205 = arith.constant dense<0.000000e+00> : vector<2x32xf32>
    %501 = tpu.matmul %437, %14, %cst_205 {dimension_numbers = #tpu.dot_dimension_numbers<[1], [0], [0], [1], [0, 0, 1, 1], [], []>} : vector<2x32xf32>, vector<32x32xf32>, vector<2x32xf32> -> vector<2x32xf32>
    %502 = arith.addf %491, %501 : vector<2x32xf32>
    %503 = arith.negf %502 : vector<2x32xf32>
    %504 = math.exp %503 : vector<2x32xf32>
    %cst_206 = arith.constant 1.000000e+00 : f32
    %505 = vector.broadcast %cst_206 : f32 to vector<2x32xf32>
    %506 = arith.addf %505, %504 : vector<2x32xf32>
    %507 = arith.divf %505, %506 : vector<2x32xf32>
    %cst_207 = arith.constant dense<0.000000e+00> : vector<2x32xf32>
    %508 = tpu.matmul %437, %16, %cst_207 {dimension_numbers = #tpu.dot_dimension_numbers<[1], [0], [0], [1], [0, 0, 1, 1], [], []>} : vector<2x32xf32>, vector<32x32xf32>, vector<2x32xf32> -> vector<2x32xf32>
    %509 = arith.addf %492, %508 : vector<2x32xf32>
    %510 = math.tanh %509 : vector<2x32xf32>
    %cst_208 = arith.constant dense<0.000000e+00> : vector<2x32xf32>
    %511 = tpu.matmul %437, %18, %cst_208 {dimension_numbers = #tpu.dot_dimension_numbers<[1], [0], [0], [1], [0, 0, 1, 1], [], []>} : vector<2x32xf32>, vector<32x32xf32>, vector<2x32xf32> -> vector<2x32xf32>
    %512 = arith.addf %493, %511 : vector<2x32xf32>
    %513 = arith.negf %512 : vector<2x32xf32>
    %514 = math.exp %513 : vector<2x32xf32>
    %cst_209 = arith.constant 1.000000e+00 : f32
    %515 = vector.broadcast %cst_209 : f32 to vector<2x32xf32>
    %516 = arith.addf %515, %514 : vector<2x32xf32>
    %517 = arith.divf %515, %516 : vector<2x32xf32>
    %518 = arith.mulf %507, %435 : vector<2x32xf32>
    %519 = arith.mulf %500, %510 : vector<2x32xf32>
    %520 = arith.addf %518, %519 : vector<2x32xf32>
    %521 = math.tanh %520 : vector<2x32xf32>
    %522 = arith.mulf %517, %521 : vector<2x32xf32>
    %cst_210 = arith.constant dense<0.000000e+00> : vector<2x32xf32>
    %523 = tpu.matmul %522, %28, %cst_210 {dimension_numbers = #tpu.dot_dimension_numbers<[1], [0], [0], [1], [0, 0, 1, 1], [], []>} : vector<2x32xf32>, vector<32x32xf32>, vector<2x32xf32> -> vector<2x32xf32>
    %524 = vector.broadcast %44 : vector<1x32xf32> to vector<2x32xf32>
    %525 = arith.addf %523, %524 : vector<2x32xf32>
    %cst_211 = arith.constant dense<0.000000e+00> : vector<2x32xf32>
    %526 = tpu.matmul %522, %30, %cst_211 {dimension_numbers = #tpu.dot_dimension_numbers<[1], [0], [0], [1], [0, 0, 1, 1], [], []>} : vector<2x32xf32>, vector<32x32xf32>, vector<2x32xf32> -> vector<2x32xf32>
    %527 = vector.broadcast %46 : vector<1x32xf32> to vector<2x32xf32>
    %528 = arith.addf %526, %527 : vector<2x32xf32>
    %cst_212 = arith.constant dense<0.000000e+00> : vector<2x32xf32>
    %529 = tpu.matmul %522, %32, %cst_212 {dimension_numbers = #tpu.dot_dimension_numbers<[1], [0], [0], [1], [0, 0, 1, 1], [], []>} : vector<2x32xf32>, vector<32x32xf32>, vector<2x32xf32> -> vector<2x32xf32>
    %530 = vector.broadcast %48 : vector<1x32xf32> to vector<2x32xf32>
    %531 = arith.addf %529, %530 : vector<2x32xf32>
    %cst_213 = arith.constant dense<0.000000e+00> : vector<2x32xf32>
    %532 = tpu.matmul %522, %34, %cst_213 {dimension_numbers = #tpu.dot_dimension_numbers<[1], [0], [0], [1], [0, 0, 1, 1], [], []>} : vector<2x32xf32>, vector<32x32xf32>, vector<2x32xf32> -> vector<2x32xf32>
    %533 = vector.broadcast %50 : vector<1x32xf32> to vector<2x32xf32>
    %534 = arith.addf %532, %533 : vector<2x32xf32>
    %cst_214 = arith.constant dense<0.000000e+00> : vector<2x32xf32>
    %535 = tpu.matmul %478, %36, %cst_214 {dimension_numbers = #tpu.dot_dimension_numbers<[1], [0], [0], [1], [0, 0, 1, 1], [], []>} : vector<2x32xf32>, vector<32x32xf32>, vector<2x32xf32> -> vector<2x32xf32>
    %536 = arith.addf %525, %535 : vector<2x32xf32>
    %537 = arith.negf %536 : vector<2x32xf32>
    %538 = math.exp %537 : vector<2x32xf32>
    %cst_215 = arith.constant 1.000000e+00 : f32
    %539 = vector.broadcast %cst_215 : f32 to vector<2x32xf32>
    %540 = arith.addf %539, %538 : vector<2x32xf32>
    %541 = arith.divf %539, %540 : vector<2x32xf32>
    %cst_216 = arith.constant dense<0.000000e+00> : vector<2x32xf32>
    %542 = tpu.matmul %478, %38, %cst_216 {dimension_numbers = #tpu.dot_dimension_numbers<[1], [0], [0], [1], [0, 0, 1, 1], [], []>} : vector<2x32xf32>, vector<32x32xf32>, vector<2x32xf32> -> vector<2x32xf32>
    %543 = arith.addf %528, %542 : vector<2x32xf32>
    %544 = arith.negf %543 : vector<2x32xf32>
    %545 = math.exp %544 : vector<2x32xf32>
    %cst_217 = arith.constant 1.000000e+00 : f32
    %546 = vector.broadcast %cst_217 : f32 to vector<2x32xf32>
    %547 = arith.addf %546, %545 : vector<2x32xf32>
    %548 = arith.divf %546, %547 : vector<2x32xf32>
    %cst_218 = arith.constant dense<0.000000e+00> : vector<2x32xf32>
    %549 = tpu.matmul %478, %40, %cst_218 {dimension_numbers = #tpu.dot_dimension_numbers<[1], [0], [0], [1], [0, 0, 1, 1], [], []>} : vector<2x32xf32>, vector<32x32xf32>, vector<2x32xf32> -> vector<2x32xf32>
    %550 = arith.addf %531, %549 : vector<2x32xf32>
    %551 = math.tanh %550 : vector<2x32xf32>
    %cst_219 = arith.constant dense<0.000000e+00> : vector<2x32xf32>
    %552 = tpu.matmul %478, %42, %cst_219 {dimension_numbers = #tpu.dot_dimension_numbers<[1], [0], [0], [1], [0, 0, 1, 1], [], []>} : vector<2x32xf32>, vector<32x32xf32>, vector<2x32xf32> -> vector<2x32xf32>
    %553 = arith.addf %534, %552 : vector<2x32xf32>
    %554 = arith.negf %553 : vector<2x32xf32>
    %555 = math.exp %554 : vector<2x32xf32>
    %cst_220 = arith.constant 1.000000e+00 : f32
    %556 = vector.broadcast %cst_220 : f32 to vector<2x32xf32>
    %557 = arith.addf %556, %555 : vector<2x32xf32>
    %558 = arith.divf %556, %557 : vector<2x32xf32>
    %559 = arith.mulf %548, %476 : vector<2x32xf32>
    %560 = arith.mulf %541, %551 : vector<2x32xf32>
    %561 = arith.addf %559, %560 : vector<2x32xf32>
    %562 = math.tanh %561 : vector<2x32xf32>
    %563 = arith.mulf %558, %562 : vector<2x32xf32>
    %cst_221 = arith.constant 0.000000e+00 : f32
    %564 = vector.broadcast %cst_221 : f32 to vector<2x32xf32>
    %565 = arith.maximumf %563, %564 : vector<2x32xf32>
    %cst_222 = arith.constant dense<0.000000e+00> : vector<2x16xf32>
    %566 = tpu.matmul %565, %1, %cst_222 {dimension_numbers = #tpu.dot_dimension_numbers<[1], [0], [0], [1], [0, 0, 1, 1], [], []>} : vector<2x32xf32>, vector<32x16xf32>, vector<2x16xf32> -> vector<2x16xf32>
    %567 = vector.broadcast %2 : vector<1x16xf32> to vector<2x16xf32>
    %568 = arith.addf %566, %567 : vector<2x16xf32>
    %cst_223 = arith.constant 0.000000e+00 : f32
    %569 = vector.broadcast %cst_223 : f32 to vector<2x16xf32>
    %570 = arith.maximumf %568, %569 : vector<2x16xf32>
    %c5 = arith.constant 5 : index
    %c0_224 = arith.constant 0 : index
    %c0_225 = arith.constant 0 : index
    %571 = vector.load %arg9[%c5, %c0_224, %c0_225] : memref<8x16x8xf32, #tpu.memory_space<vmem>>, vector<1x16x8xf32>
    %572 = vector.shape_cast %571 : vector<1x16x8xf32> to vector<16x8xf32>
    %cst_226 = arith.constant dense<0.000000e+00> : vector<2x8xf32>
    %573 = tpu.matmul %570, %572, %cst_226 {dimension_numbers = #tpu.dot_dimension_numbers<[1], [0], [0], [1], [0, 0, 1, 1], [], []>} : vector<2x16xf32>, vector<16x8xf32>, vector<2x8xf32> -> vector<2x8xf32>
    %574 = arith.addf %489, %573 : vector<2x8xf32>
    %575 = vector.extract_strided_slice %53 {offsets = [12, 0], sizes = [2, 32], strides = [1, 1]} : vector<16x32xf32> to vector<2x32xf32>
    %576 = vector.extract_strided_slice %56 {offsets = [12, 0], sizes = [2, 32], strides = [1, 1]} : vector<16x32xf32> to vector<2x32xf32>
    %577 = vector.extract_strided_slice %59 {offsets = [12, 0], sizes = [2, 32], strides = [1, 1]} : vector<16x32xf32> to vector<2x32xf32>
    %578 = vector.extract_strided_slice %62 {offsets = [12, 0], sizes = [2, 32], strides = [1, 1]} : vector<16x32xf32> to vector<2x32xf32>
    %cst_227 = arith.constant dense<0.000000e+00> : vector<2x32xf32>
    %579 = tpu.matmul %522, %12, %cst_227 {dimension_numbers = #tpu.dot_dimension_numbers<[1], [0], [0], [1], [0, 0, 1, 1], [], []>} : vector<2x32xf32>, vector<32x32xf32>, vector<2x32xf32> -> vector<2x32xf32>
    %580 = arith.addf %575, %579 : vector<2x32xf32>
    %581 = arith.negf %580 : vector<2x32xf32>
    %582 = math.exp %581 : vector<2x32xf32>
    %cst_228 = arith.constant 1.000000e+00 : f32
    %583 = vector.broadcast %cst_228 : f32 to vector<2x32xf32>
    %584 = arith.addf %583, %582 : vector<2x32xf32>
    %585 = arith.divf %583, %584 : vector<2x32xf32>
    %cst_229 = arith.constant dense<0.000000e+00> : vector<2x32xf32>
    %586 = tpu.matmul %522, %14, %cst_229 {dimension_numbers = #tpu.dot_dimension_numbers<[1], [0], [0], [1], [0, 0, 1, 1], [], []>} : vector<2x32xf32>, vector<32x32xf32>, vector<2x32xf32> -> vector<2x32xf32>
    %587 = arith.addf %576, %586 : vector<2x32xf32>
    %588 = arith.negf %587 : vector<2x32xf32>
    %589 = math.exp %588 : vector<2x32xf32>
    %cst_230 = arith.constant 1.000000e+00 : f32
    %590 = vector.broadcast %cst_230 : f32 to vector<2x32xf32>
    %591 = arith.addf %590, %589 : vector<2x32xf32>
    %592 = arith.divf %590, %591 : vector<2x32xf32>
    %cst_231 = arith.constant dense<0.000000e+00> : vector<2x32xf32>
    %593 = tpu.matmul %522, %16, %cst_231 {dimension_numbers = #tpu.dot_dimension_numbers<[1], [0], [0], [1], [0, 0, 1, 1], [], []>} : vector<2x32xf32>, vector<32x32xf32>, vector<2x32xf32> -> vector<2x32xf32>
    %594 = arith.addf %577, %593 : vector<2x32xf32>
    %595 = math.tanh %594 : vector<2x32xf32>
    %cst_232 = arith.constant dense<0.000000e+00> : vector<2x32xf32>
    %596 = tpu.matmul %522, %18, %cst_232 {dimension_numbers = #tpu.dot_dimension_numbers<[1], [0], [0], [1], [0, 0, 1, 1], [], []>} : vector<2x32xf32>, vector<32x32xf32>, vector<2x32xf32> -> vector<2x32xf32>
    %597 = arith.addf %578, %596 : vector<2x32xf32>
    %598 = arith.negf %597 : vector<2x32xf32>
    %599 = math.exp %598 : vector<2x32xf32>
    %cst_233 = arith.constant 1.000000e+00 : f32
    %600 = vector.broadcast %cst_233 : f32 to vector<2x32xf32>
    %601 = arith.addf %600, %599 : vector<2x32xf32>
    %602 = arith.divf %600, %601 : vector<2x32xf32>
    %603 = arith.mulf %592, %520 : vector<2x32xf32>
    %604 = arith.mulf %585, %595 : vector<2x32xf32>
    %605 = arith.addf %603, %604 : vector<2x32xf32>
    %606 = math.tanh %605 : vector<2x32xf32>
    %607 = arith.mulf %602, %606 : vector<2x32xf32>
    %cst_234 = arith.constant dense<0.000000e+00> : vector<2x32xf32>
    %608 = tpu.matmul %607, %28, %cst_234 {dimension_numbers = #tpu.dot_dimension_numbers<[1], [0], [0], [1], [0, 0, 1, 1], [], []>} : vector<2x32xf32>, vector<32x32xf32>, vector<2x32xf32> -> vector<2x32xf32>
    %609 = vector.broadcast %44 : vector<1x32xf32> to vector<2x32xf32>
    %610 = arith.addf %608, %609 : vector<2x32xf32>
    %cst_235 = arith.constant dense<0.000000e+00> : vector<2x32xf32>
    %611 = tpu.matmul %607, %30, %cst_235 {dimension_numbers = #tpu.dot_dimension_numbers<[1], [0], [0], [1], [0, 0, 1, 1], [], []>} : vector<2x32xf32>, vector<32x32xf32>, vector<2x32xf32> -> vector<2x32xf32>
    %612 = vector.broadcast %46 : vector<1x32xf32> to vector<2x32xf32>
    %613 = arith.addf %611, %612 : vector<2x32xf32>
    %cst_236 = arith.constant dense<0.000000e+00> : vector<2x32xf32>
    %614 = tpu.matmul %607, %32, %cst_236 {dimension_numbers = #tpu.dot_dimension_numbers<[1], [0], [0], [1], [0, 0, 1, 1], [], []>} : vector<2x32xf32>, vector<32x32xf32>, vector<2x32xf32> -> vector<2x32xf32>
    %615 = vector.broadcast %48 : vector<1x32xf32> to vector<2x32xf32>
    %616 = arith.addf %614, %615 : vector<2x32xf32>
    %cst_237 = arith.constant dense<0.000000e+00> : vector<2x32xf32>
    %617 = tpu.matmul %607, %34, %cst_237 {dimension_numbers = #tpu.dot_dimension_numbers<[1], [0], [0], [1], [0, 0, 1, 1], [], []>} : vector<2x32xf32>, vector<32x32xf32>, vector<2x32xf32> -> vector<2x32xf32>
    %618 = vector.broadcast %50 : vector<1x32xf32> to vector<2x32xf32>
    %619 = arith.addf %617, %618 : vector<2x32xf32>
    %cst_238 = arith.constant dense<0.000000e+00> : vector<2x32xf32>
    %620 = tpu.matmul %563, %36, %cst_238 {dimension_numbers = #tpu.dot_dimension_numbers<[1], [0], [0], [1], [0, 0, 1, 1], [], []>} : vector<2x32xf32>, vector<32x32xf32>, vector<2x32xf32> -> vector<2x32xf32>
    %621 = arith.addf %610, %620 : vector<2x32xf32>
    %622 = arith.negf %621 : vector<2x32xf32>
    %623 = math.exp %622 : vector<2x32xf32>
    %cst_239 = arith.constant 1.000000e+00 : f32
    %624 = vector.broadcast %cst_239 : f32 to vector<2x32xf32>
    %625 = arith.addf %624, %623 : vector<2x32xf32>
    %626 = arith.divf %624, %625 : vector<2x32xf32>
    %cst_240 = arith.constant dense<0.000000e+00> : vector<2x32xf32>
    %627 = tpu.matmul %563, %38, %cst_240 {dimension_numbers = #tpu.dot_dimension_numbers<[1], [0], [0], [1], [0, 0, 1, 1], [], []>} : vector<2x32xf32>, vector<32x32xf32>, vector<2x32xf32> -> vector<2x32xf32>
    %628 = arith.addf %613, %627 : vector<2x32xf32>
    %629 = arith.negf %628 : vector<2x32xf32>
    %630 = math.exp %629 : vector<2x32xf32>
    %cst_241 = arith.constant 1.000000e+00 : f32
    %631 = vector.broadcast %cst_241 : f32 to vector<2x32xf32>
    %632 = arith.addf %631, %630 : vector<2x32xf32>
    %633 = arith.divf %631, %632 : vector<2x32xf32>
    %cst_242 = arith.constant dense<0.000000e+00> : vector<2x32xf32>
    %634 = tpu.matmul %563, %40, %cst_242 {dimension_numbers = #tpu.dot_dimension_numbers<[1], [0], [0], [1], [0, 0, 1, 1], [], []>} : vector<2x32xf32>, vector<32x32xf32>, vector<2x32xf32> -> vector<2x32xf32>
    %635 = arith.addf %616, %634 : vector<2x32xf32>
    %636 = math.tanh %635 : vector<2x32xf32>
    %cst_243 = arith.constant dense<0.000000e+00> : vector<2x32xf32>
    %637 = tpu.matmul %563, %42, %cst_243 {dimension_numbers = #tpu.dot_dimension_numbers<[1], [0], [0], [1], [0, 0, 1, 1], [], []>} : vector<2x32xf32>, vector<32x32xf32>, vector<2x32xf32> -> vector<2x32xf32>
    %638 = arith.addf %619, %637 : vector<2x32xf32>
    %639 = arith.negf %638 : vector<2x32xf32>
    %640 = math.exp %639 : vector<2x32xf32>
    %cst_244 = arith.constant 1.000000e+00 : f32
    %641 = vector.broadcast %cst_244 : f32 to vector<2x32xf32>
    %642 = arith.addf %641, %640 : vector<2x32xf32>
    %643 = arith.divf %641, %642 : vector<2x32xf32>
    %644 = arith.mulf %633, %561 : vector<2x32xf32>
    %645 = arith.mulf %626, %636 : vector<2x32xf32>
    %646 = arith.addf %644, %645 : vector<2x32xf32>
    %647 = math.tanh %646 : vector<2x32xf32>
    %648 = arith.mulf %643, %647 : vector<2x32xf32>
    %cst_245 = arith.constant 0.000000e+00 : f32
    %649 = vector.broadcast %cst_245 : f32 to vector<2x32xf32>
    %650 = arith.maximumf %648, %649 : vector<2x32xf32>
    %cst_246 = arith.constant dense<0.000000e+00> : vector<2x16xf32>
    %651 = tpu.matmul %650, %1, %cst_246 {dimension_numbers = #tpu.dot_dimension_numbers<[1], [0], [0], [1], [0, 0, 1, 1], [], []>} : vector<2x32xf32>, vector<32x16xf32>, vector<2x16xf32> -> vector<2x16xf32>
    %652 = vector.broadcast %2 : vector<1x16xf32> to vector<2x16xf32>
    %653 = arith.addf %651, %652 : vector<2x16xf32>
    %cst_247 = arith.constant 0.000000e+00 : f32
    %654 = vector.broadcast %cst_247 : f32 to vector<2x16xf32>
    %655 = arith.maximumf %653, %654 : vector<2x16xf32>
    %c6 = arith.constant 6 : index
    %c0_248 = arith.constant 0 : index
    %c0_249 = arith.constant 0 : index
    %656 = vector.load %arg9[%c6, %c0_248, %c0_249] : memref<8x16x8xf32, #tpu.memory_space<vmem>>, vector<1x16x8xf32>
    %657 = vector.shape_cast %656 : vector<1x16x8xf32> to vector<16x8xf32>
    %cst_250 = arith.constant dense<0.000000e+00> : vector<2x8xf32>
    %658 = tpu.matmul %655, %657, %cst_250 {dimension_numbers = #tpu.dot_dimension_numbers<[1], [0], [0], [1], [0, 0, 1, 1], [], []>} : vector<2x16xf32>, vector<16x8xf32>, vector<2x8xf32> -> vector<2x8xf32>
    %659 = arith.addf %574, %658 : vector<2x8xf32>
    %660 = vector.extract_strided_slice %53 {offsets = [14, 0], sizes = [2, 32], strides = [1, 1]} : vector<16x32xf32> to vector<2x32xf32>
    %661 = vector.extract_strided_slice %56 {offsets = [14, 0], sizes = [2, 32], strides = [1, 1]} : vector<16x32xf32> to vector<2x32xf32>
    %662 = vector.extract_strided_slice %59 {offsets = [14, 0], sizes = [2, 32], strides = [1, 1]} : vector<16x32xf32> to vector<2x32xf32>
    %663 = vector.extract_strided_slice %62 {offsets = [14, 0], sizes = [2, 32], strides = [1, 1]} : vector<16x32xf32> to vector<2x32xf32>
    %cst_251 = arith.constant dense<0.000000e+00> : vector<2x32xf32>
    %664 = tpu.matmul %607, %12, %cst_251 {dimension_numbers = #tpu.dot_dimension_numbers<[1], [0], [0], [1], [0, 0, 1, 1], [], []>} : vector<2x32xf32>, vector<32x32xf32>, vector<2x32xf32> -> vector<2x32xf32>
    %665 = arith.addf %660, %664 : vector<2x32xf32>
    %666 = arith.negf %665 : vector<2x32xf32>
    %667 = math.exp %666 : vector<2x32xf32>
    %cst_252 = arith.constant 1.000000e+00 : f32
    %668 = vector.broadcast %cst_252 : f32 to vector<2x32xf32>
    %669 = arith.addf %668, %667 : vector<2x32xf32>
    %670 = arith.divf %668, %669 : vector<2x32xf32>
    %cst_253 = arith.constant dense<0.000000e+00> : vector<2x32xf32>
    %671 = tpu.matmul %607, %14, %cst_253 {dimension_numbers = #tpu.dot_dimension_numbers<[1], [0], [0], [1], [0, 0, 1, 1], [], []>} : vector<2x32xf32>, vector<32x32xf32>, vector<2x32xf32> -> vector<2x32xf32>
    %672 = arith.addf %661, %671 : vector<2x32xf32>
    %673 = arith.negf %672 : vector<2x32xf32>
    %674 = math.exp %673 : vector<2x32xf32>
    %cst_254 = arith.constant 1.000000e+00 : f32
    %675 = vector.broadcast %cst_254 : f32 to vector<2x32xf32>
    %676 = arith.addf %675, %674 : vector<2x32xf32>
    %677 = arith.divf %675, %676 : vector<2x32xf32>
    %cst_255 = arith.constant dense<0.000000e+00> : vector<2x32xf32>
    %678 = tpu.matmul %607, %16, %cst_255 {dimension_numbers = #tpu.dot_dimension_numbers<[1], [0], [0], [1], [0, 0, 1, 1], [], []>} : vector<2x32xf32>, vector<32x32xf32>, vector<2x32xf32> -> vector<2x32xf32>
    %679 = arith.addf %662, %678 : vector<2x32xf32>
    %680 = math.tanh %679 : vector<2x32xf32>
    %cst_256 = arith.constant dense<0.000000e+00> : vector<2x32xf32>
    %681 = tpu.matmul %607, %18, %cst_256 {dimension_numbers = #tpu.dot_dimension_numbers<[1], [0], [0], [1], [0, 0, 1, 1], [], []>} : vector<2x32xf32>, vector<32x32xf32>, vector<2x32xf32> -> vector<2x32xf32>
    %682 = arith.addf %663, %681 : vector<2x32xf32>
    %683 = arith.negf %682 : vector<2x32xf32>
    %684 = math.exp %683 : vector<2x32xf32>
    %cst_257 = arith.constant 1.000000e+00 : f32
    %685 = vector.broadcast %cst_257 : f32 to vector<2x32xf32>
    %686 = arith.addf %685, %684 : vector<2x32xf32>
    %687 = arith.divf %685, %686 : vector<2x32xf32>
    %688 = arith.mulf %677, %605 : vector<2x32xf32>
    %689 = arith.mulf %670, %680 : vector<2x32xf32>
    %690 = arith.addf %688, %689 : vector<2x32xf32>
    %691 = math.tanh %690 : vector<2x32xf32>
    %692 = arith.mulf %687, %691 : vector<2x32xf32>
    %cst_258 = arith.constant dense<0.000000e+00> : vector<2x32xf32>
    %693 = tpu.matmul %692, %28, %cst_258 {dimension_numbers = #tpu.dot_dimension_numbers<[1], [0], [0], [1], [0, 0, 1, 1], [], []>} : vector<2x32xf32>, vector<32x32xf32>, vector<2x32xf32> -> vector<2x32xf32>
    %694 = vector.broadcast %44 : vector<1x32xf32> to vector<2x32xf32>
    %695 = arith.addf %693, %694 : vector<2x32xf32>
    %cst_259 = arith.constant dense<0.000000e+00> : vector<2x32xf32>
    %696 = tpu.matmul %692, %30, %cst_259 {dimension_numbers = #tpu.dot_dimension_numbers<[1], [0], [0], [1], [0, 0, 1, 1], [], []>} : vector<2x32xf32>, vector<32x32xf32>, vector<2x32xf32> -> vector<2x32xf32>
    %697 = vector.broadcast %46 : vector<1x32xf32> to vector<2x32xf32>
    %698 = arith.addf %696, %697 : vector<2x32xf32>
    %cst_260 = arith.constant dense<0.000000e+00> : vector<2x32xf32>
    %699 = tpu.matmul %692, %32, %cst_260 {dimension_numbers = #tpu.dot_dimension_numbers<[1], [0], [0], [1], [0, 0, 1, 1], [], []>} : vector<2x32xf32>, vector<32x32xf32>, vector<2x32xf32> -> vector<2x32xf32>
    %700 = vector.broadcast %48 : vector<1x32xf32> to vector<2x32xf32>
    %701 = arith.addf %699, %700 : vector<2x32xf32>
    %cst_261 = arith.constant dense<0.000000e+00> : vector<2x32xf32>
    %702 = tpu.matmul %692, %34, %cst_261 {dimension_numbers = #tpu.dot_dimension_numbers<[1], [0], [0], [1], [0, 0, 1, 1], [], []>} : vector<2x32xf32>, vector<32x32xf32>, vector<2x32xf32> -> vector<2x32xf32>
    %703 = vector.broadcast %50 : vector<1x32xf32> to vector<2x32xf32>
    %704 = arith.addf %702, %703 : vector<2x32xf32>
    %cst_262 = arith.constant dense<0.000000e+00> : vector<2x32xf32>
    %705 = tpu.matmul %648, %36, %cst_262 {dimension_numbers = #tpu.dot_dimension_numbers<[1], [0], [0], [1], [0, 0, 1, 1], [], []>} : vector<2x32xf32>, vector<32x32xf32>, vector<2x32xf32> -> vector<2x32xf32>
    %706 = arith.addf %695, %705 : vector<2x32xf32>
    %707 = arith.negf %706 : vector<2x32xf32>
    %708 = math.exp %707 : vector<2x32xf32>
    %cst_263 = arith.constant 1.000000e+00 : f32
    %709 = vector.broadcast %cst_263 : f32 to vector<2x32xf32>
    %710 = arith.addf %709, %708 : vector<2x32xf32>
    %711 = arith.divf %709, %710 : vector<2x32xf32>
    %cst_264 = arith.constant dense<0.000000e+00> : vector<2x32xf32>
    %712 = tpu.matmul %648, %38, %cst_264 {dimension_numbers = #tpu.dot_dimension_numbers<[1], [0], [0], [1], [0, 0, 1, 1], [], []>} : vector<2x32xf32>, vector<32x32xf32>, vector<2x32xf32> -> vector<2x32xf32>
    %713 = arith.addf %698, %712 : vector<2x32xf32>
    %714 = arith.negf %713 : vector<2x32xf32>
    %715 = math.exp %714 : vector<2x32xf32>
    %cst_265 = arith.constant 1.000000e+00 : f32
    %716 = vector.broadcast %cst_265 : f32 to vector<2x32xf32>
    %717 = arith.addf %716, %715 : vector<2x32xf32>
    %718 = arith.divf %716, %717 : vector<2x32xf32>
    %cst_266 = arith.constant dense<0.000000e+00> : vector<2x32xf32>
    %719 = tpu.matmul %648, %40, %cst_266 {dimension_numbers = #tpu.dot_dimension_numbers<[1], [0], [0], [1], [0, 0, 1, 1], [], []>} : vector<2x32xf32>, vector<32x32xf32>, vector<2x32xf32> -> vector<2x32xf32>
    %720 = arith.addf %701, %719 : vector<2x32xf32>
    %721 = math.tanh %720 : vector<2x32xf32>
    %cst_267 = arith.constant dense<0.000000e+00> : vector<2x32xf32>
    %722 = tpu.matmul %648, %42, %cst_267 {dimension_numbers = #tpu.dot_dimension_numbers<[1], [0], [0], [1], [0, 0, 1, 1], [], []>} : vector<2x32xf32>, vector<32x32xf32>, vector<2x32xf32> -> vector<2x32xf32>
    %723 = arith.addf %704, %722 : vector<2x32xf32>
    %724 = arith.negf %723 : vector<2x32xf32>
    %725 = math.exp %724 : vector<2x32xf32>
    %cst_268 = arith.constant 1.000000e+00 : f32
    %726 = vector.broadcast %cst_268 : f32 to vector<2x32xf32>
    %727 = arith.addf %726, %725 : vector<2x32xf32>
    %728 = arith.divf %726, %727 : vector<2x32xf32>
    %729 = arith.mulf %718, %646 : vector<2x32xf32>
    %730 = arith.mulf %711, %721 : vector<2x32xf32>
    %731 = arith.addf %729, %730 : vector<2x32xf32>
    %732 = math.tanh %731 : vector<2x32xf32>
    %733 = arith.mulf %728, %732 : vector<2x32xf32>
    %cst_269 = arith.constant 0.000000e+00 : f32
    %734 = vector.broadcast %cst_269 : f32 to vector<2x32xf32>
    %735 = arith.maximumf %733, %734 : vector<2x32xf32>
    %cst_270 = arith.constant dense<0.000000e+00> : vector<2x16xf32>
    %736 = tpu.matmul %735, %1, %cst_270 {dimension_numbers = #tpu.dot_dimension_numbers<[1], [0], [0], [1], [0, 0, 1, 1], [], []>} : vector<2x32xf32>, vector<32x16xf32>, vector<2x16xf32> -> vector<2x16xf32>
    %737 = vector.broadcast %2 : vector<1x16xf32> to vector<2x16xf32>
    %738 = arith.addf %736, %737 : vector<2x16xf32>
    %cst_271 = arith.constant 0.000000e+00 : f32
    %739 = vector.broadcast %cst_271 : f32 to vector<2x16xf32>
    %740 = arith.maximumf %738, %739 : vector<2x16xf32>
    %c7 = arith.constant 7 : index
    %c0_272 = arith.constant 0 : index
    %c0_273 = arith.constant 0 : index
    %741 = vector.load %arg9[%c7, %c0_272, %c0_273] : memref<8x16x8xf32, #tpu.memory_space<vmem>>, vector<1x16x8xf32>
    %742 = vector.shape_cast %741 : vector<1x16x8xf32> to vector<16x8xf32>
    %cst_274 = arith.constant dense<0.000000e+00> : vector<2x8xf32>
    %743 = tpu.matmul %740, %742, %cst_274 {dimension_numbers = #tpu.dot_dimension_numbers<[1], [0], [0], [1], [0, 0, 1, 1], [], []>} : vector<2x16xf32>, vector<16x8xf32>, vector<2x8xf32> -> vector<2x8xf32>
    %744 = arith.addf %659, %743 : vector<2x8xf32>
    %c0_275 = arith.constant 0 : index
    %c0_276 = arith.constant 0 : index
    %745 = vector.load %arg10[%c0_275, %c0_276] : memref<1x8xf32, #tpu.memory_space<vmem>>, vector<1x8xf32>
    %746 = vector.broadcast %745 : vector<1x8xf32> to vector<2x8xf32>
    %747 = arith.addf %744, %746 : vector<2x8xf32>
    %c0_277 = arith.constant 0 : index
    %c0_278 = arith.constant 0 : index
    %748 = vector.load %arg11[%c0_277, %c0_278] : memref<2x8xf32, #tpu.memory_space<vmem>>, vector<2x8xf32>
    tpu.vector_store %arg11[%c0_277, %c0_278], %747 {strides = array<i32>} : memref<2x8xf32, #tpu.memory_space<vmem>>, vector<2x8xf32>,
    return
  }
}

</mosaic_0001>

<bundles_post_ra>
// kernel: lstm_model_forward.1
= control target key start
LH: loop header
LB: loop body
LE: loop exit
PB: predicated region body
PF: predicated region fallthrough
CT: control target
= control target key end

     0   :  { %16 = vsyncpa [#allocation3], 0  ;;  %s13622_s0 = inlined_call_operand.vmem [shape: f32[16,4], index: 0, kind: input, shape index: {}]   ;;  %s13623_s1 = inlined_call_operand.hbm [shape: f32[4,4,32], index: 1, kind: input, shape index: {}]   ;;  %s13624_s2 = inlined_call_operand.hbm [shape: f32[4,32,32], index: 2, kind: input, shape index: {}]   ;;  %s13625_s3 = inlined_call_operand.vmem [shape: f32[4,1,32], index: 3, kind: input, shape index: {}]   ;;  %s13626_s4 = inlined_call_operand.hbm [shape: f32[4,32,32], index: 4, kind: input, shape index: {}]   ;;  %s13627_s5 = inlined_call_operand.hbm [shape: f32[4,32,32], index: 5, kind: input, shape index: {}]   ;;  %s13628_s6 = inlined_call_operand.vmem [shape: f32[4,1,32], index: 6, kind: input, shape index: {}]   ;;  %s13629_s7 = inlined_call_operand.vmem [shape: f32[32,16], index: 7, kind: input, shape index: {}]   ;;  %s13630_s8 = inlined_call_operand.vmem [shape: f32[1,16], index: 8, kind: input, shape index: {}]   ;;  %s13631_s9 = inlined_call_operand.hbm [shape: f32[8,16,8], index: 9, kind: input, shape index: {}]   ;;  %s13632_s10 = inlined_call_operand.vmem [shape: f32[1,8], index: 10, kind: input, shape index: {}]   ;;  %s13633_s11 = inlined_call_operand.hbm [shape: f32[2,8], index: 11, kind: output, shape index: {}]  }
   0x1   :  { %17 = vsyncpa [#allocation6], 0 }
   0x2   :  { %18 = vsyncpa [#allocation9], 0 }
   0x3   :  { %19 = vsyncpa [#allocation4], 0  ;;  %s11589_s17 = smov [#allocation5]  }
   0x4   :  { %s39_s18 = sshll.u32 %s11589_s17, 4  ;;  %s40_s18 = int_to_ptr.vmem [resolvable:$true] %s39_s18 }
   0x5   :  { %s11469_s19 = scalar_lea.vmem %s40_s18, 2048  ;;  %p11474_p1 = scmp.lt.s32.totalorder %s40_s18, %s40_s18 }
   0x6   :  { %p11470_p0 = scmp.ne.s32.totalorder %s40_s18, %s11469_s19  ;;  %p11475_p2 = scmp.lt.s32.totalorder %s11469_s19, %s11469_s19 }
   0x8   :  { %p11476_p3 = por %p11475_p2, %p11474_p1 }
   0xa   :  { %p11477_p4 = pnand %p11476_p3, %p11470_p0 }
   0xc   :  { %11480 = shalt.err (!%p11477_p4)
}
   0xd   :  { %s11590_s20 = smov 128   ;;  %s11591_s21 = smov 8  }
   0xe   :  { %45 = dma.hbm_to_vmem [thread:$0]  %s13624_s2, 2048, %s40_s18, [#allocation6], %s11590_s20, %s11590_s20, %s11591_s21  }
   0xf   :  { %s11592_s24 = smov [#allocation8]   ;;  %s11593_s26 = smov [#allocation2]  }
  0x10   :  { %s65_s25 = sshll.u32 %s11592_s24, 4  ;;  %s27_s27 = sshll.u32 %s11593_s26, 4  ;;  %s66_s25 = int_to_ptr.vmem [resolvable:$true] %s65_s25  ;;  %s28_s27 = int_to_ptr.vmem [resolvable:$true] %s27_s27 }
  0x11   :  { %s11489_s28 = scalar_lea.vmem %s66_s25, 2048  ;;  %p11494_p6 = scmp.lt.s32.totalorder %s66_s25, %s66_s25 }
  0x12   :  { %p11490_p5 = scmp.ne.s32.totalorder %s66_s25, %s11489_s28  ;;  %p11495_p7 = scmp.lt.s32.totalorder %s11489_s28, %s11489_s28 }
  0x14   :  { %p11496_p8 = por %p11495_p7, %p11494_p6 }
  0x16   :  { %p11497_p9 = pnand %p11496_p8, %p11490_p5 }
  0x18   :  { %11500 = shalt.err (!%p11497_p9)
}
  0x19   :  { %71 = dma.hbm_to_vmem [thread:$0]  %s13627_s5, 2048, %s66_s25, [#allocation9], %s11590_s20, %s11590_s20, %s11591_s21  }
  0x1a   :  { %s11509_s2 = scalar_lea.vmem %s28_s27, 256  ;;  %p11514_p11 = scmp.lt.s32.totalorder %s28_s27, %s28_s27 }
  0x1b   :  { %p11510_p10 = scmp.ne.s32.totalorder %s28_s27, %s11509_s2  ;;  %p11515_p12 = scmp.lt.s32.totalorder %s11509_s2, %s11509_s2 }
  0x1d   :  { %p11516_p13 = por %p11515_p12, %p11514_p11 }
  0x1f   :  { %p11517_p0 = pnand %p11516_p13, %p11510_p10 }
  0x21   :  { %11520 = shalt.err (!%p11517_p0)
}
  0x22   :  { %s11594_s12 = smov 64   ;;  %s11595_s13 = smov 4  }
  0x23   :  { %33 = dma.hbm_to_vmem [thread:$0]  %s13623_s1, 256, %s28_s27, [#allocation3], %s11594_s12, %s11594_s12, %s11595_s13  }
  0x24   :  { %s11596_s16 = smov [#allocation7]   ;;  %s11597_s18 = smov [#allocation10]  }
  0x25   :  { %s53_s17 = sshll.u32 %s11596_s16, 4  ;;  %s83_s19 = sshll.u32 %s11597_s18, 4  ;;  %s54_s17 = int_to_ptr.vmem [resolvable:$true] %s53_s17  ;;  %s84_s19 = int_to_ptr.vmem [resolvable:$true] %s83_s19 }
  0x26   :  { %s11529_s5 = scalar_lea.vmem %s54_s17, 2048  ;;  %p11534_p2 = scmp.lt.s32.totalorder %s54_s17, %s54_s17 }
  0x27   :  { %p11530_p1 = scmp.ne.s32.totalorder %s54_s17, %s11529_s5  ;;  %p11535_p3 = scmp.lt.s32.totalorder %s11529_s5, %s11529_s5 }
  0x29   :  { %p11536_p4 = por %p11535_p3, %p11534_p2 }
  0x2b   :  { %p11537_p5 = pnand %p11536_p4, %p11530_p1 }
  0x2d   :  { %11540 = shalt.err (!%p11537_p5)
}
  0x2e   :  { %59 = dma.hbm_to_vmem [thread:$0]  %s13626_s4, 2048, %s54_s17, [#allocation6], %s11590_s20, %s11590_s20, %s11591_s21  }
  0x2f   :  { %s11549_s1 = scalar_lea.vmem %s84_s19, 2048  ;;  %p11554_p7 = scmp.lt.s32.totalorder %s84_s19, %s84_s19 }
  0x30   :  { %p11550_p6 = scmp.ne.s32.totalorder %s84_s19, %s11549_s1  ;;  %p11555_p8 = scmp.lt.s32.totalorder %s11549_s1, %s11549_s1 }
  0x32   :  { %p11556_p9 = por %p11555_p8, %p11554_p7 }
  0x34   :  { %p11557_p10 = pnand %p11556_p9, %p11550_p6 }
  0x36   :  { %11560 = shalt.err (!%p11557_p10)
}
  0x37   :  { %89 = dma.hbm_to_vmem [thread:$0]  %s13631_s9, 2048, %s84_s19, [#allocation9], %s11590_s20, %s11590_s20, %s11591_s21  }
  0x38   :  { %11581 = dma.done.wait [#allocation3], 256  }
  0x39   :  { %11582 = vsyncadd [#allocation3], 4294967040 }
  0x3a   :  { %11583 = dma.done.wait [#allocation6], 4096  }
  0x3b   :  { %11584 = vsyncadd [#allocation6], 4294963200 }
  0x3c   :  { %11585 = dma.done.wait [#allocation9], 4096  }
  0x3d   :  { %11586 = vsyncadd [#allocation9], 4294963200  ;;  %vm205_vm0 = vcmask 1043456   ;;  %vm198_vm1 = vcmask 31744   ;;  %v114_v0 = vld [vmem:[#allocation2] sm:$0xf] }
  0x3e   :  { %v116_v1 = vld [vmem:[#allocation2 + $0x4] sm:$0xf]  ;;  %9859 = vmatprep.subr.msk.mxu0 %vm205_vm0, %v114_v0  ;;  %v108_v3 = vld [vmem:[%s13622_s0 + $0x8] sm:$0xff]  ;;  %v13634_v8 = vmov 0.0   ;;  %v11724_v11 = vld [vmem:[#allocation5 + $0x8] sm:$0xff]  ;;  %vm11599_vm2 = vmmov 0  }
  0x3f   :  { %v107_v2 = vld [vmem:[%s13622_s0] sm:$0xff]  ;;  %9864 = vmatprep.subr.msk.mxu1 %vm205_vm0, %v116_v1  ;;  %9860 = vmatpush3.msk.msra.mxu0 %vm205_vm0, %v114_v0  ;;  %v118_v4 = vld [vmem:[#allocation2 + $0x8] sm:$0xf]  ;;  %v120_v5 = vld [vmem:[#allocation2 + $0xc] sm:$0xf]  ;;  %vm536_vm3 = vcmask 261120  }
  0x40   :  { %9861 = vmatprep.mubr.msk.f32.mxu0 %vm198_vm1, %v107_v2  ;;  %9865 = vmatpush3.msk.msra.mxu1 %vm205_vm0, %v116_v1  ;;  %v11708_v6 = vld [vmem:[#allocation5 + $0x18] sm:$0xff]  ;;  %v11716_v9 = vld [vmem:[#allocation5 + $0x10] sm:$0xff]  ;;  %v11726_v12 = vld [vmem:[#allocation5 + $0x28] sm:$0xff]  ;;  %vm2542_vm4 = vcmask 130048   ;;  %s11600_s13 = smov [#allocation11]   ;;  %vm9104_vm5 = vcmask 58368  }
  0x41   :  { %9866 = vmatprep.mubr.msk.f32.mxu1 %vm198_vm1, %v107_v2  ;;  %9862 = vmatmul.mubr.msk.f32.vlgmr.msra.gmra.mxu0 %vm198_vm1, %v108_v3  ;;  %v11710_v7 = vld [vmem:[#allocation5 + $0x38] sm:$0xff]  ;;  %v11718_v10 = vld [vmem:[#allocation5 + $0x30] sm:$0xff]  ;;  %v11732_v13 = vld [vmem:[#allocation5] sm:$0xff]  ;;  %s9112_s14 = sshll.u32 %s11600_s13, 4  ;;  %s9113_s14 = int_to_ptr.vmem [resolvable:$true] %s9112_s14 }
  0x42   :  { %9867 = vmatmul.mubr.msk.f32.vlgmr.msra.gmra.mxu1 %vm198_vm1, %v108_v3  ;;  %9869 = vmatprep.subr.msk.mxu0 %vm205_vm0, %v118_v4  ;;  %v11736_v14 = vld [vmem:[#allocation5 + $0x20] sm:$0xff]  ;;  %v11746_v15 = vld [vmem:[#allocation5 + $0x58] sm:$0xff]  ;;  %v11754_v17 = vld [vmem:[#allocation5 + $0x50] sm:$0xff]  ;;  %s11561_s15 = scalar_lea.vmem %s9113_s14, 32  ;;  %p11566_p12 = scmp.lt.s32.totalorder %s9113_s14, %s9113_s14 }
  0x43   :  { %9874 = vmatprep.subr.msk.mxu1 %vm205_vm0, %v120_v5  ;;  %9870 = vmatpush3.msk.msra.mxu0 %vm205_vm0, %v118_v4  ;;  %v11748_v16 = vld [vmem:[#allocation5 + $0x78] sm:$0xff]  ;;  %v11756_v18 = vld [vmem:[#allocation5 + $0x70] sm:$0xff]  ;;  %v11762_v19 = vld [vmem:[#allocation5 + $0x48] sm:$0xff]  ;;  %p11562_p11 = scmp.ne.s32.totalorder %s9113_s14, %s11561_s15  ;;  %p11567_p13 = scmp.lt.s32.totalorder %s11561_s15, %s11561_s15 }
  0x44   :  { %9875 = vmatpush3.msk.msra.mxu1 %vm205_vm0, %v120_v5  ;;  %9871 = vmatprep.mubr.msk.f32.mxu0 %vm198_vm1, %v107_v2  ;;  %v11764_v20 = vld [vmem:[#allocation5 + $0x68] sm:$0xff]  ;;  %v11770_v21 = vld [vmem:[#allocation5 + $0x40] sm:$0xff]  ;;  %v11792_v23 = vld [vmem:[#allocation7 + $0x18] sm:$0xff] }
  0x45   :  { %9876 = vmatprep.mubr.msk.f32.mxu1 %vm198_vm1, %v107_v2  ;;  %9879 = vmatprep.subr.mxu0 %v13634_v8  ;;  %v11774_v22 = vld [vmem:[#allocation5 + $0x60] sm:$0xff]  ;;  %v11794_v24 = vld [vmem:[#allocation7 + $0x38] sm:$0xff]  ;;  %v11800_v25 = vld [vmem:[#allocation7 + $0x10] sm:$0xff]  ;;  %p11568_p0 = por %p11567_p13, %p11566_p12 }
  0x46   :  { %9890 = vmatprep.subr.mxu1 %v13634_v8  ;;  %9872 = vmatmul.mubr.msk.f32.vlgmr.msra.gmra.mxu0 %vm198_vm1, %v108_v3  ;;  %v11802_v26 = vld [vmem:[#allocation7 + $0x30] sm:$0xff]  ;;  %v11808_v27 = vld [vmem:[#allocation7 + $0x8] sm:$0xff]  ;;  %v11816_v29 = vld [vmem:[#allocation7] sm:$0xff] }
  0x47   :  { %9877 = vmatmul.mubr.msk.f32.vlgmr.msra.gmra.mxu1 %vm198_vm1, %v108_v3  ;;  %9880 = vmatpush3.msra.mxu0 %v11708_v6  ;;  %v11810_v28 = vld [vmem:[#allocation7 + $0x28] sm:$0xff]  ;;  %v11818_v30 = vld [vmem:[#allocation7 + $0x20] sm:$0xff]  ;;  %v9129_v31 = vld [vmem:[%s13625_s3] ss:$0 sm:$0xff]  ;;  %p11569_p1 = pnand %p11568_p0, %p11562_p11 }
  0x48   :  { %9891 = vmatpush3.msra.mxu1 %v11710_v7  ;;  %9881 = vmatprep.subr.mxu0 %v13634_v8  ;;  %v9133_v32 = vld [vmem:[%s13625_s3 + $0x1] ss:$0 sm:$0xff]  ;;  %v9137_v39 = vld [vmem:[%s13625_s3 + $0x2] ss:$0 sm:$0xff]  ;;  %v9141_v40 = vld [vmem:[%s13625_s3 + $0x3] ss:$0 sm:$0xff] }
  0x49   :  { %9892 = vmatprep.subr.mxu1 %v13634_v8  ;;  %9882 = vmatpush3.msra.mxu0 %v11716_v9 }
  0x4a   :  { %9893 = vmatpush3.msra.mxu1 %v11718_v10  ;;  %9883 = vmatprep.subr.mxu0 %v13634_v8 }
  0x4b   :  { %9894 = vmatprep.subr.mxu1 %v13634_v8  ;;  %9884 = vmatpush3.msra.mxu0 %v11724_v11 }
  0x4c   :  { %9895 = vmatpush3.msra.mxu1 %v11726_v12  ;;  %9885 = vmatprep.subr.mxu0 %v13634_v8 }
  0x4d   :  { %9896 = vmatprep.subr.mxu1 %v13634_v8  ;;  %9886 = vmatpush3.msra.mxu0 %v11732_v13 }
  0x4e   :  { %9887 = vmatprep.mubr.msk.f32.mxu0 %vm11599_vm2, %v13634_v8  ;;  %9897 = vmatpush3.msra.mxu1 %v11736_v14 }
  0x4f   :  { %9898 = vmatprep.mubr.msk.f32.mxu1 %vm11599_vm2, %v13634_v8  ;;  %9888 = vmatmul.mubr.f32.vlgmr.msra.gmra.mxu0 %v13634_v8 }
  0x50   :  { %9899 = vmatmul.mubr.f32.vlgmr.msra.gmra.mxu1 %v13634_v8  ;;  %9901 = vmatprep.subr.mxu0 %v13634_v8 }
  0x51   :  { %9912 = vmatprep.subr.mxu1 %v13634_v8  ;;  %9902 = vmatpush3.msra.mxu0 %v11746_v15 }
  0x52   :  { %9913 = vmatpush3.msra.mxu1 %v11748_v16  ;;  %9903 = vmatprep.subr.mxu0 %v13634_v8 }
  0x53   :  { %9914 = vmatprep.subr.mxu1 %v13634_v8  ;;  %9904 = vmatpush3.msra.mxu0 %v11754_v17 }
  0x54   :  { %9915 = vmatpush3.msra.mxu1 %v11756_v18  ;;  %9905 = vmatprep.subr.mxu0 %v13634_v8 }
  0x55   :  { %9916 = vmatprep.subr.mxu1 %v13634_v8  ;;  %9906 = vmatpush3.msra.mxu0 %v11762_v19 }
  0x56   :  { %9917 = vmatpush3.msra.mxu1 %v11764_v20  ;;  %9907 = vmatprep.subr.mxu0 %v13634_v8 }
  0x57   :  { %9918 = vmatprep.subr.mxu1 %v13634_v8  ;;  %9908 = vmatpush3.msra.mxu0 %v11770_v21 }
  0x58   :  { %9909 = vmatprep.mubr.msk.f32.mxu0 %vm11599_vm2, %v13634_v8  ;;  %9919 = vmatpush3.msra.mxu1 %v11774_v22 }
  0x59   :  { %9920 = vmatprep.mubr.msk.f32.mxu1 %vm11599_vm2, %v13634_v8  ;;  %9910 = vmatmul.mubr.f32.vlgmr.msra.gmra.mxu0 %v13634_v8 }
  0x5a   :  { %9921 = vmatmul.mubr.f32.vlgmr.msra.gmra.mxu1 %v13634_v8  ;;  %9923 = vmatprep.subr.mxu0 %v13634_v8 }
  0x5b   :  { %9934 = vmatprep.subr.mxu1 %v13634_v8  ;;  %9931 = vmatprep.mubr.msk.f32.mxu0 %vm11599_vm2, %v13634_v8 }
  0x5c   :  { %9942 = vmatprep.mubr.msk.f32.mxu1 %vm11599_vm2, %v13634_v8  ;;  %9924 = vmatpush3.msra.mxu0 %v11792_v23 }
  0x5d   :  { %9935 = vmatpush3.msra.mxu1 %v11794_v24  ;;  %9925 = vmatprep.subr.mxu0 %v13634_v8 }
  0x5e   :  { %9936 = vmatprep.subr.mxu1 %v13634_v8  ;;  %9926 = vmatpush3.msra.mxu0 %v11800_v25 }
  0x5f   :  { %9937 = vmatpush3.msra.mxu1 %v11802_v26  ;;  %9927 = vmatprep.subr.mxu0 %v13634_v8 }
  0x60   :  { %9938 = vmatprep.subr.mxu1 %v13634_v8  ;;  %9928 = vmatpush3.msra.mxu0 %v11808_v27 }
  0x61   :  { %9939 = vmatpush3.msra.mxu1 %v11810_v28  ;;  %9929 = vmatprep.subr.mxu0 %v13634_v8 }
  0x62   :  { %9940 = vmatprep.subr.mxu1 %v13634_v8  ;;  %9930 = vmatpush3.msra.mxu0 %v11816_v29 }
  0x63   :  { %9941 = vmatpush3.msra.mxu1 %v11818_v30  ;;  %9945 = vmatprep.subr.mxu0 %v13634_v8 }
  0x64   :  { %9956 = vmatprep.subr.mxu1 %v13634_v8 }
 0x101   :  { %v9863_v33 = vpop.f32.mrf.mxu0 }
 0x102   :  { %v9868_v34 = vpop.f32.mrf.mxu1  ;;  %v11830_v35 = vadd.f32 %v9863_v33, %v9129_v31 }
 0x103   :  { %v11832_v36 = vadd.f32 %v9868_v34, %v9133_v32  ;;  %v275_v37 = vpop.f32.mrf.mxu0 }
 0x104   :  { %13729 = vst [vmem:[#allocation16_spill] sm:$0xff] %v11830_v35  ;;  %v359_v38 = vpop.f32.mrf.mxu1  ;;  %v11844_v47 = vadd.f32 %v9129_v31, %v275_v37  ;;  %v12060_v35 = vld [vmem:[%s13628_s6 + $0x3] ss:$0 sm:$0xff] }
 0x105   :  { %13730 = vst [vmem:[#allocation17_spill] sm:$0xff] %v11832_v36  ;;  %v11846_v48 = vadd.f32 %v9133_v32, %v359_v38  ;;  %13736 = vst [vmem:[#allocation23_spill] sm:$0xff] %v12060_v35 }
 0x106   :  { %v9873_v41 = vpop.f32.mrf.mxu0 }
 0x107   :  { %v9878_v42 = vpop.f32.mrf.mxu1  ;;  %v11840_v43 = vadd.f32 %v9873_v41, %v9137_v39 }
 0x108   :  { %v11842_v44 = vadd.f32 %v9878_v42, %v9141_v40  ;;  %v443_v45 = vpop.f32.mrf.mxu0 }
 0x109   :  { %13731 = vst [vmem:[#allocation18_spill] sm:$0xff] %v11840_v43  ;;  %v527_v46 = vpop.f32.mrf.mxu1  ;;  %v11853_v63 = vadd.f32 %v9137_v39, %v443_v45 }
 0x10a   :  { %13732 = vst [vmem:[#allocation19_spill] sm:$0xff] %v11842_v44  ;;  %v11850_v57 = vadd.f32 %v9141_v40, %v527_v46  ;;  %v11861_v46 = vld [vmem:[#allocation7 + $0x58] sm:$0xff] }
 0x10f   :  { %v606_v49 = vpop.f32.mrf.mxu0 }
 0x110   :  { %v683_v50 = vpop.f32.mrf.mxu1  ;;  %v610_v51 = vadd.f32 %v606_v49, %v11844_v47  ;;  %v11863_v49 = vld [vmem:[#allocation7 + $0x78] sm:$0xff] }
 0x111   :  { %v687_v52 = vadd.f32 %v683_v50, %v11846_v48  ;;  %v9889_v53 = vpop.f32.mrf.mxu0  ;;  %v11869_v50 = vld [vmem:[#allocation7 + $0x50] sm:$0xff] }
 0x112   :  { %v9900_v54 = vpop.f32.mrf.mxu1  ;;  %v9145_v55 = vmul.f32 -1.442695, %v610_v51  ;;  %v11871_v51 = vld [vmem:[#allocation7 + $0x70] sm:$0xff]  ;;  %v11879_v53 = vld [vmem:[#allocation7 + $0x68] sm:$0xff] }
 0x113   :  { %v9146_v56 = vmul.f32 -1.442695, %v687_v52  ;;  %v11877_v52 = vld [vmem:[#allocation7 + $0x48] sm:$0xff]  ;;  %v11885_v54 = vld [vmem:[#allocation7 + $0x40] sm:$0xff] }
 0x114   :  { %11091 = vpow2.f32 %v9145_v55  ;;  %v11889_v55 = vld [vmem:[#allocation7 + $0x60] sm:$0xff] }
 0x115   :  { %11093 = vpow2.f32 %v9146_v56  ;;  %v11899_v56 = vld [vmem:[#allocation8 + $0x18] sm:$0xff] }
 0x119   :  { %v760_v58 = vpop.f32.mrf.mxu0 }
 0x11a   :  { %v832_v59 = vpop.f32.mrf.mxu1  ;;  %v764_v1 = vadd.f32 %v760_v58, %v11853_v63  ;;  %v11901_v58 = vld [vmem:[#allocation8 + $0x38] sm:$0xff] }
 0x11b   :  { %v836_v60 = vadd.f32 %v832_v59, %v11850_v57  ;;  %v9911_v61 = vpop.f32.mrf.mxu0  ;;  %v11909_v59 = vld [vmem:[#allocation8 + $0x10] sm:$0xff] }
 0x11c   :  { %v9922_v62 = vpop.f32.mrf.mxu1  ;;  %v11917_v61 = vld [vmem:[#allocation8 + $0x8] sm:$0xff] }
 0x11d   :  { %v9147_v0 = vmul.f32 -1.442695, %v836_v60  ;;  %v11911_v60 = vld [vmem:[#allocation8 + $0x30] sm:$0xff]  ;;  %v11919_v62 = vld [vmem:[#allocation8 + $0x28] sm:$0xff] }
 0x11f   :  { %11095 = vpow2.f32 %v9147_v0  ;;  %v11925_v0 = vld [vmem:[#allocation8] sm:$0xff] }
 0x120   :  { %11097 = vtanh.f32 %v764_v1  ;;  %v11929_v1 = vld [vmem:[#allocation8 + $0x20] sm:$0xff] }
 0x121   :  { %v11092_v2 = vpop.eup %11091 }
 0x122   :  { %v11094_v3 = vpop.eup %11093  ;;  %v614_v4 = vadd.f32 1.0, %v11092_v2  ;;  %v11939_v2 = vld [vmem:[#allocation8 + $0x58] sm:$0xff] }
 0x123   :  { %v691_v5 = vadd.f32 1.0, %v11094_v3  ;;  %v11941_v3 = vld [vmem:[#allocation8 + $0x78] sm:$0xff] }
 0x124   :  { %11099 = vrcp.f32 %v614_v4  ;;  %v11947_v4 = vld [vmem:[#allocation8 + $0x50] sm:$0xff] }
 0x125   :  { %11101 = vrcp.f32 %v691_v5  ;;  %v11949_v5 = vld [vmem:[#allocation8 + $0x70] sm:$0xff] }
 0x12c   :  { %v11096_v31 = vpop.eup %11095 }
 0x12d   :  { %v11098_v32 = vpop.eup %11097  ;;  %v840_v38 = vadd.f32 1.0, %v11096_v31  ;;  %v11955_v31 = vld [vmem:[#allocation8 + $0x48] sm:$0xff] }
 0x12f   :  { %11103 = vrcp.f32 %v840_v38  ;;  %v12053_v38 = vld [vmem:[%s13628_s6 + $0x1] ss:$0 sm:$0xff] }
 0x130   :  { %13735 = vst [vmem:[#allocation22_spill] sm:$0xff] %v12053_v38 }
 0x131   :  { %v11100_v33 = vpop.eup %11099 }
 0x132   :  { %v11102_v34 = vpop.eup %11101  ;;  %v844_v37 = vmul.f32 %v11100_v33, %v11098_v32  ;;  %v11957_v32 = vld [vmem:[#allocation8 + $0x68] sm:$0xff]  ;;  %v11963_v33 = vld [vmem:[#allocation8 + $0x40] sm:$0xff] }
 0x133   :  { %v843_v40 = vmul.f32 0.0, %v11102_v34  ;;  %v11967_v34 = vld [vmem:[#allocation8 + $0x60] sm:$0xff] }
 0x135   :  { %v11856_v39 = vadd.f32 %v844_v37, %v843_v40  ;;  %v12048_v37 = vld [vmem:[%s13628_s6] ss:$0 sm:$0xff] }
 0x136   :  { %13734 = vst [vmem:[#allocation21_spill] sm:$0xff] %v12048_v37 }
 0x137   :  { %11105 = vtanh.f32 %v11856_v39 }
 0x13c   :  { %v11104_v41 = vpop.eup %11103 }
 0x144   :  { %v11106_v42 = vpop.eup %11105 }
 0x145   :  { %v11859_v45 = vmul.f32 %v11106_v42, %v11104_v41 }
 0x147   :  { %9932 = vmatmul.mubr.msk.f32.vlgmr.msra.gmra.mxu0 %vm536_vm3, %v11859_v45  ;;  %9943 = vmatmul.mubr.msk.f32.vlgmr.msra.gmra.mxu1 %vm536_vm3, %v11859_v45 }
 0x148   :  { %9946 = vmatpush3.msra.mxu0 %v11861_v46  ;;  %9957 = vmatpush3.msra.mxu1 %v11863_v49 }
 0x149   :  { %9947 = vmatprep.subr.mxu0 %v13634_v8  ;;  %9958 = vmatprep.subr.mxu1 %v13634_v8 }
 0x14a   :  { %9948 = vmatpush3.msra.mxu0 %v11869_v50  ;;  %9959 = vmatpush3.msra.mxu1 %v11871_v51 }
 0x14b   :  { %9949 = vmatprep.subr.mxu0 %v13634_v8  ;;  %9960 = vmatprep.subr.mxu1 %v13634_v8 }
 0x14c   :  { %9950 = vmatpush3.msra.mxu0 %v11877_v52  ;;  %9961 = vmatpush3.msra.mxu1 %v11879_v53 }
 0x14d   :  { %9951 = vmatprep.subr.mxu0 %v13634_v8  ;;  %9962 = vmatprep.subr.mxu1 %v13634_v8 }
 0x14e   :  { %9952 = vmatpush3.msra.mxu0 %v11885_v54  ;;  %9953 = vmatprep.mubr.msk.f32.mxu0 %vm11599_vm2, %v13634_v8 }
 0x14f   :  { %9963 = vmatpush3.msra.mxu1 %v11889_v55  ;;  %9964 = vmatprep.mubr.msk.f32.mxu1 %vm11599_vm2, %v13634_v8 }
 0x150   :  { %9954 = vmatmul.mubr.msk.f32.vlgmr.msra.gmra.mxu0 %vm536_vm3, %v11859_v45  ;;  %9965 = vmatmul.mubr.msk.f32.vlgmr.msra.gmra.mxu1 %vm536_vm3, %v11859_v45 }
 0x151   :  { %9967 = vmatprep.subr.mxu0 %v13634_v8  ;;  %9978 = vmatprep.subr.mxu1 %v13634_v8 }
 0x152   :  { %9968 = vmatpush3.msra.mxu0 %v11899_v56  ;;  %9979 = vmatpush3.msra.mxu1 %v11901_v58 }
 0x153   :  { %9969 = vmatprep.subr.mxu0 %v13634_v8  ;;  %9980 = vmatprep.subr.mxu1 %v13634_v8 }
 0x154   :  { %9970 = vmatpush3.msra.mxu0 %v11909_v59  ;;  %9981 = vmatpush3.msra.mxu1 %v11911_v60 }
 0x155   :  { %9971 = vmatprep.subr.mxu0 %v13634_v8  ;;  %9982 = vmatprep.subr.mxu1 %v13634_v8 }
 0x156   :  { %9972 = vmatpush3.msra.mxu0 %v11917_v61  ;;  %9983 = vmatpush3.msra.mxu1 %v11919_v62 }
 0x157   :  { %9973 = vmatprep.subr.mxu0 %v13634_v8  ;;  %9984 = vmatprep.subr.mxu1 %v13634_v8 }
 0x158   :  { %9974 = vmatpush3.msra.mxu0 %v11925_v0  ;;  %9975 = vmatprep.mubr.msk.f32.mxu0 %vm11599_vm2, %v13634_v8 }
 0x159   :  { %9985 = vmatpush3.msra.mxu1 %v11929_v1  ;;  %9986 = vmatprep.mubr.msk.f32.mxu1 %vm11599_vm2, %v13634_v8 }
 0x15a   :  { %9976 = vmatmul.mubr.f32.vlgmr.msra.gmra.mxu0 %v13634_v8  ;;  %9987 = vmatmul.mubr.f32.vlgmr.msra.gmra.mxu1 %v13634_v8 }
 0x15b   :  { %9989 = vmatprep.subr.mxu0 %v13634_v8  ;;  %10000 = vmatprep.subr.mxu1 %v13634_v8 }
 0x15c   :  { %9990 = vmatpush3.msra.mxu0 %v11939_v2  ;;  %10001 = vmatpush3.msra.mxu1 %v11941_v3 }
 0x15d   :  { %9991 = vmatprep.subr.mxu0 %v13634_v8  ;;  %10002 = vmatprep.subr.mxu1 %v13634_v8 }
 0x15e   :  { %9992 = vmatpush3.msra.mxu0 %v11947_v4  ;;  %10003 = vmatpush3.msra.mxu1 %v11949_v5 }
 0x15f   :  { %9993 = vmatprep.subr.mxu0 %v13634_v8  ;;  %10004 = vmatprep.subr.mxu1 %v13634_v8 }
 0x160   :  { %9994 = vmatpush3.msra.mxu0 %v11955_v31  ;;  %10005 = vmatpush3.msra.mxu1 %v11957_v32 }
 0x161   :  { %9995 = vmatprep.subr.mxu0 %v13634_v8  ;;  %10006 = vmatprep.subr.mxu1 %v13634_v8 }
 0x162   :  { %9996 = vmatpush3.msra.mxu0 %v11963_v33  ;;  %9997 = vmatprep.mubr.msk.f32.mxu0 %vm11599_vm2, %v13634_v8 }
 0x163   :  { %10007 = vmatpush3.msra.mxu1 %v11967_v34  ;;  %10008 = vmatprep.mubr.msk.f32.mxu1 %vm11599_vm2, %v13634_v8 }
 0x164   :  { %9998 = vmatmul.mubr.f32.vlgmr.msra.gmra.mxu0 %v13634_v8  ;;  %10009 = vmatmul.mubr.f32.vlgmr.msra.gmra.mxu1 %v13634_v8 }
 0x165   :  { %10022 = vmatprep.subr.mxu1 %v13634_v8  ;;  %10030 = vmatprep.mubr.msk.f32.mxu1 %vm11599_vm2, %v13634_v8 }
 0x166   :  { %10023 = vmatpush3.msra.mxu1 %v11708_v6  ;;  %10011 = vmatprep.subr.mxu0 %v13634_v8  ;;  %v12020_v6 = vld [vmem:[%s13629_s7 + $0x18] sm:$0xff] }
 0x167   :  { %10024 = vmatprep.subr.mxu1 %v13634_v8  ;;  %10019 = vmatprep.mubr.msk.f32.mxu0 %vm11599_vm2, %v13634_v8 }
 0x168   :  { %10025 = vmatpush3.msra.mxu1 %v11716_v9  ;;  %10012 = vmatpush3.msra.mxu0 %v12020_v6  ;;  %v12027_v9 = vld [vmem:[%s13629_s7 + $0x10] sm:$0xff] }
 0x169   :  { %10026 = vmatprep.subr.mxu1 %v13634_v8  ;;  %10013 = vmatprep.subr.mxu0 %v13634_v8 }
 0x16a   :  { %10027 = vmatpush3.msra.mxu1 %v11724_v11  ;;  %10014 = vmatpush3.msra.mxu0 %v12027_v9  ;;  %v12034_v11 = vld [vmem:[%s13629_s7 + $0x8] sm:$0xff] }
 0x16b   :  { %10028 = vmatprep.subr.mxu1 %v13634_v8  ;;  %10015 = vmatprep.subr.mxu0 %v13634_v8 }
 0x16c   :  { %10029 = vmatpush3.msra.mxu1 %v11732_v13  ;;  %10016 = vmatpush3.msra.mxu0 %v12034_v11  ;;  %v12040_v13 = vld [vmem:[%s13629_s7] sm:$0xff] }
 0x16d   :  { %10031 = vmatmul.mubr.msk.f32.vlgmr.msra.gmra.mxu1 %vm536_vm3, %v11859_v45  ;;  %10044 = vmatprep.subr.mxu1 %v13634_v8  ;;  %13733 = vst [vmem:[#allocation20_spill] sm:$0xff] %v12040_v13 }
 0x16e   :  { %10045 = vmatpush3.msra.mxu1 %v11746_v15  ;;  %10052 = vmatprep.mubr.msk.f32.mxu1 %vm11599_vm2, %v13634_v8 }
 0x16f   :  { %10046 = vmatprep.subr.mxu1 %v13634_v8  ;;  %10017 = vmatprep.subr.mxu0 %v13634_v8 }
 0x170   :  { %10047 = vmatpush3.msra.mxu1 %v11754_v17  ;;  %10018 = vmatpush3.msra.mxu0 %v12040_v13 }
 0x171   :  { %10048 = vmatprep.subr.mxu1 %v13634_v8  ;;  %10033 = vmatprep.subr.mxu0 %v13634_v8 }
 0x172   :  { %10049 = vmatpush3.msra.mxu1 %v11762_v19 }
 0x173   :  { %10050 = vmatprep.subr.mxu1 %v13634_v8 }
 0x174   :  { %10051 = vmatpush3.msra.mxu1 %v11770_v21 }
 0x175   :  { %10053 = vmatmul.mubr.msk.f32.vlgmr.msra.gmra.mxu1 %vm536_vm3, %v11859_v45  ;;  %10066 = vmatprep.subr.mxu1 %v13634_v8 }
 0x176   :  { %10067 = vmatpush3.msra.mxu1 %v11792_v23  ;;  %10074 = vmatprep.mubr.msk.f32.mxu1 %vm11599_vm2, %v13634_v8 }
 0x177   :  { %10068 = vmatprep.subr.mxu1 %v13634_v8 }
 0x178   :  { %10069 = vmatpush3.msra.mxu1 %v11800_v25 }
 0x179   :  { %10070 = vmatprep.subr.mxu1 %v13634_v8 }
 0x17a   :  { %10071 = vmatpush3.msra.mxu1 %v11808_v27 }
 0x17b   :  { %10072 = vmatprep.subr.mxu1 %v13634_v8 }
 0x17c   :  { %10073 = vmatpush3.msra.mxu1 %v11816_v29 }
 0x17d   :  { %10088 = vmatprep.subr.mxu1 %v13634_v8 }
 0x207   :  { %v923_v15 = vpop.f32.mrf.mxu0  ;;  %v999_v17 = vpop.f32.mrf.mxu1 }
 0x208   :  { %v924_v40 = vadd.f32 %v12048_v37, %v923_v15  ;;  %v1000_v41 = vadd.f32 %v12053_v38, %v999_v17  ;;  %v12066_v17 = vld [vmem:[%s13628_s6 + $0x2] ss:$0 sm:$0xff] }
 0x209   :  { %v9933_v19 = vpop.f32.mrf.mxu0  ;;  %v9944_v21 = vpop.f32.mrf.mxu1  ;;  %13737 = vst [vmem:[#allocation24_spill] sm:$0xff] %v12066_v17 }
 0x210   :  { %v1075_v23 = vpop.f32.mrf.mxu0  ;;  %v1151_v25 = vpop.f32.mrf.mxu1 }
 0x211   :  { %v1152_v36 = vadd.f32 %v12060_v35, %v1151_v25 }
 0x212   :  { %v9955_v27 = vpop.f32.mrf.mxu0  ;;  %v9966_v29 = vpop.f32.mrf.mxu1 }
 0x21a   :  { %v1221_v42 = vpop.f32.mrf.mxu0  ;;  %v1298_v19 = vpop.f32.mrf.mxu1 }
 0x21b   :  { %v1225_v21 = vadd.f32 %v1221_v42, %v924_v40  ;;  %v1302_v8 = vadd.f32 %v1298_v19, %v1000_v41 }
 0x21c   :  { %v9977_v27 = vpop.f32.mrf.mxu0  ;;  %v9988_v29 = vpop.f32.mrf.mxu1 }
 0x21d   :  { %v9156_v43 = vmul.f32 -1.442695, %v1225_v21  ;;  %v9157_v44 = vmul.f32 -1.442695, %v1302_v8  ;;  %v1076_v8 = vadd.f32 %v12066_v17, %v1075_v23 }
 0x21f   :  { %11107 = vpow2.f32 %v9156_v43 }
 0x220   :  { %11109 = vpow2.f32 %v9157_v44 }
 0x224   :  { %v1375_v15 = vpop.f32.mrf.mxu0  ;;  %v1447_v37 = vpop.f32.mrf.mxu1 }
 0x225   :  { %v1451_v40 = vadd.f32 %v1447_v37, %v1152_v36  ;;  %v1379_v19 = vadd.f32 %v1375_v15, %v1076_v8 }
 0x226   :  { %v10010_v41 = vpop.f32.mrf.mxu1  ;;  %v9999_v42 = vpop.f32.mrf.mxu0 }
 0x227   :  { %v9158_v43 = vmul.f32 -1.442695, %v1451_v40 }
 0x229   :  { %11111 = vpow2.f32 %v9158_v43 }
 0x22a   :  { %11113 = vtanh.f32 %v1379_v19 }
 0x22c   :  { %v11108_v21 = vpop.eup %11107 }
 0x22d   :  { %v11110_v27 = vpop.eup %11109  ;;  %v1229_v29 = vadd.f32 1.0, %v11108_v21  ;;  %v1612_v44 = vpop.f32.mrf.mxu1 }
 0x22e   :  { %v1306_v25 = vadd.f32 1.0, %v11110_v27  ;;  %v1617_v35 = vrot.slane %v1612_v44, 6 }
 0x22f   :  { %11115 = vrcp.f32 %v1229_v29  ;;  %v10032_v38 = vpop.f32.mrf.mxu1 }
 0x230   :  { %11117 = vrcp.f32 %v1306_v25  ;;  %v1619_v13 = vadd.f32 %v1617_v35, %v11844_v47 }
 0x232   :  { %v9162_v36 = vmul.f32 -1.442695, %v1619_v13 }
 0x234   :  { %11119 = vpow2.f32 %v9162_v36 }
 0x235   :  { %v1772_v37 = vpop.f32.mrf.mxu1 }
 0x236   :  { %v11112_v23 = vpop.eup %11111  ;;  %v1777_v15 = vrot.slane %v1772_v37, 6 }
 0x237   :  { %v10054_v41 = vpop.f32.mrf.mxu1  ;;  %v11114_v40 = vpop.eup %11113  ;;  %v1455_v43 = vadd.f32 1.0, %v11112_v23 }
 0x238   :  { %v1779_v19 = vadd.f32 %v1777_v15, %v11853_v63 }
 0x239   :  { %11121 = vrcp.f32 %v1455_v43 }
 0x23c   :  { %v11116_v42 = vpop.eup %11115 }
 0x23d   :  { %v11118_v8 = vpop.eup %11117  ;;  %v1459_v21 = vmul.f32 %v11116_v42, %v11114_v40 }
 0x23e   :  { %v1458_v17 = vmul.f32 0.0, %v11118_v8 }
 0x240   :  { %v12071_v27 = vadd.f32 %v1459_v21, %v1458_v17  ;;  %v13738_v17 = vmov 0.0  }
 0x241   :  { %v11120_v38 = vpop.eup %11119 }
 0x242   :  { %11123 = vtanh.f32 %v12071_v27  ;;  %v1623_v35 = vadd.f32 1.0, %v11120_v38 }
 0x243   :  { %11125 = vtanh.f32 %v1779_v19  ;;  %v1862_v19 = vrot.slane %v11856_v39, 6  ;;  %v13739_v39 = vld [vmem:[#allocation20_spill] sm:$0xff] }
 0x244   :  { %11127 = vrcp.f32 %v1623_v35 }
 0x246   :  { %v11122_v13 = vpop.eup %11121 }
 0x24f   :  { %v11124_v29 = vpop.eup %11123 }
 0x250   :  { %v11126_v44 = vpop.eup %11125  ;;  %v12074_v25 = vmul.f32 %v11124_v29, %v11122_v13 }
 0x251   :  { %v11128_v36 = vpop.eup %11127 }
 0x252   :  { %v1865_v37 = vmul.f32 %v11128_v36, %v11126_v44  ;;  %v1463_v41 = vmax.f32 %v12074_v25, 0.0 }
 0x254   :  { %10020 = vmatmul.mubr.msk.f32.vlgmr.msra.gmra.mxu0 %vm536_vm3, %v1463_v41 }
 0x255   :  { %10034 = vmatpush3.msra.mxu0 %v11710_v7  ;;  %10041 = vmatprep.mubr.msk.f32.mxu0 %vm11599_vm2, %v13738_v17 }
 0x256   :  { %10035 = vmatprep.subr.mxu0 %v13738_v17 }
 0x257   :  { %10036 = vmatpush3.msra.mxu0 %v11718_v10 }
 0x258   :  { %10037 = vmatprep.subr.mxu0 %v13738_v17 }
 0x259   :  { %10038 = vmatpush3.msra.mxu0 %v11726_v12 }
 0x25a   :  { %10039 = vmatprep.subr.mxu0 %v13738_v17 }
 0x25b   :  { %10040 = vmatpush3.msra.mxu0 %v11736_v14 }
 0x25c   :  { %10042 = vmatmul.mubr.msk.f32.vlgmr.msra.gmra.mxu0 %vm536_vm3, %v11859_v45  ;;  %10055 = vmatprep.subr.mxu0 %v13738_v17 }
 0x25d   :  { %10056 = vmatpush3.msra.mxu0 %v11748_v16  ;;  %10063 = vmatprep.mubr.msk.f32.mxu0 %vm11599_vm2, %v13738_v17 }
 0x25e   :  { %10057 = vmatprep.subr.mxu0 %v13738_v17 }
 0x25f   :  { %10058 = vmatpush3.msra.mxu0 %v11756_v18 }
 0x260   :  { %10059 = vmatprep.subr.mxu0 %v13738_v17 }
 0x261   :  { %10060 = vmatpush3.msra.mxu0 %v11764_v20 }
 0x262   :  { %10061 = vmatprep.subr.mxu0 %v13738_v17 }
 0x263   :  { %10062 = vmatpush3.msra.mxu0 %v11774_v22 }
 0x264   :  { %10064 = vmatmul.mubr.msk.f32.vlgmr.msra.gmra.mxu0 %vm536_vm3, %v11859_v45  ;;  %10077 = vmatprep.subr.mxu0 %v13738_v17 }
 0x265   :  { %10078 = vmatpush3.msra.mxu0 %v11794_v24  ;;  %10085 = vmatprep.mubr.msk.f32.mxu0 %vm11599_vm2, %v13738_v17 }
 0x266   :  { %10079 = vmatprep.subr.mxu0 %v13738_v17 }
 0x267   :  { %10080 = vmatpush3.msra.mxu0 %v11802_v26 }
 0x268   :  { %10081 = vmatprep.subr.mxu0 %v13738_v17 }
 0x269   :  { %10082 = vmatpush3.msra.mxu0 %v11810_v28 }
 0x26a   :  { %10083 = vmatprep.subr.mxu0 %v13738_v17 }
 0x26b   :  { %10084 = vmatpush3.msra.mxu0 %v11818_v30 }
 0x26c   :  { %10099 = vmatprep.subr.mxu0 %v13738_v17 }
 0x314   :  { %v12112_v7 = vpop.f32.mrf.mxu0 }
 0x316   :  { %v10021_v10 = vpop.f32.mrf.mxu0 }
 0x31c   :  { %v1692_v12 = vpop.f32.mrf.mxu0 }
 0x31d   :  { %v1697_v14 = vrot.slane %v1692_v12, 6  ;;  %v13740_v12 = vld [vmem:[#allocation21_spill] sm:$0xff] }
 0x31e   :  { %v10043_v16 = vpop.f32.mrf.mxu0 }
 0x31f   :  { %v1699_v18 = vadd.f32 %v1697_v14, %v11846_v48  ;;  %v13741_v16 = vld [vmem:[#allocation22_spill] sm:$0xff] }
 0x321   :  { %v9164_v20 = vmul.f32 -1.442695, %v1699_v18 }
 0x323   :  { %11129 = vpow2.f32 %v9164_v20 }
 0x324   :  { %v1847_v45 = vpop.f32.mrf.mxu0 }
 0x325   :  { %v1852_v23 = vrot.slane %v1847_v45, 6 }
 0x326   :  { %v10065_v40 = vpop.f32.mrf.mxu0 }
 0x327   :  { %v1854_v15 = vadd.f32 %v1852_v23, %v11850_v57 }
 0x329   :  { %v9167_v42 = vmul.f32 -1.442695, %v1854_v15 }
 0x32b   :  { %11131 = vpow2.f32 %v9167_v42 }
 0x330   :  { %v11130_v8 = vpop.eup %11129 }
 0x331   :  { %v1703_v21 = vadd.f32 1.0, %v11130_v8 }
 0x333   :  { %11133 = vrcp.f32 %v1703_v21 }
 0x338   :  { %v11132_v43 = vpop.eup %11131 }
 0x339   :  { %v1858_v35 = vadd.f32 1.0, %v11132_v43  ;;  %v13742_v43 = vld [vmem:[#allocation23_spill] sm:$0xff] }
 0x33b   :  { %11135 = vrcp.f32 %v1858_v35 }
 0x340   :  { %v11134_v38 = vpop.eup %11133 }
 0x341   :  { %v1864_v13 = vmul.f32 %v11134_v38, %v1862_v19 }
 0x343   :  { %v12117_v29 = vadd.f32 %v1865_v37, %v1864_v13 }
 0x345   :  { %11137 = vtanh.f32 %v12117_v29 }
 0x348   :  { %v11136_v44 = vpop.eup %11135 }
 0x352   :  { %v11138_v36 = vpop.eup %11137 }
 0x353   :  { %v1868_v41 = vmul.f32 %v11138_v36, %v11136_v44 }
 0x355   :  { %v12120_v10 = vrot.slane %v1868_v41, 2  ;;  %v13743_v41 = vld [vmem:[#allocation24_spill] sm:$0xff] }
 0x357   :  { %10075 = vmatmul.mubr.msk.f32.vlgmr.msra.gmra.mxu1 %vm536_vm3, %v12120_v10  ;;  %10086 = vmatmul.mubr.msk.f32.vlgmr.msra.gmra.mxu0 %vm536_vm3, %v12120_v10 }
 0x358   :  { %10089 = vmatpush3.msra.mxu1 %v11861_v46  ;;  %10100 = vmatpush3.msra.mxu0 %v11863_v49 }
 0x359   :  { %10090 = vmatprep.subr.mxu1 %v13738_v17  ;;  %10101 = vmatprep.subr.mxu0 %v13738_v17 }
 0x35a   :  { %10091 = vmatpush3.msra.mxu1 %v11869_v50  ;;  %10102 = vmatpush3.msra.mxu0 %v11871_v51 }
 0x35b   :  { %10092 = vmatprep.subr.mxu1 %v13738_v17  ;;  %10103 = vmatprep.subr.mxu0 %v13738_v17 }
 0x35c   :  { %10093 = vmatpush3.msra.mxu1 %v11877_v52  ;;  %10104 = vmatpush3.msra.mxu0 %v11879_v53 }
 0x35d   :  { %10094 = vmatprep.subr.mxu1 %v13738_v17  ;;  %10105 = vmatprep.subr.mxu0 %v13738_v17 }
 0x35e   :  { %10095 = vmatpush3.msra.mxu1 %v11885_v54  ;;  %10096 = vmatprep.mubr.msk.f32.mxu1 %vm11599_vm2, %v13738_v17 }
 0x35f   :  { %10106 = vmatpush3.msra.mxu0 %v11889_v55  ;;  %10107 = vmatprep.mubr.msk.f32.mxu0 %vm11599_vm2, %v13738_v17 }
 0x360   :  { %10097 = vmatmul.mubr.msk.f32.vlgmr.msra.gmra.mxu1 %vm536_vm3, %v12120_v10  ;;  %10108 = vmatmul.mubr.msk.f32.vlgmr.msra.gmra.mxu0 %vm536_vm3, %v12120_v10 }
 0x361   :  { %10110 = vmatprep.subr.mxu1 %v13738_v17  ;;  %10121 = vmatprep.subr.mxu0 %v13738_v17 }
 0x362   :  { %10111 = vmatpush3.msra.mxu1 %v11899_v56  ;;  %10122 = vmatpush3.msra.mxu0 %v11901_v58 }
 0x363   :  { %10112 = vmatprep.subr.mxu1 %v13738_v17  ;;  %10123 = vmatprep.subr.mxu0 %v13738_v17 }
 0x364   :  { %10113 = vmatpush3.msra.mxu1 %v11909_v59  ;;  %10124 = vmatpush3.msra.mxu0 %v11911_v60 }
 0x365   :  { %10114 = vmatprep.subr.mxu1 %v13738_v17  ;;  %10125 = vmatprep.subr.mxu0 %v13738_v17 }
 0x366   :  { %10115 = vmatpush3.msra.mxu1 %v11917_v61  ;;  %10126 = vmatpush3.msra.mxu0 %v11919_v62 }
 0x367   :  { %10116 = vmatprep.subr.mxu1 %v13738_v17  ;;  %10127 = vmatprep.subr.mxu0 %v13738_v17 }
 0x368   :  { %10117 = vmatpush3.msra.mxu1 %v11925_v0  ;;  %10118 = vmatprep.mubr.msk.f32.mxu1 %vm11599_vm2, %v13738_v17 }
 0x369   :  { %10128 = vmatpush3.msra.mxu0 %v11929_v1  ;;  %10129 = vmatprep.mubr.msk.f32.mxu0 %vm11599_vm2, %v13738_v17 }
 0x36a   :  { %10119 = vmatmul.mubr.msk.f32.vlgmr.msra.gmra.mxu1 %vm536_vm3, %v12074_v25  ;;  %10130 = vmatmul.mubr.msk.f32.vlgmr.msra.gmra.mxu0 %vm536_vm3, %v12074_v25 }
 0x36b   :  { %10132 = vmatprep.subr.mxu1 %v13738_v17  ;;  %10143 = vmatprep.subr.mxu0 %v13738_v17 }
 0x36c   :  { %10133 = vmatpush3.msra.mxu1 %v11939_v2  ;;  %10144 = vmatpush3.msra.mxu0 %v11941_v3 }
 0x36d   :  { %10134 = vmatprep.subr.mxu1 %v13738_v17  ;;  %10145 = vmatprep.subr.mxu0 %v13738_v17 }
 0x36e   :  { %10135 = vmatpush3.msra.mxu1 %v11947_v4  ;;  %10146 = vmatpush3.msra.mxu0 %v11949_v5 }
 0x36f   :  { %10136 = vmatprep.subr.mxu1 %v13738_v17  ;;  %10147 = vmatprep.subr.mxu0 %v13738_v17 }
 0x370   :  { %10137 = vmatpush3.msra.mxu1 %v11955_v31  ;;  %10148 = vmatpush3.msra.mxu0 %v11957_v32 }
 0x371   :  { %10138 = vmatprep.subr.mxu1 %v13738_v17  ;;  %10149 = vmatprep.subr.mxu0 %v13738_v17 }
 0x372   :  { %10139 = vmatpush3.msra.mxu1 %v11963_v33  ;;  %10140 = vmatprep.mubr.msk.f32.mxu1 %vm11599_vm2, %v13738_v17 }
 0x373   :  { %10150 = vmatpush3.msra.mxu0 %v11967_v34  ;;  %10151 = vmatprep.mubr.msk.f32.mxu0 %vm11599_vm2, %v13738_v17 }
 0x374   :  { %10141 = vmatmul.mubr.msk.f32.vlgmr.msra.gmra.mxu1 %vm536_vm3, %v12074_v25  ;;  %10152 = vmatmul.mubr.msk.f32.vlgmr.msra.gmra.mxu0 %vm536_vm3, %v12074_v25 }
 0x375   :  { %10154 = vmatprep.subr.mxu1 %v13738_v17  ;;  %10162 = vmatprep.mubr.msk.f32.mxu1 %vm11599_vm2, %v13738_v17 }
 0x376   :  { %10155 = vmatpush3.msra.mxu1 %v12020_v6  ;;  %10165 = vmatprep.subr.mxu0 %v13738_v17 }
 0x377   :  { %10156 = vmatprep.subr.mxu1 %v13738_v17  ;;  %10169 = vmatprep.mubr.msk.f32.mxu0 %vm11599_vm2, %v13738_v17 }
 0x378   :  { %10157 = vmatpush3.msra.mxu1 %v12027_v9 }
 0x379   :  { %10158 = vmatprep.subr.mxu1 %v13738_v17 }
 0x37a   :  { %10159 = vmatpush3.msra.mxu1 %v12034_v11 }
 0x37b   :  { %10160 = vmatprep.subr.mxu1 %v13738_v17 }
 0x37c   :  { %10161 = vmatpush3.msra.mxu1 %v13739_v39 }
 0x37d   :  { %10172 = vmatprep.subr.mxu1 %v13738_v17 }
 0x417   :  { %v1939_v46 = vpop.f32.mrf.mxu1  ;;  %v2009_v49 = vpop.f32.mrf.mxu0 }
 0x418   :  { %v1940_v14 = vadd.f32 %v13740_v12, %v1939_v46  ;;  %v2010_v18 = vadd.f32 %v13741_v16, %v2009_v49 }
 0x419   :  { %v10076_v50 = vpop.f32.mrf.mxu1  ;;  %v10087_v51 = vpop.f32.mrf.mxu0 }
 0x420   :  { %v2079_v52 = vpop.f32.mrf.mxu1  ;;  %v2149_v53 = vpop.f32.mrf.mxu0 }
 0x421   :  { %v2150_v19 = vadd.f32 %v13742_v43, %v2149_v53  ;;  %v2080_v46 = vadd.f32 %v13743_v41, %v2079_v52 }
 0x422   :  { %v10098_v25 = vpop.f32.mrf.mxu1  ;;  %v10109_v37 = vpop.f32.mrf.mxu0 }
 0x42a   :  { %v2222_v20 = vpop.f32.mrf.mxu1  ;;  %v2299_v45 = vpop.f32.mrf.mxu0 }
 0x42b   :  { %v2226_v23 = vadd.f32 %v2222_v20, %v1940_v14  ;;  %v2303_v40 = vadd.f32 %v2299_v45, %v2010_v18 }
 0x42c   :  { %v10120_v15 = vpop.f32.mrf.mxu1  ;;  %v10131_v42 = vpop.f32.mrf.mxu0 }
 0x42d   :  { %v9173_v8 = vmul.f32 -1.442695, %v2226_v23  ;;  %v9175_v21 = vmul.f32 -1.442695, %v2303_v40 }
 0x42f   :  { %11139 = vpow2.f32 %v9173_v8 }
 0x430   :  { %11141 = vpow2.f32 %v9175_v21  ;;  %v12221_v21 = vld [vmem:[%s13630_s8] ss:$0 sm:$0xff] }
 0x434   :  { %v2376_v38 = vpop.f32.mrf.mxu1  ;;  %v2448_v35 = vpop.f32.mrf.mxu0 }
 0x435   :  { %v2452_v13 = vadd.f32 %v2448_v35, %v2150_v19  ;;  %v2380_v50 = vadd.f32 %v2376_v38, %v2080_v46  ;;  %v1540_v38 = vadd.f32 %v12221_v21, %v12112_v7  ;;  %v12234_v7 = vld [vmem:[#allocation5 + $0x38] sm:$0xff]  ;;  %v12244_v46 = vld [vmem:[#allocation5 + $0x28] sm:$0xff] }
 0x436   :  { %v10142_v44 = vpop.f32.mrf.mxu1  ;;  %v10153_v36 = vpop.f32.mrf.mxu0 }
 0x437   :  { %v9178_v49 = vmul.f32 -1.442695, %v2452_v13  ;;  %v1544_v13 = vld [vmem:[#allocation10] sm:$0xff]  ;;  %v1543_v44 = vmax.f32 %v1540_v38, 0.0  ;;  %v12240_v36 = vld [vmem:[#allocation5 + $0x30] sm:$0xff] }
 0x439   :  { %11143 = vpow2.f32 %v9178_v49  ;;  %v12248_v49 = vld [vmem:[#allocation5 + $0x20] sm:$0xff] }
 0x43a   :  { %11145 = vtanh.f32 %v2380_v50  ;;  %v12254_v50 = vld [vmem:[#allocation5 + $0x78] sm:$0xff] }
 0x43c   :  { %v11140_v51 = vpop.eup %11139 }
 0x43d   :  { %v11142_v25 = vpop.eup %11141  ;;  %v2230_v37 = vadd.f32 1.0, %v11140_v51  ;;  %v12260_v51 = vld [vmem:[#allocation5 + $0x70] sm:$0xff] }
 0x43e   :  { %v2307_v14 = vadd.f32 1.0, %v11142_v25  ;;  %v12264_v25 = vld [vmem:[#allocation5 + $0x68] sm:$0xff] }
 0x43f   :  { %11147 = vrcp.f32 %v2230_v37 }
 0x440   :  { %11149 = vrcp.f32 %v2307_v14 }
 0x446   :  { %v11144_v18 = vpop.eup %11143 }
 0x447   :  { %v11146_v20 = vpop.eup %11145  ;;  %v2456_v40 = vadd.f32 1.0, %v11144_v18 }
 0x449   :  { %11151 = vrcp.f32 %v2456_v40 }
 0x44c   :  { %v11148_v53 = vpop.eup %11147 }
 0x44d   :  { %v11150_v45 = vpop.eup %11149  ;;  %v2460_v23 = vmul.f32 %v11148_v53, %v11146_v20  ;;  %v12294_v53 = vld [vmem:[#allocation5 + $0x10] sm:$0xff] }
 0x44e   :  { %v2459_v15 = vmul.f32 %v11150_v45, %v12071_v27  ;;  %v1545_v27 = vld [vmem:[#allocation10 + $0x8] sm:$0xff] }
 0x44f   :  { %v12298_v45 = vld [vmem:[#allocation5 + $0x8] sm:$0xff] }
 0x450   :  { %v12215_v42 = vadd.f32 %v2460_v23, %v2459_v15  ;;  %v12302_v23 = vld [vmem:[#allocation5] sm:$0xff] }
 0x452   :  { %11153 = vtanh.f32 %v12215_v42 }
 0x456   :  { %v11152_v52 = vpop.eup %11151 }
 0x45f   :  { %v11154_v8 = vpop.eup %11153 }
 0x460   :  { %v12223_v19 = vmul.f32 %v11154_v8, %v11152_v52  ;;  %v12308_v8 = vld [vmem:[#allocation5 + $0x58] sm:$0xff] }
 0x462   :  { %v2464_v35 = vmax.f32 %v12223_v19, 0.0 }
 0x464   :  { %10163 = vmatmul.mubr.msk.f32.vlgmr.msra.gmra.mxu1 %vm536_vm3, %v2464_v35  ;;  %v12315_v35 = vld [vmem:[#allocation5 + $0x50] sm:$0xff] }
 0x465   :  { %10173 = vmatpush3.msra.mxu1 %v1545_v27  ;;  %10176 = vmatprep.mubr.msk.f32.mxu1 %vm11599_vm2, %v13738_v17  ;;  %13745 = vst [vmem:[#allocation21_spill] sm:$0xff] %v12315_v35 }
 0x466   :  { %10174 = vmatprep.subr.mxu1 %v13738_v17 }
 0x467   :  { %10175 = vmatpush3.msra.mxu1 %v1544_v13  ;;  %v12319_v13 = vld [vmem:[#allocation5 + $0x48] sm:$0xff] }
 0x468   :  { %10190 = vmatprep.subr.mxu1 %v13738_v17  ;;  %10177 = vmatmul.mubr.msk.f32.vlgmr.msra.gmra.mxu1 %vm2542_vm4, %v1543_v44  ;;  %13746 = vst [vmem:[#allocation22_spill] sm:$0xff] %v12319_v13  ;;  %v12323_v44 = vld [vmem:[#allocation5 + $0x40] sm:$0xff] }
 0x469   :  { %10191 = vmatpush3.msra.mxu1 %v12234_v7  ;;  %10198 = vmatprep.mubr.msk.f32.mxu1 %vm11599_vm2, %v13738_v17  ;;  %13747 = vst [vmem:[#allocation23_spill] sm:$0xff] %v12323_v44 }
 0x46a   :  { %10192 = vmatprep.subr.mxu1 %v13738_v17 }
 0x46b   :  { %10193 = vmatpush3.msra.mxu1 %v12240_v36 }
 0x46c   :  { %10194 = vmatprep.subr.mxu1 %v13738_v17 }
 0x46d   :  { %10195 = vmatpush3.msra.mxu1 %v12244_v46 }
 0x46e   :  { %10196 = vmatprep.subr.mxu1 %v13738_v17 }
 0x46f   :  { %10197 = vmatpush3.msra.mxu1 %v12248_v49 }
 0x470   :  { %10199 = vmatmul.mubr.msk.f32.vlgmr.msra.gmra.mxu1 %vm536_vm3, %v12120_v10  ;;  %10212 = vmatprep.subr.mxu1 %v13738_v17 }
 0x471   :  { %10213 = vmatpush3.msra.mxu1 %v12254_v50  ;;  %10220 = vmatprep.mubr.msk.f32.mxu1 %vm11599_vm2, %v13738_v17 }
 0x472   :  { %10214 = vmatprep.subr.mxu1 %v13738_v17 }
 0x473   :  { %10215 = vmatpush3.msra.mxu1 %v12260_v51 }
 0x474   :  { %10216 = vmatprep.subr.mxu1 %v13738_v17 }
 0x475   :  { %10217 = vmatpush3.msra.mxu1 %v12264_v25 }
 0x476   :  { %10218 = vmatprep.subr.mxu1 %v13738_v17 }
 0x477   :  { %10219 = vmatpush3.msra.mxu1 %v11774_v22  ;;  %v2541_v22 = vld [vmem:[#allocation10 + $0x18] sm:$0xff] }
 0x478   :  { %10221 = vmatmul.mubr.msk.f32.vlgmr.msra.gmra.mxu1 %vm536_vm3, %v12120_v10  ;;  %10234 = vmatprep.subr.mxu1 %v13738_v17 }
 0x479   :  { %10235 = vmatpush3.msra.mxu1 %v11794_v24  ;;  %10242 = vmatprep.mubr.msk.f32.mxu1 %vm11599_vm2, %v13738_v17  ;;  %v2540_v24 = vld [vmem:[#allocation10 + $0x10] sm:$0xff] }
 0x47a   :  { %10236 = vmatprep.subr.mxu1 %v13738_v17  ;;  %10166 = vmatpush3.msra.mxu0 %v2541_v22 }
 0x47b   :  { %10237 = vmatpush3.msra.mxu1 %v11802_v26  ;;  %10167 = vmatprep.subr.mxu0 %v13738_v17 }
 0x47c   :  { %10238 = vmatprep.subr.mxu1 %v13738_v17  ;;  %10168 = vmatpush3.msra.mxu0 %v2540_v24 }
 0x47d   :  { %10239 = vmatpush3.msra.mxu1 %v11810_v28  ;;  %10179 = vmatprep.subr.mxu0 %v13738_v17 }
 0x47e   :  { %10240 = vmatprep.subr.mxu1 %v13738_v17 }
 0x47f   :  { %10241 = vmatpush3.msra.mxu1 %v11818_v30  ;;  %v12288_v30 = vld [vmem:[#allocation5 + $0x18] sm:$0xff] }
 0x480   :  { %10256 = vmatprep.subr.mxu1 %v13738_v17 }
 0x524   :  { %v2534_v37 = vpop.f32.mrf.mxu1 }
 0x525   :  { %v2535_v26 = vadd.f32 %v12221_v21, %v2534_v37  ;;  %v12329_v37 = vld [vmem:[#allocation7 + $0x18] sm:$0xff] }
 0x526   :  { %v10164_v14 = vpop.f32.mrf.mxu1  ;;  %13748 = vst [vmem:[#allocation24_spill] sm:$0xff] %v12329_v37 }
 0x527   :  { %v2538_v18 = vmax.f32 %v2535_v26, 0.0  ;;  %v12335_v26 = vld [vmem:[#allocation7 + $0x10] sm:$0xff]  ;;  %v12339_v14 = vld [vmem:[#allocation7 + $0x8] sm:$0xff] }
 0x528   :  { %v12285_v28 = vpop.f32.mrf.mxu1  ;;  %13749 = vst [vmem:[#allocation25_spill] sm:$0xff] %v12335_v26  ;;  %13750 = vst [vmem:[#allocation26_spill] sm:$0xff] %v12339_v14 }
 0x529   :  { %13744 = vst [vmem:[#allocation20_spill] sm:$0xff] %v12285_v28  ;;  %10170 = vmatmul.mubr.msk.f32.vlgmr.msra.gmra.mxu0 %vm2542_vm4, %v2538_v18 }
 0x52a   :  { %10180 = vmatpush3.msra.mxu0 %v12288_v30  ;;  %v10178_v20 = vpop.f32.mrf.mxu1  ;;  %10187 = vmatprep.mubr.msk.f32.mxu0 %vm11599_vm2, %v13738_v17 }
 0x52b   :  { %10181 = vmatprep.subr.mxu0 %v13738_v17 }
 0x52c   :  { %10182 = vmatpush3.msra.mxu0 %v12294_v53 }
 0x52d   :  { %10183 = vmatprep.subr.mxu0 %v13738_v17 }
 0x52e   :  { %10184 = vmatpush3.msra.mxu0 %v12298_v45 }
 0x52f   :  { %10185 = vmatprep.subr.mxu0 %v13738_v17 }
 0x530   :  { %10186 = vmatpush3.msra.mxu0 %v12302_v23  ;;  %v2835_v40 = vpop.f32.mrf.mxu1 }
 0x531   :  { %v2840_v15 = vrot.slane %v2835_v40, 4  ;;  %10188 = vmatmul.mubr.msk.f32.vlgmr.msra.gmra.mxu0 %vm536_vm3, %v12120_v10  ;;  %10201 = vmatprep.subr.mxu0 %v13738_v17  ;;  %v3005_v40 = vrot.slane %v12117_v29, 6 }
 0x532   :  { %v10200_v52 = vpop.f32.mrf.mxu1  ;;  %10202 = vmatpush3.msra.mxu0 %v12308_v8  ;;  %10209 = vmatprep.mubr.msk.f32.mxu0 %vm11599_vm2, %v13738_v17 }
 0x533   :  { %v2842_v38 = vadd.f32 %v2840_v15, %v11846_v48  ;;  %10203 = vmatprep.subr.mxu0 %v13738_v17 }
 0x534   :  { %10204 = vmatpush3.msra.mxu0 %v12315_v35 }
 0x535   :  { %v9185_v27 = vmul.f32 -1.442695, %v2842_v38  ;;  %10205 = vmatprep.subr.mxu0 %v13738_v17 }
 0x536   :  { %10206 = vmatpush3.msra.mxu0 %v12319_v13 }
 0x537   :  { %11155 = vpow2.f32 %v9185_v27  ;;  %10207 = vmatprep.subr.mxu0 %v13738_v17 }
 0x538   :  { %10208 = vmatpush3.msra.mxu0 %v12323_v44  ;;  %v2990_v22 = vpop.f32.mrf.mxu1 }
 0x539   :  { %10210 = vmatmul.mubr.msk.f32.vlgmr.msra.gmra.mxu0 %vm536_vm3, %v12120_v10  ;;  %10223 = vmatprep.subr.mxu0 %v13738_v17  ;;  %v12343_v10 = vld [vmem:[#allocation7] sm:$0xff] }
 0x53a   :  { %v10222_v24 = vpop.f32.mrf.mxu1  ;;  %10224 = vmatpush3.msra.mxu0 %v12329_v37  ;;  %10231 = vmatprep.mubr.msk.f32.mxu0 %vm11599_vm2, %v13738_v17  ;;  %13751 = vst [vmem:[#allocation27_spill] sm:$0xff] %v12343_v10 }
 0x53b   :  { %10225 = vmatprep.subr.mxu0 %v13738_v17 }
 0x53c   :  { %10226 = vmatpush3.msra.mxu0 %v12335_v26 }
 0x53d   :  { %10227 = vmatprep.subr.mxu0 %v13738_v17 }
 0x53e   :  { %10228 = vmatpush3.msra.mxu0 %v12339_v14 }
 0x53f   :  { %10229 = vmatprep.subr.mxu0 %v13738_v17 }
 0x540   :  { %10230 = vmatpush3.msra.mxu0 %v12343_v10  ;;  %v2995_v10 = vrot.slane %v2990_v22, 4 }
 0x541   :  { %10245 = vmatprep.subr.mxu0 %v13738_v17 }
 0x544   :  { %v11156_v18 = vpop.eup %11155 }
 0x545   :  { %v2846_v20 = vadd.f32 1.0, %v11156_v18  ;;  %v2997_v18 = vadd.f32 %v2995_v10, %v11850_v57 }
 0x547   :  { %11157 = vrcp.f32 %v2846_v20  ;;  %v9188_v35 = vmul.f32 -1.442695, %v2997_v18  ;;  %v12370_v18 = vld [vmem:[#allocation7 + $0x50] sm:$0xff] }
 0x554   :  { %v11158_v15 = vpop.eup %11157 }
 0x555   :  { %v3007_v52 = vmul.f32 %v11158_v15, %v3005_v40 }
 0x5e9   :  { %v12348_v38 = vpop.f32.mrf.mxu0 }
 0x5eb   :  { %v10171_v27 = vpop.f32.mrf.mxu0 }
 0x5f1   :  { %v2755_v24 = vpop.f32.mrf.mxu0 }
 0x5f2   :  { %v2760_v28 = vrot.slane %v2755_v24, 4 }
 0x5f3   :  { %v10189_v14 = vpop.f32.mrf.mxu0 }
 0x5f4   :  { %v2762_v26 = vadd.f32 %v2760_v28, %v11844_v47 }
 0x5f6   :  { %v9183_v37 = vmul.f32 -1.442695, %v2762_v26 }
 0x5f8   :  { %11159 = vpow2.f32 %v9183_v37 }
 0x5f9   :  { %v2915_v44 = vpop.f32.mrf.mxu0  ;;  %11161 = vpow2.f32 %v9188_v35  ;;  %v12362_v35 = vld [vmem:[#allocation7 + $0x58] sm:$0xff] }
 0x5fa   :  { %v2920_v20 = vrot.slane %v2915_v44, 4 }
 0x5fb   :  { %v10211_v13 = vpop.f32.mrf.mxu0 }
 0x5fc   :  { %v2922_v29 = vadd.f32 %v2920_v20, %v11853_v63  ;;  %v12373_v20 = vld [vmem:[#allocation7 + $0x70] sm:$0xff] }
 0x5fe   :  { %11163 = vtanh.f32 %v2922_v29  ;;  %v12378_v29 = vld [vmem:[#allocation7 + $0x48] sm:$0xff] }
 0x605   :  { %v11160_v40 = vpop.eup %11159 }
 0x606   :  { %v2766_v15 = vadd.f32 1.0, %v11160_v40  ;;  %v11162_v27 = vpop.eup %11161  ;;  %v12381_v40 = vld [vmem:[#allocation7 + $0x68] sm:$0xff] }
 0x607   :  { %v3001_v28 = vadd.f32 1.0, %v11162_v27 }
 0x608   :  { %11165 = vrcp.f32 %v2766_v15 }
 0x609   :  { %11167 = vrcp.f32 %v3001_v28 }
 0x60b   :  { %v11164_v14 = vpop.eup %11163 }
 0x615   :  { %v11166_v24 = vpop.eup %11165 }
 0x616   :  { %v3008_v26 = vmul.f32 %v11166_v24, %v11164_v14  ;;  %v11168_v13 = vpop.eup %11167 }
 0x618   :  { %v12353_v37 = vadd.f32 %v3008_v26, %v3007_v52  ;;  %v12365_v52 = vld [vmem:[#allocation7 + $0x78] sm:$0xff] }
 0x61a   :  { %11169 = vtanh.f32 %v12353_v37 }
 0x627   :  { %v11170_v44 = vpop.eup %11169 }
 0x628   :  { %v3011_v22 = vmul.f32 %v11170_v44, %v11168_v13 }
 0x62a   :  { %v12356_v10 = vrot.slane %v3011_v22, 4 }
 0x62c   :  { %10232 = vmatmul.mubr.msk.f32.vlgmr.msra.gmra.mxu0 %vm536_vm3, %v12356_v10  ;;  %10243 = vmatmul.mubr.msk.f32.vlgmr.msra.gmra.mxu1 %vm536_vm3, %v12356_v10 }
 0x62d   :  { %10246 = vmatpush3.msra.mxu0 %v12362_v35  ;;  %10257 = vmatpush3.msra.mxu1 %v12365_v52 }
 0x62e   :  { %10247 = vmatprep.subr.mxu0 %v13738_v17  ;;  %10258 = vmatprep.subr.mxu1 %v13738_v17 }
 0x62f   :  { %10248 = vmatpush3.msra.mxu0 %v12370_v18  ;;  %10259 = vmatpush3.msra.mxu1 %v12373_v20 }
 0x630   :  { %10249 = vmatprep.subr.mxu0 %v13738_v17  ;;  %10260 = vmatprep.subr.mxu1 %v13738_v17 }
 0x631   :  { %10250 = vmatpush3.msra.mxu0 %v12378_v29  ;;  %10261 = vmatpush3.msra.mxu1 %v12381_v40 }
 0x632   :  { %10251 = vmatprep.subr.mxu0 %v13738_v17  ;;  %10262 = vmatprep.subr.mxu1 %v13738_v17 }
 0x633   :  { %10252 = vmatpush3.msra.mxu0 %v11885_v54  ;;  %10253 = vmatprep.mubr.msk.f32.mxu0 %vm11599_vm2, %v13738_v17 }
 0x634   :  { %10263 = vmatpush3.msra.mxu1 %v11889_v55  ;;  %10264 = vmatprep.mubr.msk.f32.mxu1 %vm11599_vm2, %v13738_v17 }
 0x635   :  { %10254 = vmatmul.mubr.msk.f32.vlgmr.msra.gmra.mxu0 %vm536_vm3, %v12356_v10  ;;  %10265 = vmatmul.mubr.msk.f32.vlgmr.msra.gmra.mxu1 %vm536_vm3, %v12356_v10 }
 0x636   :  { %10267 = vmatprep.subr.mxu0 %v13738_v17  ;;  %10278 = vmatprep.subr.mxu1 %v13738_v17 }
 0x637   :  { %10268 = vmatpush3.msra.mxu0 %v11899_v56  ;;  %10279 = vmatpush3.msra.mxu1 %v11901_v58 }
 0x638   :  { %10269 = vmatprep.subr.mxu0 %v13738_v17  ;;  %10280 = vmatprep.subr.mxu1 %v13738_v17 }
 0x639   :  { %10270 = vmatpush3.msra.mxu0 %v11909_v59  ;;  %10281 = vmatpush3.msra.mxu1 %v11911_v60 }
 0x63a   :  { %10271 = vmatprep.subr.mxu0 %v13738_v17  ;;  %10282 = vmatprep.subr.mxu1 %v13738_v17 }
 0x63b   :  { %10272 = vmatpush3.msra.mxu0 %v11917_v61  ;;  %10283 = vmatpush3.msra.mxu1 %v11919_v62 }
 0x63c   :  { %10273 = vmatprep.subr.mxu0 %v13738_v17  ;;  %10284 = vmatprep.subr.mxu1 %v13738_v17 }
 0x63d   :  { %10274 = vmatpush3.msra.mxu0 %v11925_v0  ;;  %10275 = vmatprep.mubr.msk.f32.mxu0 %vm11599_vm2, %v13738_v17 }
 0x63e   :  { %10285 = vmatpush3.msra.mxu1 %v11929_v1  ;;  %10286 = vmatprep.mubr.msk.f32.mxu1 %vm11599_vm2, %v13738_v17 }
 0x63f   :  { %10276 = vmatmul.mubr.msk.f32.vlgmr.msra.gmra.mxu0 %vm536_vm3, %v12223_v19  ;;  %10287 = vmatmul.mubr.msk.f32.vlgmr.msra.gmra.mxu1 %vm536_vm3, %v12223_v19 }
 0x640   :  { %10289 = vmatprep.subr.mxu0 %v13738_v17  ;;  %10300 = vmatprep.subr.mxu1 %v13738_v17 }
 0x641   :  { %10290 = vmatpush3.msra.mxu0 %v11939_v2  ;;  %10301 = vmatpush3.msra.mxu1 %v11941_v3 }
 0x642   :  { %10291 = vmatprep.subr.mxu0 %v13738_v17  ;;  %10302 = vmatprep.subr.mxu1 %v13738_v17 }
 0x643   :  { %10292 = vmatpush3.msra.mxu0 %v11947_v4  ;;  %10303 = vmatpush3.msra.mxu1 %v11949_v5 }
 0x644   :  { %10293 = vmatprep.subr.mxu0 %v13738_v17  ;;  %10304 = vmatprep.subr.mxu1 %v13738_v17 }
 0x645   :  { %10294 = vmatpush3.msra.mxu0 %v11955_v31  ;;  %10305 = vmatpush3.msra.mxu1 %v11957_v32 }
 0x646   :  { %10295 = vmatprep.subr.mxu0 %v13738_v17  ;;  %10306 = vmatprep.subr.mxu1 %v13738_v17 }
 0x647   :  { %10296 = vmatpush3.msra.mxu0 %v11963_v33  ;;  %10297 = vmatprep.mubr.msk.f32.mxu0 %vm11599_vm2, %v13738_v17 }
 0x648   :  { %10307 = vmatpush3.msra.mxu1 %v11967_v34  ;;  %10308 = vmatprep.mubr.msk.f32.mxu1 %vm11599_vm2, %v13738_v17 }
 0x649   :  { %10298 = vmatmul.mubr.msk.f32.vlgmr.msra.gmra.mxu0 %vm536_vm3, %v12223_v19  ;;  %10309 = vmatmul.mubr.msk.f32.vlgmr.msra.gmra.mxu1 %vm536_vm3, %v12223_v19 }
 0x64a   :  { %10311 = vmatprep.subr.mxu0 %v13738_v17  ;;  %10319 = vmatprep.mubr.msk.f32.mxu0 %vm11599_vm2, %v13738_v17 }
 0x64b   :  { %10312 = vmatpush3.msra.mxu0 %v12020_v6  ;;  %10322 = vmatprep.subr.mxu1 %v13738_v17 }
 0x64c   :  { %10313 = vmatprep.subr.mxu0 %v13738_v17  ;;  %10326 = vmatprep.mubr.msk.f32.mxu1 %vm11599_vm2, %v13738_v17 }
 0x64d   :  { %10314 = vmatpush3.msra.mxu0 %v12027_v9 }
 0x64e   :  { %10315 = vmatprep.subr.mxu0 %v13738_v17 }
 0x64f   :  { %10316 = vmatpush3.msra.mxu0 %v12034_v11 }
 0x650   :  { %10317 = vmatprep.subr.mxu0 %v13738_v17 }
 0x651   :  { %10318 = vmatpush3.msra.mxu0 %v13739_v39 }
 0x652   :  { %10340 = vmatprep.subr.mxu0 %v13738_v17 }
 0x6ec   :  { %v3082_v54 = vpop.f32.mrf.mxu0  ;;  %v3152_v55 = vpop.f32.mrf.mxu1 }
 0x6ed   :  { %v3083_v0 = vadd.f32 %v13740_v12, %v3082_v54  ;;  %v3153_v1 = vadd.f32 %v13741_v16, %v3152_v55 }
 0x6ee   :  { %v10233_v56 = vpop.f32.mrf.mxu0  ;;  %v10244_v58 = vpop.f32.mrf.mxu1 }
 0x6f5   :  { %v3222_v59 = vpop.f32.mrf.mxu0  ;;  %v3292_v60 = vpop.f32.mrf.mxu1 }
 0x6f6   :  { %v3293_v6 = vadd.f32 %v13742_v43, %v3292_v60  ;;  %v3223_v12 = vadd.f32 %v13743_v41, %v3222_v59 }
 0x6f7   :  { %v10255_v61 = vpop.f32.mrf.mxu0  ;;  %v10266_v62 = vpop.f32.mrf.mxu1 }
 0x6f8   :  { %v12496_v62 = vld [vmem:[#allocation7 + $0x38] sm:$0xff] }
 0x6ff   :  { %v3365_v2 = vpop.f32.mrf.mxu0  ;;  %v3442_v3 = vpop.f32.mrf.mxu1 }
 0x700   :  { %v3369_v4 = vadd.f32 %v3365_v2, %v3083_v0  ;;  %v3446_v5 = vadd.f32 %v3442_v3, %v3153_v1  ;;  %v12502_v0 = vld [vmem:[#allocation7 + $0x30] sm:$0xff]  ;;  %v12506_v1 = vld [vmem:[#allocation7 + $0x28] sm:$0xff]  ;;  %v12510_v2 = vld [vmem:[#allocation7 + $0x20] sm:$0xff] }
 0x701   :  { %v10277_v31 = vpop.f32.mrf.mxu0  ;;  %v10288_v32 = vpop.f32.mrf.mxu1  ;;  %v3684_v3 = vld [vmem:[#allocation10 + $0x28] sm:$0xff] }
 0x702   :  { %v9194_v33 = vmul.f32 -1.442695, %v3369_v4  ;;  %v9196_v34 = vmul.f32 -1.442695, %v3446_v5  ;;  %10323 = vmatpush3.msra.mxu1 %v3684_v3  ;;  %v3683_v4 = vld [vmem:[#allocation10 + $0x20] sm:$0xff] }
 0x703   :  { %10324 = vmatprep.subr.mxu1 %v13738_v17 }
 0x704   :  { %11171 = vpow2.f32 %v9194_v33  ;;  %10325 = vmatpush3.msra.mxu1 %v3683_v4 }
 0x705   :  { %11173 = vpow2.f32 %v9196_v34  ;;  %10329 = vmatprep.subr.mxu1 %v13738_v17 }
 0x709   :  { %v3519_v9 = vpop.f32.mrf.mxu0  ;;  %v3591_v11 = vpop.f32.mrf.mxu1 }
 0x70a   :  { %v3595_v39 = vadd.f32 %v3591_v11, %v3293_v6  ;;  %v3523_v27 = vadd.f32 %v3519_v9, %v3223_v12  ;;  %v13754_v12 = vld [vmem:[#allocation23_spill] sm:$0xff] }
 0x70b   :  { %v10299_v19 = vpop.f32.mrf.mxu0  ;;  %v10310_v15 = vpop.f32.mrf.mxu1 }
 0x70c   :  { %v9199_v16 = vmul.f32 -1.442695, %v3595_v39  ;;  %v13752_v39 = vld [vmem:[#allocation21_spill] sm:$0xff]  ;;  %v13753_v19 = vld [vmem:[#allocation22_spill] sm:$0xff] }
 0x70e   :  { %11175 = vpow2.f32 %v9199_v16  ;;  %v13755_v16 = vld [vmem:[#allocation24_spill] sm:$0xff] }
 0x70f   :  { %11177 = vtanh.f32 %v3523_v27  ;;  %v13756_v27 = vld [vmem:[#allocation25_spill] sm:$0xff] }
 0x711   :  { %v11172_v14 = vpop.eup %11171 }
 0x712   :  { %v11174_v24 = vpop.eup %11173  ;;  %v3373_v28 = vadd.f32 1.0, %v11172_v14  ;;  %v13757_v14 = vld [vmem:[#allocation26_spill] sm:$0xff] }
 0x713   :  { %v3450_v26 = vadd.f32 1.0, %v11174_v24 }
 0x714   :  { %11179 = vrcp.f32 %v3373_v28  ;;  %v13758_v28 = vld [vmem:[#allocation27_spill] sm:$0xff] }
 0x715   :  { %11181 = vrcp.f32 %v3450_v26  ;;  %v4075_v26 = vrot.slane %v12353_v37, 6 }
 0x71b   :  { %v11176_v13 = vpop.eup %11175 }
 0x71c   :  { %v11178_v44 = vpop.eup %11177  ;;  %v3599_v55 = vadd.f32 1.0, %v11176_v13 }
 0x71e   :  { %11183 = vrcp.f32 %v3599_v55 }
 0x721   :  { %v11180_v43 = vpop.eup %11179 }
 0x722   :  { %v11182_v22 = vpop.eup %11181  ;;  %v3603_v54 = vmul.f32 %v11180_v43, %v11178_v44  ;;  %v13759_v43 = vld [vmem:[#allocation20_spill] sm:$0xff] }
 0x723   :  { %v3602_v56 = vmul.f32 %v11182_v22, %v12215_v42  ;;  %v12490_v42 = vld [vmem:[#allocation5 + $0x60] sm:$0xff]  ;;  %v2686_v22 = vadd.f32 %v13759_v43, %v12348_v38  ;;  %v12598_v43 = vld [vmem:[#allocation8 + $0x18] sm:$0xff] }
 0x725   :  { %v12463_v58 = vadd.f32 %v3603_v54, %v3602_v56 }
 0x727   :  { %11185 = vtanh.f32 %v12463_v58 }
 0x72b   :  { %v11184_v41 = vpop.eup %11183 }
 0x734   :  { %v11186_v59 = vpop.eup %11185 }
 0x735   :  { %v12466_v60 = vmul.f32 %v11186_v59, %v11184_v41 }
 0x737   :  { %v3607_v61 = vmax.f32 %v12466_v60, 0.0 }
 0x739   :  { %10320 = vmatmul.mubr.msk.f32.vlgmr.msra.gmra.mxu0 %vm536_vm3, %v3607_v61 }
 0x73a   :  { %10341 = vmatpush3.msra.mxu0 %v12234_v7  ;;  %10348 = vmatprep.mubr.msk.f32.mxu0 %vm11599_vm2, %v13738_v17 }
 0x73b   :  { %10342 = vmatprep.subr.mxu0 %v13738_v17 }
 0x73c   :  { %10343 = vmatpush3.msra.mxu0 %v12240_v36 }
 0x73d   :  { %10344 = vmatprep.subr.mxu0 %v13738_v17 }
 0x73e   :  { %10345 = vmatpush3.msra.mxu0 %v12244_v46 }
 0x73f   :  { %10346 = vmatprep.subr.mxu0 %v13738_v17 }
 0x740   :  { %10347 = vmatpush3.msra.mxu0 %v12248_v49 }
 0x741   :  { %10349 = vmatmul.mubr.msk.f32.vlgmr.msra.gmra.mxu0 %vm536_vm3, %v12356_v10  ;;  %10362 = vmatprep.subr.mxu0 %v13738_v17 }
 0x742   :  { %10363 = vmatpush3.msra.mxu0 %v12254_v50  ;;  %10370 = vmatprep.mubr.msk.f32.mxu0 %vm11599_vm2, %v13738_v17 }
 0x743   :  { %10364 = vmatprep.subr.mxu0 %v13738_v17 }
 0x744   :  { %10365 = vmatpush3.msra.mxu0 %v12260_v51 }
 0x745   :  { %10366 = vmatprep.subr.mxu0 %v13738_v17 }
 0x746   :  { %10367 = vmatpush3.msra.mxu0 %v12264_v25 }
 0x747   :  { %10368 = vmatprep.subr.mxu0 %v13738_v17 }
 0x748   :  { %10369 = vmatpush3.msra.mxu0 %v12490_v42 }
 0x749   :  { %10371 = vmatmul.mubr.msk.f32.vlgmr.msra.gmra.mxu0 %vm536_vm3, %v12356_v10  ;;  %10384 = vmatprep.subr.mxu0 %v13738_v17 }
 0x74a   :  { %10385 = vmatpush3.msra.mxu0 %v12496_v62  ;;  %10392 = vmatprep.mubr.msk.f32.mxu0 %vm11599_vm2, %v13738_v17 }
 0x74b   :  { %10386 = vmatprep.subr.mxu0 %v13738_v17 }
 0x74c   :  { %10387 = vmatpush3.msra.mxu0 %v12502_v0 }
 0x74d   :  { %10388 = vmatprep.subr.mxu0 %v13738_v17 }
 0x74e   :  { %10389 = vmatpush3.msra.mxu0 %v12506_v1 }
 0x74f   :  { %10390 = vmatprep.subr.mxu0 %v13738_v17 }
 0x750   :  { %10391 = vmatpush3.msra.mxu0 %v12510_v2 }
 0x751   :  { %10406 = vmatprep.subr.mxu0 %v13738_v17 }
 0x7f9   :  { %v3677_v5 = vpop.f32.mrf.mxu0 }
 0x7fa   :  { %v3678_v31 = vadd.f32 %v12221_v21, %v3677_v5 }
 0x7fb   :  { %v10321_v32 = vpop.f32.mrf.mxu0 }
 0x7fc   :  { %v3681_v33 = vmax.f32 %v3678_v31, 0.0 }
 0x7fe   :  { %10327 = vmatmul.mubr.msk.f32.vlgmr.msra.gmra.mxu1 %vm2542_vm4, %v3681_v33 }
 0x7ff   :  { %10330 = vmatpush3.msra.mxu1 %v12288_v30  ;;  %10337 = vmatprep.mubr.msk.f32.mxu1 %vm11599_vm2, %v13738_v17 }
 0x800   :  { %10331 = vmatprep.subr.mxu1 %v13738_v17 }
 0x801   :  { %10332 = vmatpush3.msra.mxu1 %v12294_v53  ;;  %v3905_v34 = vpop.f32.mrf.mxu0 }
 0x802   :  { %v3910_v6 = vrot.slane %v3905_v34, 2  ;;  %10333 = vmatprep.subr.mxu1 %v13738_v17 }
 0x803   :  { %10334 = vmatpush3.msra.mxu1 %v12298_v45  ;;  %v10350_v21 = vpop.f32.mrf.mxu0 }
 0x804   :  { %v3912_v9 = vadd.f32 %v3910_v6, %v11846_v48  ;;  %10335 = vmatprep.subr.mxu1 %v13738_v17 }
 0x805   :  { %10336 = vmatpush3.msra.mxu1 %v12302_v23 }
 0x806   :  { %v9205_v11 = vmul.f32 -1.442695, %v3912_v9  ;;  %10338 = vmatmul.mubr.msk.f32.vlgmr.msra.gmra.mxu1 %vm536_vm3, %v12356_v10  ;;  %10351 = vmatprep.subr.mxu1 %v13738_v17 }
 0x807   :  { %10352 = vmatpush3.msra.mxu1 %v12308_v8  ;;  %10359 = vmatprep.mubr.msk.f32.mxu1 %vm11599_vm2, %v13738_v17 }
 0x808   :  { %11187 = vpow2.f32 %v9205_v11  ;;  %10353 = vmatprep.subr.mxu1 %v13738_v17 }
 0x809   :  { %10354 = vmatpush3.msra.mxu1 %v13752_v39  ;;  %v4060_v48 = vpop.f32.mrf.mxu0 }
 0x80a   :  { %10355 = vmatprep.subr.mxu1 %v13738_v17  ;;  %v4065_v5 = vrot.slane %v4060_v48, 2 }
 0x80b   :  { %10356 = vmatpush3.msra.mxu1 %v13753_v19  ;;  %v10372_v15 = vpop.f32.mrf.mxu0 }
 0x80c   :  { %10357 = vmatprep.subr.mxu1 %v13738_v17  ;;  %v4067_v37 = vadd.f32 %v4065_v5, %v11850_v57  ;;  %v12641_v5 = vld [vmem:[#allocation8 + $0x78] sm:$0xff] }
 0x80d   :  { %10358 = vmatpush3.msra.mxu1 %v13754_v12  ;;  %13761 = vst [vmem:[#allocation22_spill] sm:$0xff] %v12641_v5 }
 0x80e   :  { %10360 = vmatmul.mubr.msk.f32.vlgmr.msra.gmra.mxu1 %vm536_vm3, %v12356_v10  ;;  %10373 = vmatprep.subr.mxu1 %v13738_v17  ;;  %v9208_v34 = vmul.f32 -1.442695, %v4067_v37  ;;  %v12654_v37 = vld [vmem:[#allocation8 + $0x48] sm:$0xff] }
 0x80f   :  { %10374 = vmatpush3.msra.mxu1 %v13755_v16  ;;  %10381 = vmatprep.mubr.msk.f32.mxu1 %vm11599_vm2, %v13738_v17  ;;  %13764 = vst [vmem:[#allocation25_spill] sm:$0xff] %v12654_v37 }
 0x810   :  { %10375 = vmatprep.subr.mxu1 %v13738_v17 }
 0x811   :  { %10376 = vmatpush3.msra.mxu1 %v13756_v27 }
 0x812   :  { %10377 = vmatprep.subr.mxu1 %v13738_v17 }
 0x813   :  { %10378 = vmatpush3.msra.mxu1 %v13757_v14 }
 0x814   :  { %10379 = vmatprep.subr.mxu1 %v13738_v17 }
 0x815   :  { %v11188_v24 = vpop.eup %11187  ;;  %10380 = vmatpush3.msra.mxu1 %v13758_v28 }
 0x816   :  { %v3916_v10 = vadd.f32 1.0, %v11188_v24  ;;  %10395 = vmatprep.subr.mxu1 %v13738_v17 }
 0x818   :  { %11189 = vrcp.f32 %v3916_v10 }
 0x825   :  { %v11190_v13 = vpop.eup %11189 }
 0x826   :  { %v4077_v44 = vmul.f32 %v11190_v13, %v4075_v26 }
 0x8be   :  { %v3754_v54 = vpop.f32.mrf.mxu1 }
 0x8bf   :  { %v12556_v55 = vadd.f32 %v3754_v54, %v2686_v22  ;;  %v12601_v22 = vld [vmem:[#allocation8 + $0x38] sm:$0xff]  ;;  %v12606_v54 = vld [vmem:[#allocation8 + $0x10] sm:$0xff] }
 0x8c0   :  { %v10328_v56 = vpop.f32.mrf.mxu1 }
 0x8c1   :  { %v12609_v56 = vld [vmem:[#allocation8 + $0x30] sm:$0xff] }
 0x8c6   :  { %v3825_v41 = vpop.f32.mrf.mxu1 }
 0x8c7   :  { %v3830_v59 = vrot.slane %v3825_v41, 2  ;;  %v12614_v41 = vld [vmem:[#allocation8 + $0x8] sm:$0xff] }
 0x8c8   :  { %v10339_v61 = vpop.f32.mrf.mxu1 }
 0x8c9   :  { %v3832_v3 = vadd.f32 %v3830_v59, %v11844_v47  ;;  %v12617_v59 = vld [vmem:[#allocation8 + $0x28] sm:$0xff]  ;;  %v12622_v61 = vld [vmem:[#allocation8] sm:$0xff] }
 0x8cb   :  { %v9203_v4 = vmul.f32 -1.442695, %v3832_v3  ;;  %v12627_v3 = vld [vmem:[#allocation8 + $0x20] sm:$0xff] }
 0x8cd   :  { %11191 = vpow2.f32 %v9203_v4  ;;  %v12638_v4 = vld [vmem:[#allocation8 + $0x58] sm:$0xff] }
 0x8ce   :  { %v3985_v31 = vpop.f32.mrf.mxu1  ;;  %11193 = vpow2.f32 %v9208_v34  ;;  %13760 = vst [vmem:[#allocation21_spill] sm:$0xff] %v12638_v4  ;;  %v12662_v34 = vld [vmem:[#allocation8 + $0x40] sm:$0xff] }
 0x8cf   :  { %v3990_v33 = vrot.slane %v3985_v31, 2  ;;  %v12646_v31 = vld [vmem:[#allocation8 + $0x50] sm:$0xff]  ;;  %13766 = vst [vmem:[#allocation27_spill] sm:$0xff] %v12662_v34 }
 0x8d0   :  { %v10361_v32 = vpop.f32.mrf.mxu1  ;;  %13762 = vst [vmem:[#allocation23_spill] sm:$0xff] %v12646_v31 }
 0x8d1   :  { %v3992_v38 = vadd.f32 %v3990_v33, %v11853_v63  ;;  %v12582_v63 = vld [vmem:[#allocation7 + $0x40] sm:$0xff]  ;;  %v12649_v32 = vld [vmem:[#allocation8 + $0x70] sm:$0xff]  ;;  %v12657_v33 = vld [vmem:[#allocation8 + $0x68] sm:$0xff] }
 0x8d2   :  { %13763 = vst [vmem:[#allocation24_spill] sm:$0xff] %v12649_v32  ;;  %13765 = vst [vmem:[#allocation26_spill] sm:$0xff] %v12657_v33 }
 0x8d3   :  { %11195 = vtanh.f32 %v3992_v38  ;;  %v12667_v38 = vld [vmem:[#allocation8 + $0x60] sm:$0xff] }
 0x8d4   :  { %13767 = vst [vmem:[#allocation20_spill] sm:$0xff] %v12667_v38 }
 0x8da   :  { %v11192_v6 = vpop.eup %11191 }
 0x8db   :  { %v3836_v21 = vadd.f32 1.0, %v11192_v6  ;;  %v11194_v9 = vpop.eup %11193  ;;  %v12682_v6 = vld [vmem:[%s13629_s7 + $0x18] sm:$0xff] }
 0x8dc   :  { %v4071_v47 = vadd.f32 1.0, %v11194_v9  ;;  %13768 = vst [vmem:[#allocation28_spill] sm:$0xff] %v12682_v6  ;;  %v12706_v9 = vld [vmem:[%s13629_s7] sm:$0xff] }
 0x8dd   :  { %11197 = vrcp.f32 %v3836_v21  ;;  %v12699_v21 = vld [vmem:[%s13629_s7 + $0x8] sm:$0xff]  ;;  %13771 = vst [vmem:[#allocation31_spill] sm:$0xff] %v12706_v9 }
 0x8de   :  { %11199 = vrcp.f32 %v4071_v47  ;;  %13770 = vst [vmem:[#allocation30_spill] sm:$0xff] %v12699_v21 }
 0x8e0   :  { %v11196_v11 = vpop.eup %11195 }
 0x8ea   :  { %v11198_v15 = vpop.eup %11197 }
 0x8eb   :  { %v4078_v24 = vmul.f32 %v11198_v15, %v11196_v11  ;;  %v11200_v57 = vpop.eup %11199 }
 0x8ed   :  { %v12561_v10 = vadd.f32 %v4078_v24, %v4077_v44  ;;  %v12587_v44 = vld [vmem:[#allocation7 + $0x60] sm:$0xff] }
 0x8ef   :  { %11201 = vtanh.f32 %v12561_v10 }
 0x8fc   :  { %v11202_v48 = vpop.eup %11201 }
 0x8fd   :  { %v4081_v26 = vmul.f32 %v11202_v48, %v11200_v57 }
 0x8ff   :  { %v12564_v13 = vrot.slane %v4081_v26, 6 }
 0x901   :  { %10382 = vmatmul.mubr.msk.f32.vlgmr.msra.gmra.mxu1 %vm536_vm3, %v12564_v13  ;;  %10393 = vmatmul.mubr.msk.f32.vlgmr.msra.gmra.mxu0 %vm536_vm3, %v12564_v13 }
 0x902   :  { %10396 = vmatpush3.msra.mxu1 %v12362_v35  ;;  %10407 = vmatpush3.msra.mxu0 %v12365_v52 }
 0x903   :  { %10397 = vmatprep.subr.mxu1 %v13738_v17  ;;  %10408 = vmatprep.subr.mxu0 %v13738_v17 }
 0x904   :  { %10398 = vmatpush3.msra.mxu1 %v12370_v18  ;;  %10409 = vmatpush3.msra.mxu0 %v12373_v20 }
 0x905   :  { %10399 = vmatprep.subr.mxu1 %v13738_v17  ;;  %10410 = vmatprep.subr.mxu0 %v13738_v17 }
 0x906   :  { %10400 = vmatpush3.msra.mxu1 %v12378_v29  ;;  %10411 = vmatpush3.msra.mxu0 %v12381_v40 }
 0x907   :  { %10401 = vmatprep.subr.mxu1 %v13738_v17  ;;  %10412 = vmatprep.subr.mxu0 %v13738_v17 }
 0x908   :  { %10402 = vmatpush3.msra.mxu1 %v12582_v63  ;;  %10403 = vmatprep.mubr.msk.f32.mxu1 %vm11599_vm2, %v13738_v17 }
 0x909   :  { %10413 = vmatpush3.msra.mxu0 %v12587_v44  ;;  %10414 = vmatprep.mubr.msk.f32.mxu0 %vm11599_vm2, %v13738_v17 }
 0x90a   :  { %10404 = vmatmul.mubr.msk.f32.vlgmr.msra.gmra.mxu1 %vm536_vm3, %v12564_v13  ;;  %10415 = vmatmul.mubr.msk.f32.vlgmr.msra.gmra.mxu0 %vm536_vm3, %v12564_v13 }
 0x90b   :  { %10417 = vmatprep.subr.mxu1 %v13738_v17  ;;  %10428 = vmatprep.subr.mxu0 %v13738_v17 }
 0x90c   :  { %10418 = vmatpush3.msra.mxu1 %v12598_v43  ;;  %10429 = vmatpush3.msra.mxu0 %v12601_v22 }
 0x90d   :  { %10419 = vmatprep.subr.mxu1 %v13738_v17  ;;  %10430 = vmatprep.subr.mxu0 %v13738_v17 }
 0x90e   :  { %10420 = vmatpush3.msra.mxu1 %v12606_v54  ;;  %10431 = vmatpush3.msra.mxu0 %v12609_v56 }
 0x90f   :  { %10421 = vmatprep.subr.mxu1 %v13738_v17  ;;  %10432 = vmatprep.subr.mxu0 %v13738_v17 }
 0x910   :  { %10422 = vmatpush3.msra.mxu1 %v12614_v41  ;;  %10433 = vmatpush3.msra.mxu0 %v12617_v59 }
 0x911   :  { %10423 = vmatprep.subr.mxu1 %v13738_v17  ;;  %10434 = vmatprep.subr.mxu0 %v13738_v17 }
 0x912   :  { %10424 = vmatpush3.msra.mxu1 %v12622_v61  ;;  %10425 = vmatprep.mubr.msk.f32.mxu1 %vm11599_vm2, %v13738_v17 }
 0x913   :  { %10435 = vmatpush3.msra.mxu0 %v12627_v3  ;;  %10436 = vmatprep.mubr.msk.f32.mxu0 %vm11599_vm2, %v13738_v17 }
 0x914   :  { %10426 = vmatmul.mubr.msk.f32.vlgmr.msra.gmra.mxu1 %vm536_vm3, %v12466_v60  ;;  %10437 = vmatmul.mubr.msk.f32.vlgmr.msra.gmra.mxu0 %vm536_vm3, %v12466_v60 }
 0x915   :  { %10439 = vmatprep.subr.mxu1 %v13738_v17  ;;  %10450 = vmatprep.subr.mxu0 %v13738_v17 }
 0x916   :  { %10440 = vmatpush3.msra.mxu1 %v12638_v4  ;;  %10451 = vmatpush3.msra.mxu0 %v12641_v5 }
 0x917   :  { %10441 = vmatprep.subr.mxu1 %v13738_v17  ;;  %10452 = vmatprep.subr.mxu0 %v13738_v17 }
 0x918   :  { %10442 = vmatpush3.msra.mxu1 %v12646_v31  ;;  %10453 = vmatpush3.msra.mxu0 %v12649_v32 }
 0x919   :  { %10443 = vmatprep.subr.mxu1 %v13738_v17  ;;  %10454 = vmatprep.subr.mxu0 %v13738_v17 }
 0x91a   :  { %10444 = vmatpush3.msra.mxu1 %v12654_v37  ;;  %10455 = vmatpush3.msra.mxu0 %v12657_v33 }
 0x91b   :  { %10445 = vmatprep.subr.mxu1 %v13738_v17  ;;  %10456 = vmatprep.subr.mxu0 %v13738_v17 }
 0x91c   :  { %10446 = vmatpush3.msra.mxu1 %v12662_v34  ;;  %10447 = vmatprep.mubr.msk.f32.mxu1 %vm11599_vm2, %v13738_v17 }
 0x91d   :  { %10457 = vmatpush3.msra.mxu0 %v12667_v38  ;;  %10458 = vmatprep.mubr.msk.f32.mxu0 %vm11599_vm2, %v13738_v17 }
 0x91e   :  { %10448 = vmatmul.mubr.msk.f32.vlgmr.msra.gmra.mxu1 %vm536_vm3, %v12466_v60  ;;  %10459 = vmatmul.mubr.msk.f32.vlgmr.msra.gmra.mxu0 %vm536_vm3, %v12466_v60  ;;  %v12692_v60 = vld [vmem:[%s13629_s7 + $0x10] sm:$0xff] }
 0x91f   :  { %10461 = vmatprep.subr.mxu1 %v13738_v17  ;;  %10469 = vmatprep.mubr.msk.f32.mxu1 %vm11599_vm2, %v13738_v17  ;;  %13769 = vst [vmem:[#allocation29_spill] sm:$0xff] %v12692_v60 }
 0x920   :  { %10462 = vmatpush3.msra.mxu1 %v12682_v6  ;;  %10472 = vmatprep.subr.mxu0 %v13738_v17 }
 0x921   :  { %10463 = vmatprep.subr.mxu1 %v13738_v17  ;;  %10476 = vmatprep.mubr.msk.f32.mxu0 %vm11599_vm2, %v13738_v17 }
 0x922   :  { %10464 = vmatpush3.msra.mxu1 %v12692_v60 }
 0x923   :  { %10465 = vmatprep.subr.mxu1 %v13738_v17 }
 0x924   :  { %10466 = vmatpush3.msra.mxu1 %v12699_v21  ;;  %v12713_v21 = vld [vmem:[%s13628_s6] ss:$0 sm:$0xff] }
 0x925   :  { %10467 = vmatprep.subr.mxu1 %v13738_v17  ;;  %13772 = vst [vmem:[#allocation32_spill] sm:$0xff] %v12713_v21 }
 0x926   :  { %10468 = vmatpush3.msra.mxu1 %v12706_v9  ;;  %v12719_v9 = vld [vmem:[%s13628_s6 + $0x1] ss:$0 sm:$0xff] }
 0x927   :  { %10490 = vmatprep.subr.mxu1 %v13738_v17  ;;  %13773 = vst [vmem:[#allocation33_spill] sm:$0xff] %v12719_v9 }
 0x9c1   :  { %v4152_v11 = vpop.f32.mrf.mxu1  ;;  %v4222_v15 = vpop.f32.mrf.mxu0 }
 0x9c2   :  { %v4153_v6 = vadd.f32 %v12713_v21, %v4152_v11  ;;  %v4223_v38 = vadd.f32 %v12719_v9, %v4222_v15  ;;  %v12725_v11 = vld [vmem:[%s13628_s6 + $0x3] ss:$0 sm:$0xff] }
 0x9c3   :  { %v10383_v47 = vpop.f32.mrf.mxu1  ;;  %v10394_v24 = vpop.f32.mrf.mxu0  ;;  %13774 = vst [vmem:[#allocation34_spill] sm:$0xff] %v12725_v11 }
 0x9ca   :  { %v4292_v57 = vpop.f32.mrf.mxu1  ;;  %v4362_v48 = vpop.f32.mrf.mxu0 }
 0x9cb   :  { %v4363_v21 = vadd.f32 %v12725_v11, %v4362_v48 }
 0x9cc   :  { %v10405_v26 = vpop.f32.mrf.mxu1  ;;  %v10416_v60 = vpop.f32.mrf.mxu0 }
 0x9d4   :  { %v4435_v47 = vpop.f32.mrf.mxu1  ;;  %v4512_v24 = vpop.f32.mrf.mxu0 }
 0x9d5   :  { %v4439_v34 = vadd.f32 %v4435_v47, %v4153_v6  ;;  %v4516_v33 = vadd.f32 %v4512_v24, %v4223_v38  ;;  %v12731_v38 = vld [vmem:[%s13628_s6 + $0x2] ss:$0 sm:$0xff] }
 0x9d6   :  { %v10427_v26 = vpop.f32.mrf.mxu1  ;;  %v10438_v60 = vpop.f32.mrf.mxu0 }
 0x9d7   :  { %v9214_v37 = vmul.f32 -1.442695, %v4439_v34  ;;  %v9216_v32 = vmul.f32 -1.442695, %v4516_v33 }
 0x9d9   :  { %11203 = vpow2.f32 %v9214_v37  ;;  %v4293_v37 = vadd.f32 %v12731_v38, %v4292_v57 }
 0x9da   :  { %11205 = vpow2.f32 %v9216_v32 }
 0x9de   :  { %v4589_v31 = vpop.f32.mrf.mxu1  ;;  %v4661_v5 = vpop.f32.mrf.mxu0 }
 0x9df   :  { %v4665_v15 = vadd.f32 %v4661_v5, %v4363_v21  ;;  %v4593_v33 = vadd.f32 %v4589_v31, %v4293_v37 }
 0x9e0   :  { %v10449_v9 = vpop.f32.mrf.mxu1  ;;  %v10460_v4 = vpop.f32.mrf.mxu0 }
 0x9e1   :  { %v9219_v32 = vmul.f32 -1.442695, %v4665_v15 }
 0x9e3   :  { %11207 = vpow2.f32 %v9219_v32  ;;  %v13775_v32 = vld [vmem:[#allocation17_spill] sm:$0xff] }
 0x9e4   :  { %11209 = vtanh.f32 %v4593_v33 }
 0x9e6   :  { %v11204_v34 = vpop.eup %11203 }
 0x9e7   :  { %v11206_v6 = vpop.eup %11205  ;;  %v4443_v47 = vadd.f32 1.0, %v11204_v34 }
 0x9e8   :  { %v4520_v24 = vadd.f32 1.0, %v11206_v6 }
 0x9e9   :  { %11211 = vrcp.f32 %v4443_v47  ;;  %v13776_v47 = vld [vmem:[#allocation16_spill] sm:$0xff] }
 0x9ea   :  { %11213 = vrcp.f32 %v4520_v24 }
 0x9f0   :  { %v11208_v5 = vpop.eup %11207 }
 0x9f1   :  { %v11210_v21 = vpop.eup %11209  ;;  %v4669_v26 = vadd.f32 1.0, %v11208_v5 }
 0x9f3   :  { %11215 = vrcp.f32 %v4669_v26  ;;  %v13778_v26 = vld [vmem:[#allocation18_spill] sm:$0xff] }
 0x9f6   :  { %v11212_v4 = vpop.eup %11211 }
 0x9f7   :  { %v11214_v9 = vpop.eup %11213  ;;  %v4673_v48 = vmul.f32 %v11212_v4, %v11210_v21 }
 0x9f8   :  { %v4672_v60 = vmul.f32 %v11214_v9, %v12463_v58 }
 0x9fa   :  { %v12735_v11 = vadd.f32 %v4673_v48, %v4672_v60 }
 0x9fc   :  { %11217 = vtanh.f32 %v12735_v11 }
 0xa00   :  { %v11216_v31 = vpop.eup %11215 }
 0xa09   :  { %v11218_v57 = vpop.eup %11217 }
 0xa0a   :  { %v12738_v15 = vmul.f32 %v11218_v57, %v11216_v31 }
 0xa0c   :  { %v4677_v37 = vmax.f32 %v12738_v15, 0.0 }
 0xa0e   :  { %10470 = vmatmul.mubr.msk.f32.vlgmr.msra.gmra.mxu1 %vm536_vm3, %v4677_v37 }
 0xa0f   :  { %10491 = vmatpush3.msra.mxu1 %v12234_v7  ;;  %10498 = vmatprep.mubr.msk.f32.mxu1 %vm11599_vm2, %v13738_v17  ;;  %v4754_v7 = vld [vmem:[#allocation10 + $0x38] sm:$0xff] }
 0xa10   :  { %10492 = vmatprep.subr.mxu1 %v13738_v17  ;;  %10473 = vmatpush3.msra.mxu0 %v4754_v7 }
 0xa11   :  { %10493 = vmatpush3.msra.mxu1 %v12240_v36  ;;  %10474 = vmatprep.subr.mxu0 %v13738_v17  ;;  %v4753_v36 = vld [vmem:[#allocation10 + $0x30] sm:$0xff] }
 0xa12   :  { %10494 = vmatprep.subr.mxu1 %v13738_v17  ;;  %10475 = vmatpush3.msra.mxu0 %v4753_v36 }
 0xa13   :  { %10495 = vmatpush3.msra.mxu1 %v12244_v46  ;;  %10479 = vmatprep.subr.mxu0 %v13738_v17 }
 0xa14   :  { %10496 = vmatprep.subr.mxu1 %v13738_v17 }
 0xa15   :  { %10497 = vmatpush3.msra.mxu1 %v12248_v49  ;;  %v12781_v49 = vld [vmem:[%s13630_s8] ss:$0 sm:$0xff] }
 0xa16   :  { %10499 = vmatmul.mubr.msk.f32.vlgmr.msra.gmra.mxu1 %vm536_vm3, %v12564_v13  ;;  %10512 = vmatprep.subr.mxu1 %v13738_v17 }
 0xa17   :  { %10513 = vmatpush3.msra.mxu1 %v12254_v50  ;;  %10520 = vmatprep.mubr.msk.f32.mxu1 %vm11599_vm2, %v13738_v17 }
 0xa18   :  { %10514 = vmatprep.subr.mxu1 %v13738_v17 }
 0xa19   :  { %10515 = vmatpush3.msra.mxu1 %v12260_v51 }
 0xa1a   :  { %10516 = vmatprep.subr.mxu1 %v13738_v17 }
 0xa1b   :  { %10517 = vmatpush3.msra.mxu1 %v12264_v25 }
 0xa1c   :  { %10518 = vmatprep.subr.mxu1 %v13738_v17 }
 0xa1d   :  { %10519 = vmatpush3.msra.mxu1 %v12490_v42 }
 0xa1e   :  { %10521 = vmatmul.mubr.msk.f32.vlgmr.msra.gmra.mxu1 %vm536_vm3, %v12564_v13  ;;  %10534 = vmatprep.subr.mxu1 %v13738_v17 }
 0xa1f   :  { %10535 = vmatpush3.msra.mxu1 %v12496_v62  ;;  %10542 = vmatprep.mubr.msk.f32.mxu1 %vm11599_vm2, %v13738_v17 }
 0xa20   :  { %10536 = vmatprep.subr.mxu1 %v13738_v17 }
 0xa21   :  { %10537 = vmatpush3.msra.mxu1 %v12502_v0 }
 0xa22   :  { %10538 = vmatprep.subr.mxu1 %v13738_v17 }
 0xa23   :  { %10539 = vmatpush3.msra.mxu1 %v12506_v1 }
 0xa24   :  { %10540 = vmatprep.subr.mxu1 %v13738_v17 }
 0xa25   :  { %10541 = vmatpush3.msra.mxu1 %v12510_v2 }
 0xa26   :  { %10556 = vmatprep.subr.mxu1 %v13738_v17 }
 0xace   :  { %v4747_v46 = vpop.f32.mrf.mxu1 }
 0xacf   :  { %v4748_v50 = vadd.f32 %v12781_v49, %v4747_v46 }
 0xad0   :  { %v10471_v51 = vpop.f32.mrf.mxu1 }
 0xad1   :  { %v4751_v25 = vmax.f32 %v4748_v50, 0.0 }
 0xad3   :  { %10477 = vmatmul.mubr.msk.f32.vlgmr.msra.gmra.mxu0 %vm2542_vm4, %v4751_v25 }
 0xad4   :  { %10480 = vmatpush3.msra.mxu0 %v12288_v30  ;;  %10487 = vmatprep.mubr.msk.f32.mxu0 %vm11599_vm2, %v13738_v17 }
 0xad5   :  { %10481 = vmatprep.subr.mxu0 %v13738_v17 }
 0xad6   :  { %10482 = vmatpush3.msra.mxu0 %v12294_v53  ;;  %v4972_v58 = vpop.f32.mrf.mxu1 }
 0xad7   :  { %v4976_v33 = vadd.f32 %v4972_v58, %v13775_v32  ;;  %10483 = vmatprep.subr.mxu0 %v13738_v17  ;;  %v13785_v58 = vld [vmem:[#allocation27_spill] sm:$0xff] }
 0xad8   :  { %10484 = vmatpush3.msra.mxu0 %v12298_v45  ;;  %v10500_v34 = vpop.f32.mrf.mxu1 }
 0xad9   :  { %v9225_v6 = vmul.f32 -1.442695, %v4976_v33  ;;  %10485 = vmatprep.subr.mxu0 %v13738_v17  ;;  %v13786_v33 = vld [vmem:[#allocation20_spill] sm:$0xff] }
 0xada   :  { %10486 = vmatpush3.msra.mxu0 %v12302_v23  ;;  %v13787_v34 = vld [vmem:[#allocation28_spill] sm:$0xff] }
 0xadb   :  { %11219 = vpow2.f32 %v9225_v6  ;;  %10488 = vmatmul.mubr.msk.f32.vlgmr.msra.gmra.mxu0 %vm536_vm3, %v12564_v13  ;;  %10501 = vmatprep.subr.mxu0 %v13738_v17  ;;  %v13788_v6 = vld [vmem:[#allocation29_spill] sm:$0xff] }
 0xadc   :  { %10502 = vmatpush3.msra.mxu0 %v12308_v8  ;;  %10509 = vmatprep.mubr.msk.f32.mxu0 %vm11599_vm2, %v13738_v17  ;;  %v5133_v8 = vrot.slane %v12561_v10, 6 }
 0xadd   :  { %10503 = vmatprep.subr.mxu0 %v13738_v17 }
 0xade   :  { %10504 = vmatpush3.msra.mxu0 %v13752_v39  ;;  %v5121_v30 = vpop.f32.mrf.mxu1 }
 0xadf   :  { %10505 = vmatprep.subr.mxu0 %v13738_v17 }
 0xae0   :  { %10506 = vmatpush3.msra.mxu0 %v13753_v19  ;;  %v10522_v53 = vpop.f32.mrf.mxu1 }
 0xae1   :  { %10507 = vmatprep.subr.mxu0 %v13738_v17 }
 0xae2   :  { %10508 = vmatpush3.msra.mxu0 %v13754_v12 }
 0xae3   :  { %10510 = vmatmul.mubr.msk.f32.vlgmr.msra.gmra.mxu0 %vm536_vm3, %v12564_v13  ;;  %10523 = vmatprep.subr.mxu0 %v13738_v17 }
 0xae4   :  { %10524 = vmatpush3.msra.mxu0 %v13755_v16  ;;  %10531 = vmatprep.mubr.msk.f32.mxu0 %vm11599_vm2, %v13738_v17 }
 0xae5   :  { %10525 = vmatprep.subr.mxu0 %v13738_v17 }
 0xae6   :  { %10526 = vmatpush3.msra.mxu0 %v13756_v27 }
 0xae7   :  { %10527 = vmatprep.subr.mxu0 %v13738_v17 }
 0xae8   :  { %v11220_v45 = vpop.eup %11219  ;;  %10528 = vmatpush3.msra.mxu0 %v13757_v14 }
 0xae9   :  { %v4980_v23 = vadd.f32 1.0, %v11220_v45  ;;  %10529 = vmatprep.subr.mxu0 %v13738_v17 }
 0xaea   :  { %10530 = vmatpush3.msra.mxu0 %v13758_v28  ;;  %v13777_v28 = vld [vmem:[#allocation19_spill] sm:$0xff] }
 0xaeb   :  { %11221 = vrcp.f32 %v4980_v23  ;;  %10545 = vmatprep.subr.mxu0 %v13738_v17  ;;  %v5125_v4 = vadd.f32 %v5121_v30, %v13777_v28  ;;  %v13789_v30 = vld [vmem:[#allocation30_spill] sm:$0xff] }
 0xaed   :  { %v9228_v48 = vmul.f32 -1.442695, %v5125_v4 }
 0xaf8   :  { %v11222_v39 = vpop.eup %11221 }
 0xaf9   :  { %v5135_v19 = vmul.f32 %v11222_v39, %v5133_v8 }
 0xb93   :  { %v4824_v12 = vpop.f32.mrf.mxu0 }
 0xb94   :  { %v12822_v16 = vadd.f32 %v4824_v12, %v12556_v55 }
 0xb95   :  { %v10478_v27 = vpop.f32.mrf.mxu0 }
 0xb9b   :  { %v4895_v13 = vpop.f32.mrf.mxu0 }
 0xb9c   :  { %v4899_v14 = vadd.f32 %v4895_v13, %v13776_v47  ;;  %v13791_v13 = vld [vmem:[#allocation32_spill] sm:$0xff] }
 0xb9d   :  { %v10489_v24 = vpop.f32.mrf.mxu0 }
 0xb9e   :  { %v9223_v5 = vmul.f32 -1.442695, %v4899_v14  ;;  %v13792_v24 = vld [vmem:[#allocation33_spill] sm:$0xff] }
 0xba0   :  { %11223 = vpow2.f32 %v9223_v5 }
 0xba1   :  { %11225 = vpow2.f32 %v9228_v48 }
 0xba3   :  { %v5049_v21 = vpop.f32.mrf.mxu0 }
 0xba4   :  { %v5053_v10 = vadd.f32 %v5049_v21, %v13778_v26 }
 0xba5   :  { %v10511_v9 = vpop.f32.mrf.mxu0 }
 0xba6   :  { %11227 = vtanh.f32 %v5053_v10 }
 0xbad   :  { %v11224_v60 = vpop.eup %11223 }
 0xbae   :  { %v4903_v31 = vadd.f32 1.0, %v11224_v60  ;;  %v11226_v55 = vpop.eup %11225 }
 0xbaf   :  { %v5129_v7 = vadd.f32 1.0, %v11226_v55 }
 0xbb0   :  { %11229 = vrcp.f32 %v4903_v31 }
 0xbb1   :  { %11231 = vrcp.f32 %v5129_v7 }
 0xbb3   :  { %v11228_v57 = vpop.eup %11227 }
 0xbbd   :  { %v11230_v37 = vpop.eup %11229 }
 0xbbe   :  { %v5136_v36 = vmul.f32 %v11230_v37, %v11228_v57  ;;  %v11232_v50 = vpop.eup %11231  ;;  %v13793_v57 = vld [vmem:[#allocation34_spill] sm:$0xff] }
 0xbc0   :  { %v12827_v46 = vadd.f32 %v5136_v36, %v5135_v19 }
 0xbc2   :  { %11233 = vtanh.f32 %v12827_v46 }
 0xbcf   :  { %v11234_v51 = vpop.eup %11233 }
 0xbd0   :  { %v12830_v25 = vmul.f32 %v11234_v51, %v11232_v50 }
 0xbd2   :  { %10532 = vmatmul.mubr.msk.f32.vlgmr.msra.gmra.mxu0 %vm536_vm3, %v12830_v25  ;;  %10543 = vmatmul.mubr.msk.f32.vlgmr.msra.gmra.mxu1 %vm536_vm3, %v12830_v25 }
 0xbd3   :  { %10546 = vmatpush3.msra.mxu0 %v12362_v35  ;;  %10557 = vmatpush3.msra.mxu1 %v12365_v52  ;;  %v13779_v35 = vld [vmem:[#allocation21_spill] sm:$0xff]  ;;  %v13780_v52 = vld [vmem:[#allocation22_spill] sm:$0xff] }
 0xbd4   :  { %10547 = vmatprep.subr.mxu0 %v13738_v17  ;;  %10558 = vmatprep.subr.mxu1 %v13738_v17 }
 0xbd5   :  { %10548 = vmatpush3.msra.mxu0 %v12370_v18  ;;  %10559 = vmatpush3.msra.mxu1 %v12373_v20  ;;  %v13781_v18 = vld [vmem:[#allocation23_spill] sm:$0xff]  ;;  %v13782_v20 = vld [vmem:[#allocation24_spill] sm:$0xff] }
 0xbd6   :  { %10549 = vmatprep.subr.mxu0 %v13738_v17  ;;  %10560 = vmatprep.subr.mxu1 %v13738_v17 }
 0xbd7   :  { %10550 = vmatpush3.msra.mxu0 %v12378_v29  ;;  %10561 = vmatpush3.msra.mxu1 %v12381_v40  ;;  %v13783_v29 = vld [vmem:[#allocation25_spill] sm:$0xff]  ;;  %v13784_v40 = vld [vmem:[#allocation26_spill] sm:$0xff] }
 0xbd8   :  { %10551 = vmatprep.subr.mxu0 %v13738_v17  ;;  %10562 = vmatprep.subr.mxu1 %v13738_v17 }
 0xbd9   :  { %10552 = vmatpush3.msra.mxu0 %v12582_v63  ;;  %10553 = vmatprep.mubr.msk.f32.mxu0 %vm11599_vm2, %v13738_v17 }
 0xbda   :  { %10563 = vmatpush3.msra.mxu1 %v12587_v44  ;;  %10564 = vmatprep.mubr.msk.f32.mxu1 %vm11599_vm2, %v13738_v17 }
 0xbdb   :  { %10554 = vmatmul.mubr.msk.f32.vlgmr.msra.gmra.mxu0 %vm536_vm3, %v12830_v25  ;;  %10565 = vmatmul.mubr.msk.f32.vlgmr.msra.gmra.mxu1 %vm536_vm3, %v12830_v25 }
 0xbdc   :  { %10567 = vmatprep.subr.mxu0 %v13738_v17  ;;  %10578 = vmatprep.subr.mxu1 %v13738_v17 }
 0xbdd   :  { %10568 = vmatpush3.msra.mxu0 %v12598_v43  ;;  %10579 = vmatpush3.msra.mxu1 %v12601_v22 }
 0xbde   :  { %10569 = vmatprep.subr.mxu0 %v13738_v17  ;;  %10580 = vmatprep.subr.mxu1 %v13738_v17 }
 0xbdf   :  { %10570 = vmatpush3.msra.mxu0 %v12606_v54  ;;  %10581 = vmatpush3.msra.mxu1 %v12609_v56 }
 0xbe0   :  { %10571 = vmatprep.subr.mxu0 %v13738_v17  ;;  %10582 = vmatprep.subr.mxu1 %v13738_v17 }
 0xbe1   :  { %10572 = vmatpush3.msra.mxu0 %v12614_v41  ;;  %10583 = vmatpush3.msra.mxu1 %v12617_v59 }
 0xbe2   :  { %10573 = vmatprep.subr.mxu0 %v13738_v17  ;;  %10584 = vmatprep.subr.mxu1 %v13738_v17 }
 0xbe3   :  { %10574 = vmatpush3.msra.mxu0 %v12622_v61  ;;  %10575 = vmatprep.mubr.msk.f32.mxu0 %vm11599_vm2, %v13738_v17 }
 0xbe4   :  { %10585 = vmatpush3.msra.mxu1 %v12627_v3  ;;  %10586 = vmatprep.mubr.msk.f32.mxu1 %vm11599_vm2, %v13738_v17 }
 0xbe5   :  { %10576 = vmatmul.mubr.msk.f32.vlgmr.msra.gmra.mxu0 %vm536_vm3, %v12738_v15  ;;  %10587 = vmatmul.mubr.msk.f32.vlgmr.msra.gmra.mxu1 %vm536_vm3, %v12738_v15 }
 0xbe6   :  { %10589 = vmatprep.subr.mxu0 %v13738_v17  ;;  %10600 = vmatprep.subr.mxu1 %v13738_v17 }
 0xbe7   :  { %10590 = vmatpush3.msra.mxu0 %v13779_v35  ;;  %10601 = vmatpush3.msra.mxu1 %v13780_v52 }
 0xbe8   :  { %10591 = vmatprep.subr.mxu0 %v13738_v17  ;;  %10602 = vmatprep.subr.mxu1 %v13738_v17 }
 0xbe9   :  { %10592 = vmatpush3.msra.mxu0 %v13781_v18  ;;  %10603 = vmatpush3.msra.mxu1 %v13782_v20 }
 0xbea   :  { %10593 = vmatprep.subr.mxu0 %v13738_v17  ;;  %10604 = vmatprep.subr.mxu1 %v13738_v17 }
 0xbeb   :  { %10594 = vmatpush3.msra.mxu0 %v13783_v29  ;;  %10605 = vmatpush3.msra.mxu1 %v13784_v40 }
 0xbec   :  { %10595 = vmatprep.subr.mxu0 %v13738_v17  ;;  %10606 = vmatprep.subr.mxu1 %v13738_v17 }
 0xbed   :  { %10596 = vmatpush3.msra.mxu0 %v13785_v58  ;;  %10597 = vmatprep.mubr.msk.f32.mxu0 %vm11599_vm2, %v13738_v17 }
 0xbee   :  { %10607 = vmatpush3.msra.mxu1 %v13786_v33  ;;  %10608 = vmatprep.mubr.msk.f32.mxu1 %vm11599_vm2, %v13738_v17 }
 0xbef   :  { %10598 = vmatmul.mubr.msk.f32.vlgmr.msra.gmra.mxu0 %vm536_vm3, %v12738_v15  ;;  %10609 = vmatmul.mubr.msk.f32.vlgmr.msra.gmra.mxu1 %vm536_vm3, %v12738_v15  ;;  %v13790_v15 = vld [vmem:[#allocation31_spill] sm:$0xff] }
 0xbf0   :  { %10611 = vmatprep.subr.mxu0 %v13738_v17  ;;  %10619 = vmatprep.mubr.msk.f32.mxu0 %vm11599_vm2, %v13738_v17 }
 0xbf1   :  { %10612 = vmatpush3.msra.mxu0 %v13787_v34  ;;  %10622 = vmatprep.subr.mxu1 %v13738_v17 }
 0xbf2   :  { %10613 = vmatprep.subr.mxu0 %v13738_v17  ;;  %10626 = vmatprep.mubr.msk.f32.mxu1 %vm11599_vm2, %v13738_v17 }
 0xbf3   :  { %10614 = vmatpush3.msra.mxu0 %v13788_v6 }
 0xbf4   :  { %10615 = vmatprep.subr.mxu0 %v13738_v17 }
 0xbf5   :  { %10616 = vmatpush3.msra.mxu0 %v13789_v30 }
 0xbf6   :  { %10617 = vmatprep.subr.mxu0 %v13738_v17 }
 0xbf7   :  { %10618 = vmatpush3.msra.mxu0 %v13790_v15 }
 0xbf8   :  { %10640 = vmatprep.subr.mxu0 %v13738_v17 }
 0xc92   :  { %v5209_v53 = vpop.f32.mrf.mxu0  ;;  %v5279_v45 = vpop.f32.mrf.mxu1 }
 0xc93   :  { %v5210_v14 = vadd.f32 %v13791_v13, %v5209_v53  ;;  %v5280_v5 = vadd.f32 %v13792_v24, %v5279_v45 }
 0xc94   :  { %v10533_v23 = vpop.f32.mrf.mxu0  ;;  %v10544_v8 = vpop.f32.mrf.mxu1 }
 0xc9b   :  { %v5349_v39 = vpop.f32.mrf.mxu0  ;;  %v5419_v19 = vpop.f32.mrf.mxu1 }
 0xc9c   :  { %v5420_v37 = vadd.f32 %v13793_v57, %v5419_v19  ;;  %v5350_v53 = vadd.f32 %v12731_v38, %v5349_v39 }
 0xc9d   :  { %v10555_v12 = vpop.f32.mrf.mxu0  ;;  %v10566_v27 = vpop.f32.mrf.mxu1 }
 0xca5   :  { %v5492_v21 = vpop.f32.mrf.mxu0  ;;  %v5569_v4 = vpop.f32.mrf.mxu1 }
 0xca6   :  { %v5496_v9 = vadd.f32 %v5492_v21, %v5210_v14  ;;  %v5573_v48 = vadd.f32 %v5569_v4, %v5280_v5 }
 0xca7   :  { %v10577_v10 = vpop.f32.mrf.mxu0  ;;  %v10588_v60 = vpop.f32.mrf.mxu1 }
 0xca8   :  { %v9234_v31 = vmul.f32 -1.442695, %v5496_v9  ;;  %v9236_v55 = vmul.f32 -1.442695, %v5573_v48 }
 0xcaa   :  { %11235 = vpow2.f32 %v9234_v31 }
 0xcab   :  { %11237 = vpow2.f32 %v9236_v55 }
 0xcaf   :  { %v5646_v7 = vpop.f32.mrf.mxu0  ;;  %v5718_v36 = vpop.f32.mrf.mxu1 }
 0xcb0   :  { %v5722_v50 = vadd.f32 %v5718_v36, %v5420_v37  ;;  %v5650_v8 = vadd.f32 %v5646_v7, %v5350_v53  ;;  %v12932_v36 = vld [vmem:[#allocation5 + $0x38] sm:$0xff]  ;;  %v12958_v53 = vld [vmem:[#allocation5 + $0x70] sm:$0xff] }
 0xcb1   :  { %v10599_v51 = vpop.f32.mrf.mxu0  ;;  %v10610_v23 = vpop.f32.mrf.mxu1 }
 0xcb2   :  { %v9239_v45 = vmul.f32 -1.442695, %v5722_v50  ;;  %v12942_v50 = vld [vmem:[#allocation5 + $0x28] sm:$0xff]  ;;  %v12946_v51 = vld [vmem:[#allocation5 + $0x20] sm:$0xff]  ;;  %v12952_v23 = vld [vmem:[#allocation5 + $0x78] sm:$0xff] }
 0xcb4   :  { %11239 = vpow2.f32 %v9239_v45  ;;  %v12962_v45 = vld [vmem:[#allocation5 + $0x68] sm:$0xff] }
 0xcb5   :  { %11241 = vtanh.f32 %v5650_v8 }
 0xcb7   :  { %v11236_v12 = vpop.eup %11235 }
 0xcb8   :  { %v11238_v27 = vpop.eup %11237  ;;  %v5500_v14 = vadd.f32 1.0, %v11236_v12 }
 0xcb9   :  { %v5577_v5 = vadd.f32 1.0, %v11238_v27 }
 0xcba   :  { %11243 = vrcp.f32 %v5500_v14 }
 0xcbb   :  { %11245 = vrcp.f32 %v5577_v5 }
 0xcc1   :  { %v11240_v21 = vpop.eup %11239 }
 0xcc2   :  { %v11242_v4 = vpop.eup %11241  ;;  %v5726_v10 = vadd.f32 1.0, %v11240_v21  ;;  %v12994_v21 = vld [vmem:[#allocation5 + $0x8] sm:$0xff] }
 0xcc4   :  { %11247 = vrcp.f32 %v5726_v10  ;;  %v13005_v10 = vld [vmem:[#allocation5 + $0x58] sm:$0xff] }
 0xcc5   :  { %13794 = vst [vmem:[#allocation17_spill] sm:$0xff] %v13005_v10 }
 0xcc7   :  { %v11244_v19 = vpop.eup %11243 }
 0xcc8   :  { %v11246_v9 = vpop.eup %11245  ;;  %v5730_v48 = vmul.f32 %v11244_v19, %v11242_v4 }
 0xcc9   :  { %v5729_v60 = vmul.f32 %v11246_v9, %v12735_v11  ;;  %v12938_v11 = vld [vmem:[#allocation5 + $0x30] sm:$0xff]  ;;  %v12999_v9 = vld [vmem:[#allocation5] sm:$0xff] }
 0xccb   :  { %v12925_v31 = vadd.f32 %v5730_v48, %v5729_v60  ;;  %v13011_v60 = vld [vmem:[#allocation5 + $0x50] sm:$0xff] }
 0xccc   :  { %13795 = vst [vmem:[#allocation16_spill] sm:$0xff] %v13011_v60 }
 0xccd   :  { %11249 = vtanh.f32 %v12925_v31 }
 0xcd1   :  { %v11248_v39 = vpop.eup %11247 }
 0xcda   :  { %v11250_v55 = vpop.eup %11249 }
 0xcdb   :  { %v12928_v37 = vmul.f32 %v11250_v55, %v11248_v39  ;;  %v13015_v55 = vld [vmem:[#allocation5 + $0x48] sm:$0xff] }
 0xcdc   :  { %13796 = vst [vmem:[#allocation19_spill] sm:$0xff] %v13015_v55 }
 0xcdd   :  { %v5734_v7 = vmax.f32 %v12928_v37, 0.0 }
 0xcdf   :  { %10620 = vmatmul.mubr.msk.f32.vlgmr.msra.gmra.mxu0 %vm536_vm3, %v5734_v7 }
 0xce0   :  { %10641 = vmatpush3.msra.mxu0 %v12932_v36  ;;  %10648 = vmatprep.mubr.msk.f32.mxu0 %vm11599_vm2, %v13738_v17 }
 0xce1   :  { %10642 = vmatprep.subr.mxu0 %v13738_v17 }
 0xce2   :  { %10643 = vmatpush3.msra.mxu0 %v12938_v11 }
 0xce3   :  { %10644 = vmatprep.subr.mxu0 %v13738_v17 }
 0xce4   :  { %10645 = vmatpush3.msra.mxu0 %v12942_v50 }
 0xce5   :  { %10646 = vmatprep.subr.mxu0 %v13738_v17 }
 0xce6   :  { %10647 = vmatpush3.msra.mxu0 %v12946_v51 }
 0xce7   :  { %10649 = vmatmul.mubr.msk.f32.vlgmr.msra.gmra.mxu0 %vm536_vm3, %v12830_v25  ;;  %10662 = vmatprep.subr.mxu0 %v13738_v17 }
 0xce8   :  { %10663 = vmatpush3.msra.mxu0 %v12952_v23  ;;  %10670 = vmatprep.mubr.msk.f32.mxu0 %vm11599_vm2, %v13738_v17 }
 0xce9   :  { %10664 = vmatprep.subr.mxu0 %v13738_v17 }
 0xcea   :  { %10665 = vmatpush3.msra.mxu0 %v12958_v53 }
 0xceb   :  { %10666 = vmatprep.subr.mxu0 %v13738_v17 }
 0xcec   :  { %10667 = vmatpush3.msra.mxu0 %v12962_v45 }
 0xced   :  { %10668 = vmatprep.subr.mxu0 %v13738_v17 }
 0xcee   :  { %10669 = vmatpush3.msra.mxu0 %v12490_v42  ;;  %v5811_v42 = vld [vmem:[#allocation10 + $0x48] sm:$0xff] }
 0xcef   :  { %10671 = vmatmul.mubr.msk.f32.vlgmr.msra.gmra.mxu0 %vm536_vm3, %v12830_v25  ;;  %10684 = vmatprep.subr.mxu0 %v13738_v17 }
 0xcf0   :  { %10685 = vmatpush3.msra.mxu0 %v12496_v62  ;;  %10692 = vmatprep.mubr.msk.f32.mxu0 %vm11599_vm2, %v13738_v17  ;;  %v5810_v62 = vld [vmem:[#allocation10 + $0x40] sm:$0xff] }
 0xcf1   :  { %10686 = vmatprep.subr.mxu0 %v13738_v17  ;;  %10623 = vmatpush3.msra.mxu1 %v5811_v42  ;;  %v13019_v42 = vld [vmem:[#allocation5 + $0x40] sm:$0xff] }
 0xcf2   :  { %10687 = vmatpush3.msra.mxu0 %v12502_v0  ;;  %10624 = vmatprep.subr.mxu1 %v13738_v17  ;;  %13797 = vst [vmem:[#allocation18_spill] sm:$0xff] %v13019_v42 }
 0xcf3   :  { %10688 = vmatprep.subr.mxu0 %v13738_v17  ;;  %10625 = vmatpush3.msra.mxu1 %v5810_v62  ;;  %v13025_v62 = vld [vmem:[#allocation7 + $0x18] sm:$0xff] }
 0xcf4   :  { %10689 = vmatpush3.msra.mxu0 %v12506_v1  ;;  %10629 = vmatprep.subr.mxu1 %v13738_v17  ;;  %v12984_v1 = vld [vmem:[#allocation5 + $0x18] sm:$0xff]  ;;  %13798 = vst [vmem:[#allocation21_spill] sm:$0xff] %v13025_v62 }
 0xcf5   :  { %10690 = vmatprep.subr.mxu0 %v13738_v17 }
 0xcf6   :  { %10691 = vmatpush3.msra.mxu0 %v12510_v2  ;;  %v12990_v2 = vld [vmem:[#allocation5 + $0x10] sm:$0xff] }
 0xcf7   :  { %10706 = vmatprep.subr.mxu0 %v13738_v17 }
 0xd9f   :  { %v5804_v8 = vpop.f32.mrf.mxu0 }
 0xda0   :  { %v5805_v0 = vadd.f32 %v12781_v49, %v5804_v8  ;;  %v13031_v8 = vld [vmem:[#allocation7 + $0x10] sm:$0xff] }
 0xda1   :  { %v10621_v12 = vpop.f32.mrf.mxu0  ;;  %13799 = vst [vmem:[#allocation22_spill] sm:$0xff] %v13031_v8 }
 0xda2   :  { %v5808_v27 = vmax.f32 %v5805_v0, 0.0  ;;  %v13035_v0 = vld [vmem:[#allocation7 + $0x8] sm:$0xff]  ;;  %v13039_v12 = vld [vmem:[#allocation7] sm:$0xff] }
 0xda3   :  { %13800 = vst [vmem:[#allocation23_spill] sm:$0xff] %v13035_v0  ;;  %13801 = vst [vmem:[#allocation24_spill] sm:$0xff] %v13039_v12 }
 0xda4   :  { %10627 = vmatmul.mubr.msk.f32.vlgmr.msra.gmra.mxu1 %vm2542_vm4, %v5808_v27 }
 0xda5   :  { %10630 = vmatpush3.msra.mxu1 %v12984_v1  ;;  %10637 = vmatprep.mubr.msk.f32.mxu1 %vm11599_vm2, %v13738_v17 }
 0xda6   :  { %10631 = vmatprep.subr.mxu1 %v13738_v17 }
 0xda7   :  { %10632 = vmatpush3.msra.mxu1 %v12990_v2  ;;  %v6032_v14 = vpop.f32.mrf.mxu0 }
 0xda8   :  { %v6037_v5 = vrot.slane %v6032_v14, 6  ;;  %10633 = vmatprep.subr.mxu1 %v13738_v17  ;;  %v6202_v14 = vrot.slane %v12827_v46, 6 }
 0xda9   :  { %10634 = vmatpush3.msra.mxu1 %v12994_v21  ;;  %v10650_v4 = vpop.f32.mrf.mxu0 }
 0xdaa   :  { %v6039_v19 = vadd.f32 %v6037_v5, %v13775_v32  ;;  %10635 = vmatprep.subr.mxu1 %v13738_v17 }
 0xdab   :  { %10636 = vmatpush3.msra.mxu1 %v12999_v9 }
 0xdac   :  { %v9245_v48 = vmul.f32 -1.442695, %v6039_v19  ;;  %10638 = vmatmul.mubr.msk.f32.vlgmr.msra.gmra.mxu1 %vm536_vm3, %v12830_v25  ;;  %10651 = vmatprep.subr.mxu1 %v13738_v17 }
 0xdad   :  { %10652 = vmatpush3.msra.mxu1 %v13005_v10  ;;  %10659 = vmatprep.mubr.msk.f32.mxu1 %vm11599_vm2, %v13738_v17 }
 0xdae   :  { %11251 = vpow2.f32 %v9245_v48  ;;  %10653 = vmatprep.subr.mxu1 %v13738_v17 }
 0xdaf   :  { %10654 = vmatpush3.msra.mxu1 %v13011_v60  ;;  %v6187_v39 = vpop.f32.mrf.mxu0 }
 0xdb0   :  { %10655 = vmatprep.subr.mxu1 %v13738_v17 }
 0xdb1   :  { %10656 = vmatpush3.msra.mxu1 %v13015_v55  ;;  %v10672_v7 = vpop.f32.mrf.mxu0 }
 0xdb2   :  { %10657 = vmatprep.subr.mxu1 %v13738_v17 }
 0xdb3   :  { %10658 = vmatpush3.msra.mxu1 %v13019_v42 }
 0xdb4   :  { %10660 = vmatmul.mubr.msk.f32.vlgmr.msra.gmra.mxu1 %vm536_vm3, %v12830_v25  ;;  %10673 = vmatprep.subr.mxu1 %v13738_v17 }
 0xdb5   :  { %10674 = vmatpush3.msra.mxu1 %v13025_v62  ;;  %10681 = vmatprep.mubr.msk.f32.mxu1 %vm11599_vm2, %v13738_v17 }
 0xdb6   :  { %10675 = vmatprep.subr.mxu1 %v13738_v17 }
 0xdb7   :  { %10676 = vmatpush3.msra.mxu1 %v13031_v8 }
 0xdb8   :  { %10677 = vmatprep.subr.mxu1 %v13738_v17 }
 0xdb9   :  { %10678 = vmatpush3.msra.mxu1 %v13035_v0 }
 0xdba   :  { %10679 = vmatprep.subr.mxu1 %v13738_v17 }
 0xdbb   :  { %v11252_v25 = vpop.eup %11251  ;;  %10680 = vmatpush3.msra.mxu1 %v13039_v12 }
 0xdbc   :  { %v6043_v27 = vadd.f32 1.0, %v11252_v25  ;;  %10695 = vmatprep.subr.mxu1 %v13738_v17  ;;  %v6192_v25 = vrot.slane %v6187_v39, 6 }
 0xdbe   :  { %11253 = vrcp.f32 %v6043_v27  ;;  %v6194_v27 = vadd.f32 %v6192_v25, %v13777_v28  ;;  %v13067_v25 = vld [vmem:[#allocation7 + $0x50] sm:$0xff] }
 0xdc0   :  { %v9248_v10 = vmul.f32 -1.442695, %v6194_v27  ;;  %v13070_v27 = vld [vmem:[#allocation7 + $0x70] sm:$0xff] }
 0xdcb   :  { %v11254_v5 = vpop.eup %11253 }
 0xdcc   :  { %v6204_v4 = vmul.f32 %v11254_v5, %v6202_v14 }
 0xe64   :  { %v5881_v19 = vpop.f32.mrf.mxu1 }
 0xe65   :  { %v13045_v48 = vadd.f32 %v5881_v19, %v12822_v16 }
 0xe66   :  { %v10628_v7 = vpop.f32.mrf.mxu1 }
 0xe6c   :  { %v5952_v0 = vpop.f32.mrf.mxu1 }
 0xe6d   :  { %v5957_v8 = vrot.slane %v5952_v0, 6 }
 0xe6e   :  { %v10639_v62 = vpop.f32.mrf.mxu1 }
 0xe6f   :  { %v5959_v42 = vadd.f32 %v5957_v8, %v13776_v47 }
 0xe71   :  { %v9243_v55 = vmul.f32 -1.442695, %v5959_v42 }
 0xe73   :  { %11255 = vpow2.f32 %v9243_v55 }
 0xe74   :  { %v6112_v12 = vpop.f32.mrf.mxu1  ;;  %11257 = vpow2.f32 %v9248_v10  ;;  %v13059_v10 = vld [vmem:[#allocation7 + $0x58] sm:$0xff] }
 0xe75   :  { %v6117_v46 = vrot.slane %v6112_v12, 6 }
 0xe76   :  { %v10661_v60 = vpop.f32.mrf.mxu1 }
 0xe77   :  { %v6119_v14 = vadd.f32 %v6117_v46, %v13778_v26  ;;  %v13075_v46 = vld [vmem:[#allocation7 + $0x48] sm:$0xff] }
 0xe79   :  { %11259 = vtanh.f32 %v6119_v14  ;;  %v13078_v14 = vld [vmem:[#allocation7 + $0x68] sm:$0xff] }
 0xe80   :  { %v11256_v5 = vpop.eup %11255 }
 0xe81   :  { %v5963_v16 = vadd.f32 1.0, %v11256_v5  ;;  %v11258_v0 = vpop.eup %11257 }
 0xe82   :  { %v6198_v8 = vadd.f32 1.0, %v11258_v0 }
 0xe83   :  { %11261 = vrcp.f32 %v5963_v16 }
 0xe84   :  { %11263 = vrcp.f32 %v6198_v8 }
 0xe86   :  { %v11260_v62 = vpop.eup %11259 }
 0xe90   :  { %v11262_v19 = vpop.eup %11261 }
 0xe91   :  { %v6205_v42 = vmul.f32 %v11262_v19, %v11260_v62  ;;  %v11264_v60 = vpop.eup %11263 }
 0xe93   :  { %v13050_v55 = vadd.f32 %v6205_v42, %v6204_v4  ;;  %v13062_v4 = vld [vmem:[#allocation7 + $0x78] sm:$0xff] }
 0xe95   :  { %11265 = vtanh.f32 %v13050_v55 }
 0xea2   :  { %v11266_v39 = vpop.eup %11265 }
 0xea3   :  { %v6208_v12 = vmul.f32 %v11266_v39, %v11264_v60 }
 0xea5   :  { %v13053_v7 = vrot.slane %v6208_v12, 2 }
 0xea7   :  { %10682 = vmatmul.mubr.msk.f32.vlgmr.msra.gmra.mxu1 %vm536_vm3, %v13053_v7  ;;  %10693 = vmatmul.mubr.msk.f32.vlgmr.msra.gmra.mxu0 %vm536_vm3, %v13053_v7 }
 0xea8   :  { %10696 = vmatpush3.msra.mxu1 %v13059_v10  ;;  %10707 = vmatpush3.msra.mxu0 %v13062_v4 }
 0xea9   :  { %10697 = vmatprep.subr.mxu1 %v13738_v17  ;;  %10708 = vmatprep.subr.mxu0 %v13738_v17 }
 0xeaa   :  { %10698 = vmatpush3.msra.mxu1 %v13067_v25  ;;  %10709 = vmatpush3.msra.mxu0 %v13070_v27 }
 0xeab   :  { %10699 = vmatprep.subr.mxu1 %v13738_v17  ;;  %10710 = vmatprep.subr.mxu0 %v13738_v17 }
 0xeac   :  { %10700 = vmatpush3.msra.mxu1 %v13075_v46  ;;  %10711 = vmatpush3.msra.mxu0 %v13078_v14 }
 0xead   :  { %10701 = vmatprep.subr.mxu1 %v13738_v17  ;;  %10712 = vmatprep.subr.mxu0 %v13738_v17 }
 0xeae   :  { %10702 = vmatpush3.msra.mxu1 %v12582_v63  ;;  %10703 = vmatprep.mubr.msk.f32.mxu1 %vm11599_vm2, %v13738_v17 }
 0xeaf   :  { %10713 = vmatpush3.msra.mxu0 %v12587_v44  ;;  %10714 = vmatprep.mubr.msk.f32.mxu0 %vm11599_vm2, %v13738_v17 }
 0xeb0   :  { %10704 = vmatmul.mubr.msk.f32.vlgmr.msra.gmra.mxu1 %vm536_vm3, %v13053_v7  ;;  %10715 = vmatmul.mubr.msk.f32.vlgmr.msra.gmra.mxu0 %vm536_vm3, %v13053_v7 }
 0xeb1   :  { %10717 = vmatprep.subr.mxu1 %v13738_v17  ;;  %10728 = vmatprep.subr.mxu0 %v13738_v17 }
 0xeb2   :  { %10718 = vmatpush3.msra.mxu1 %v12598_v43  ;;  %10729 = vmatpush3.msra.mxu0 %v12601_v22 }
 0xeb3   :  { %10719 = vmatprep.subr.mxu1 %v13738_v17  ;;  %10730 = vmatprep.subr.mxu0 %v13738_v17 }
 0xeb4   :  { %10720 = vmatpush3.msra.mxu1 %v12606_v54  ;;  %10731 = vmatpush3.msra.mxu0 %v12609_v56 }
 0xeb5   :  { %10721 = vmatprep.subr.mxu1 %v13738_v17  ;;  %10732 = vmatprep.subr.mxu0 %v13738_v17 }
 0xeb6   :  { %10722 = vmatpush3.msra.mxu1 %v12614_v41  ;;  %10733 = vmatpush3.msra.mxu0 %v12617_v59 }
 0xeb7   :  { %10723 = vmatprep.subr.mxu1 %v13738_v17  ;;  %10734 = vmatprep.subr.mxu0 %v13738_v17 }
 0xeb8   :  { %10724 = vmatpush3.msra.mxu1 %v12622_v61  ;;  %10725 = vmatprep.mubr.msk.f32.mxu1 %vm11599_vm2, %v13738_v17 }
 0xeb9   :  { %10735 = vmatpush3.msra.mxu0 %v12627_v3  ;;  %10736 = vmatprep.mubr.msk.f32.mxu0 %vm11599_vm2, %v13738_v17 }
 0xeba   :  { %10726 = vmatmul.mubr.msk.f32.vlgmr.msra.gmra.mxu1 %vm536_vm3, %v12928_v37  ;;  %10737 = vmatmul.mubr.msk.f32.vlgmr.msra.gmra.mxu0 %vm536_vm3, %v12928_v37 }
 0xebb   :  { %10739 = vmatprep.subr.mxu1 %v13738_v17  ;;  %10750 = vmatprep.subr.mxu0 %v13738_v17 }
 0xebc   :  { %10740 = vmatpush3.msra.mxu1 %v13779_v35  ;;  %10751 = vmatpush3.msra.mxu0 %v13780_v52 }
 0xebd   :  { %10741 = vmatprep.subr.mxu1 %v13738_v17  ;;  %10752 = vmatprep.subr.mxu0 %v13738_v17 }
 0xebe   :  { %10742 = vmatpush3.msra.mxu1 %v13781_v18  ;;  %10753 = vmatpush3.msra.mxu0 %v13782_v20 }
 0xebf   :  { %10743 = vmatprep.subr.mxu1 %v13738_v17  ;;  %10754 = vmatprep.subr.mxu0 %v13738_v17 }
 0xec0   :  { %10744 = vmatpush3.msra.mxu1 %v13783_v29  ;;  %10755 = vmatpush3.msra.mxu0 %v13784_v40 }
 0xec1   :  { %10745 = vmatprep.subr.mxu1 %v13738_v17  ;;  %10756 = vmatprep.subr.mxu0 %v13738_v17 }
 0xec2   :  { %10746 = vmatpush3.msra.mxu1 %v13785_v58  ;;  %10747 = vmatprep.mubr.msk.f32.mxu1 %vm11599_vm2, %v13738_v17 }
 0xec3   :  { %10757 = vmatpush3.msra.mxu0 %v13786_v33  ;;  %10758 = vmatprep.mubr.msk.f32.mxu0 %vm11599_vm2, %v13738_v17 }
 0xec4   :  { %10748 = vmatmul.mubr.msk.f32.vlgmr.msra.gmra.mxu1 %vm536_vm3, %v12928_v37  ;;  %10759 = vmatmul.mubr.msk.f32.vlgmr.msra.gmra.mxu0 %vm536_vm3, %v12928_v37 }
 0xec5   :  { %10761 = vmatprep.subr.mxu1 %v13738_v17  ;;  %10769 = vmatprep.mubr.msk.f32.mxu1 %vm11599_vm2, %v13738_v17 }
 0xec6   :  { %10762 = vmatpush3.msra.mxu1 %v13787_v34  ;;  %10772 = vmatprep.subr.mxu0 %v13738_v17 }
 0xec7   :  { %10763 = vmatprep.subr.mxu1 %v13738_v17  ;;  %10776 = vmatprep.mubr.msk.f32.mxu0 %vm11599_vm2, %v13738_v17 }
 0xec8   :  { %10764 = vmatpush3.msra.mxu1 %v13788_v6 }
 0xec9   :  { %10765 = vmatprep.subr.mxu1 %v13738_v17 }
 0xeca   :  { %10766 = vmatpush3.msra.mxu1 %v13789_v30 }
 0xecb   :  { %10767 = vmatprep.subr.mxu1 %v13738_v17 }
 0xecc   :  { %10768 = vmatpush3.msra.mxu1 %v13790_v15 }
 0xecd   :  { %10790 = vmatprep.subr.mxu1 %v13738_v17 }
 0xf67   :  { %v6279_v63 = vpop.f32.mrf.mxu1  ;;  %v6349_v44 = vpop.f32.mrf.mxu0 }
 0xf68   :  { %v6280_v61 = vadd.f32 %v13791_v13, %v6279_v63  ;;  %v6350_v3 = vadd.f32 %v13792_v24, %v6349_v44 }
 0xf69   :  { %v10683_v43 = vpop.f32.mrf.mxu1  ;;  %v10694_v22 = vpop.f32.mrf.mxu0 }
 0xf70   :  { %v6419_v54 = vpop.f32.mrf.mxu1  ;;  %v6489_v56 = vpop.f32.mrf.mxu0 }
 0xf71   :  { %v6490_v34 = vadd.f32 %v13793_v57, %v6489_v56  ;;  %v6420_v13 = vadd.f32 %v12731_v38, %v6419_v54 }
 0xf72   :  { %v10705_v41 = vpop.f32.mrf.mxu1  ;;  %v10716_v59 = vpop.f32.mrf.mxu0 }
 0xf73   :  { %v13193_v41 = vld [vmem:[#allocation7 + $0x38] sm:$0xff]  ;;  %v13199_v59 = vld [vmem:[#allocation7 + $0x30] sm:$0xff] }
 0xf7a   :  { %v6562_v35 = vpop.f32.mrf.mxu1  ;;  %v6639_v52 = vpop.f32.mrf.mxu0 }
 0xf7b   :  { %v6566_v18 = vadd.f32 %v6562_v35, %v6280_v61  ;;  %v6643_v20 = vadd.f32 %v6639_v52, %v6350_v3  ;;  %v13203_v61 = vld [vmem:[#allocation7 + $0x28] sm:$0xff]  ;;  %v13207_v3 = vld [vmem:[#allocation7 + $0x20] sm:$0xff]  ;;  %v6881_v35 = vld [vmem:[#allocation10 + $0x58] sm:$0xff] }
 0xf7c   :  { %v10727_v29 = vpop.f32.mrf.mxu1  ;;  %v10738_v40 = vpop.f32.mrf.mxu0  ;;  %10773 = vmatpush3.msra.mxu0 %v6881_v35  ;;  %v6880_v52 = vld [vmem:[#allocation10 + $0x50] sm:$0xff] }
 0xf7d   :  { %v9254_v58 = vmul.f32 -1.442695, %v6566_v18  ;;  %v9256_v33 = vmul.f32 -1.442695, %v6643_v20  ;;  %10774 = vmatprep.subr.mxu0 %v13738_v17 }
 0xf7e   :  { %10775 = vmatpush3.msra.mxu0 %v6880_v52 }
 0xf7f   :  { %11267 = vpow2.f32 %v9254_v58  ;;  %10779 = vmatprep.subr.mxu0 %v13738_v17 }
 0xf80   :  { %11269 = vpow2.f32 %v9256_v33 }
 0xf84   :  { %v6716_v6 = vpop.f32.mrf.mxu1  ;;  %v6788_v30 = vpop.f32.mrf.mxu0 }
 0xf85   :  { %v6792_v15 = vadd.f32 %v6788_v30, %v6490_v34  ;;  %v6720_v16 = vadd.f32 %v6716_v6, %v6420_v13  ;;  %v13802_v30 = vld [vmem:[#allocation17_spill] sm:$0xff] }
 0xf86   :  { %v10749_v37 = vpop.f32.mrf.mxu1  ;;  %v10760_v5 = vpop.f32.mrf.mxu0 }
 0xf87   :  { %v9259_v24 = vmul.f32 -1.442695, %v6792_v15  ;;  %v13803_v15 = vld [vmem:[#allocation16_spill] sm:$0xff]  ;;  %v13804_v5 = vld [vmem:[#allocation19_spill] sm:$0xff] }
 0xf89   :  { %11271 = vpow2.f32 %v9259_v24  ;;  %v13805_v24 = vld [vmem:[#allocation18_spill] sm:$0xff] }
 0xf8a   :  { %11273 = vtanh.f32 %v6720_v16  ;;  %v13806_v16 = vld [vmem:[#allocation21_spill] sm:$0xff] }
 0xf8c   :  { %v11268_v0 = vpop.eup %11267 }
 0xf8d   :  { %v11270_v62 = vpop.eup %11269  ;;  %v6570_v19 = vadd.f32 1.0, %v11268_v0  ;;  %v13807_v0 = vld [vmem:[#allocation22_spill] sm:$0xff] }
 0xf8e   :  { %v6647_v8 = vadd.f32 1.0, %v11270_v62  ;;  %v13808_v62 = vld [vmem:[#allocation23_spill] sm:$0xff] }
 0xf8f   :  { %11275 = vrcp.f32 %v6570_v19 }
 0xf90   :  { %11277 = vrcp.f32 %v6647_v8  ;;  %v13809_v8 = vld [vmem:[#allocation24_spill] sm:$0xff] }
 0xf96   :  { %v11272_v42 = vpop.eup %11271 }
 0xf97   :  { %v11274_v60 = vpop.eup %11273  ;;  %v6796_v63 = vadd.f32 1.0, %v11272_v42  ;;  %v7272_v42 = vrot.slane %v13050_v55, 6 }
 0xf99   :  { %11279 = vrcp.f32 %v6796_v63 }
 0xf9c   :  { %v11276_v57 = vpop.eup %11275 }
 0xf9d   :  { %v11278_v39 = vpop.eup %11277  ;;  %v6800_v12 = vmul.f32 %v11276_v57, %v11274_v60 }
 0xf9e   :  { %v6799_v44 = vmul.f32 %v11278_v39, %v12925_v31  ;;  %v13187_v31 = vld [vmem:[#allocation5 + $0x60] sm:$0xff] }
 0xfa0   :  { %v13160_v43 = vadd.f32 %v6800_v12, %v6799_v44 }
 0xfa2   :  { %11281 = vtanh.f32 %v13160_v43 }
 0xfa6   :  { %v11280_v38 = vpop.eup %11279 }
 0xfaf   :  { %v11282_v22 = vpop.eup %11281 }
 0xfb0   :  { %v13163_v54 = vmul.f32 %v11282_v22, %v11280_v38 }
 0xfb2   :  { %v6804_v56 = vmax.f32 %v13163_v54, 0.0 }
 0xfb4   :  { %10770 = vmatmul.mubr.msk.f32.vlgmr.msra.gmra.mxu1 %vm536_vm3, %v6804_v56 }
 0xfb5   :  { %10791 = vmatpush3.msra.mxu1 %v12932_v36  ;;  %10798 = vmatprep.mubr.msk.f32.mxu1 %vm11599_vm2, %v13738_v17 }
 0xfb6   :  { %10792 = vmatprep.subr.mxu1 %v13738_v17 }
 0xfb7   :  { %10793 = vmatpush3.msra.mxu1 %v12938_v11 }
 0xfb8   :  { %10794 = vmatprep.subr.mxu1 %v13738_v17 }
 0xfb9   :  { %10795 = vmatpush3.msra.mxu1 %v12942_v50 }
 0xfba   :  { %10796 = vmatprep.subr.mxu1 %v13738_v17 }
 0xfbb   :  { %10797 = vmatpush3.msra.mxu1 %v12946_v51 }
 0xfbc   :  { %10799 = vmatmul.mubr.msk.f32.vlgmr.msra.gmra.mxu1 %vm536_vm3, %v13053_v7  ;;  %10812 = vmatprep.subr.mxu1 %v13738_v17 }
 0xfbd   :  { %10813 = vmatpush3.msra.mxu1 %v12952_v23  ;;  %10820 = vmatprep.mubr.msk.f32.mxu1 %vm11599_vm2, %v13738_v17 }
 0xfbe   :  { %10814 = vmatprep.subr.mxu1 %v13738_v17 }
 0xfbf   :  { %10815 = vmatpush3.msra.mxu1 %v12958_v53 }
 0xfc0   :  { %10816 = vmatprep.subr.mxu1 %v13738_v17 }
 0xfc1   :  { %10817 = vmatpush3.msra.mxu1 %v12962_v45 }
 0xfc2   :  { %10818 = vmatprep.subr.mxu1 %v13738_v17 }
 0xfc3   :  { %10819 = vmatpush3.msra.mxu1 %v13187_v31 }
 0xfc4   :  { %10821 = vmatmul.mubr.msk.f32.vlgmr.msra.gmra.mxu1 %vm536_vm3, %v13053_v7  ;;  %10834 = vmatprep.subr.mxu1 %v13738_v17 }
 0xfc5   :  { %10835 = vmatpush3.msra.mxu1 %v13193_v41  ;;  %10842 = vmatprep.mubr.msk.f32.mxu1 %vm11599_vm2, %v13738_v17 }
 0xfc6   :  { %10836 = vmatprep.subr.mxu1 %v13738_v17 }
 0xfc7   :  { %10837 = vmatpush3.msra.mxu1 %v13199_v59 }
 0xfc8   :  { %10838 = vmatprep.subr.mxu1 %v13738_v17 }
 0xfc9   :  { %10839 = vmatpush3.msra.mxu1 %v13203_v61 }
 0xfca   :  { %10840 = vmatprep.subr.mxu1 %v13738_v17 }
 0xfcb   :  { %10841 = vmatpush3.msra.mxu1 %v13207_v3 }
 0xfcc   :  { %10856 = vmatprep.subr.mxu1 %v13738_v17 }
0x1074   :  { %v6874_v18 = vpop.f32.mrf.mxu1 }
0x1075   :  { %v6875_v20 = vadd.f32 %v12781_v49, %v6874_v18 }
0x1076   :  { %v10771_v29 = vpop.f32.mrf.mxu1 }
0x1077   :  { %v6878_v40 = vmax.f32 %v6875_v20, 0.0 }
0x1079   :  { %10777 = vmatmul.mubr.msk.f32.vlgmr.msra.gmra.mxu0 %vm2542_vm4, %v6878_v40 }
0x107a   :  { %10780 = vmatpush3.msra.mxu0 %v12984_v1  ;;  %10787 = vmatprep.mubr.msk.f32.mxu0 %vm11599_vm2, %v13738_v17 }
0x107b   :  { %10781 = vmatprep.subr.mxu0 %v13738_v17 }
0x107c   :  { %10782 = vmatpush3.msra.mxu0 %v12990_v2  ;;  %v7102_v58 = vpop.f32.mrf.mxu1 }
0x107d   :  { %v7107_v33 = vrot.slane %v7102_v58, 4  ;;  %10783 = vmatprep.subr.mxu0 %v13738_v17 }
0x107e   :  { %10784 = vmatpush3.msra.mxu0 %v12994_v21  ;;  %v10800_v49 = vpop.f32.mrf.mxu1 }
0x107f   :  { %v7109_v34 = vadd.f32 %v7107_v33, %v13775_v32  ;;  %10785 = vmatprep.subr.mxu0 %v13738_v17 }
0x1080   :  { %10786 = vmatpush3.msra.mxu0 %v12999_v9 }
0x1081   :  { %v9265_v6 = vmul.f32 -1.442695, %v7109_v34  ;;  %10788 = vmatmul.mubr.msk.f32.vlgmr.msra.gmra.mxu0 %vm536_vm3, %v13053_v7  ;;  %10801 = vmatprep.subr.mxu0 %v13738_v17 }
0x1082   :  { %10802 = vmatpush3.msra.mxu0 %v13802_v30  ;;  %10809 = vmatprep.mubr.msk.f32.mxu0 %vm11599_vm2, %v13738_v17 }
0x1083   :  { %11283 = vpow2.f32 %v9265_v6  ;;  %10803 = vmatprep.subr.mxu0 %v13738_v17 }
0x1084   :  { %10804 = vmatpush3.msra.mxu0 %v13803_v15  ;;  %v7257_v37 = vpop.f32.mrf.mxu1 }
0x1085   :  { %10805 = vmatprep.subr.mxu0 %v13738_v17  ;;  %v7262_v52 = vrot.slane %v7257_v37, 4 }
0x1086   :  { %10806 = vmatpush3.msra.mxu0 %v13804_v5  ;;  %v10822_v13 = vpop.f32.mrf.mxu1 }
0x1087   :  { %10807 = vmatprep.subr.mxu0 %v13738_v17  ;;  %v7264_v29 = vadd.f32 %v7262_v52, %v13777_v28  ;;  %v13313_v52 = vld [vmem:[#allocation8 + $0x28] sm:$0xff] }
0x1088   :  { %10808 = vmatpush3.msra.mxu0 %v13805_v24  ;;  %13811 = vst [vmem:[#allocation26_spill] sm:$0xff] %v13313_v52 }
0x1089   :  { %10810 = vmatmul.mubr.msk.f32.vlgmr.msra.gmra.mxu0 %vm536_vm3, %v13053_v7  ;;  %10823 = vmatprep.subr.mxu0 %v13738_v17  ;;  %v9268_v40 = vmul.f32 -1.442695, %v7264_v29  ;;  %v13334_v29 = vld [vmem:[#allocation8 + $0x58] sm:$0xff] }
0x108a   :  { %10824 = vmatpush3.msra.mxu0 %v13806_v16  ;;  %10831 = vmatprep.mubr.msk.f32.mxu0 %vm11599_vm2, %v13738_v17  ;;  %13814 = vst [vmem:[#allocation28_spill] sm:$0xff] %v13334_v29 }
0x108b   :  { %10825 = vmatprep.subr.mxu0 %v13738_v17 }
0x108c   :  { %10826 = vmatpush3.msra.mxu0 %v13807_v0 }
0x108d   :  { %10827 = vmatprep.subr.mxu0 %v13738_v17 }
0x108e   :  { %10828 = vmatpush3.msra.mxu0 %v13808_v62 }
0x108f   :  { %10829 = vmatprep.subr.mxu0 %v13738_v17 }
0x1090   :  { %v11284_v19 = vpop.eup %11283  ;;  %10830 = vmatpush3.msra.mxu0 %v13809_v8 }
0x1091   :  { %v7113_v7 = vadd.f32 1.0, %v11284_v19  ;;  %10845 = vmatprep.subr.mxu0 %v13738_v17 }
0x1093   :  { %11285 = vrcp.f32 %v7113_v7 }
0x10a0   :  { %v11286_v60 = vpop.eup %11285 }
0x10a1   :  { %v7274_v57 = vmul.f32 %v11286_v60, %v7272_v42 }
0x1139   :  { %v6951_v39 = vpop.f32.mrf.mxu0 }
0x113a   :  { %v13252_v12 = vadd.f32 %v6951_v39, %v13045_v48 }
0x113b   :  { %v10778_v63 = vpop.f32.mrf.mxu0 }
0x113c   :  { %v13283_v63 = vld [vmem:[#allocation7 + $0x60] sm:$0xff] }
0x1141   :  { %v7022_v44 = vpop.f32.mrf.mxu0 }
0x1142   :  { %v7027_v38 = vrot.slane %v7022_v44, 4  ;;  %v13294_v44 = vld [vmem:[#allocation8 + $0x18] sm:$0xff] }
0x1143   :  { %v10789_v22 = vpop.f32.mrf.mxu0 }
0x1144   :  { %v7029_v56 = vadd.f32 %v7027_v38, %v13776_v47  ;;  %v13297_v38 = vld [vmem:[#allocation8 + $0x38] sm:$0xff]  ;;  %v13302_v22 = vld [vmem:[#allocation8 + $0x10] sm:$0xff] }
0x1146   :  { %v9263_v35 = vmul.f32 -1.442695, %v7029_v56  ;;  %v13305_v56 = vld [vmem:[#allocation8 + $0x30] sm:$0xff] }
0x1148   :  { %11287 = vpow2.f32 %v9263_v35  ;;  %v13310_v35 = vld [vmem:[#allocation8 + $0x8] sm:$0xff] }
0x1149   :  { %v7182_v18 = vpop.f32.mrf.mxu0  ;;  %11289 = vpow2.f32 %v9268_v40  ;;  %13810 = vst [vmem:[#allocation25_spill] sm:$0xff] %v13310_v35  ;;  %v13342_v40 = vld [vmem:[#allocation8 + $0x50] sm:$0xff] }
0x114a   :  { %v7187_v55 = vrot.slane %v7182_v18, 4  ;;  %v13318_v18 = vld [vmem:[#allocation8] sm:$0xff]  ;;  %13816 = vst [vmem:[#allocation30_spill] sm:$0xff] %v13342_v40 }
0x114b   :  { %v10811_v20 = vpop.f32.mrf.mxu0  ;;  %13812 = vst [vmem:[#allocation27_spill] sm:$0xff] %v13318_v18 }
0x114c   :  { %v7189_v58 = vadd.f32 %v7187_v55, %v13778_v26  ;;  %v13323_v20 = vld [vmem:[#allocation8 + $0x20] sm:$0xff]  ;;  %v13337_v55 = vld [vmem:[#allocation8 + $0x78] sm:$0xff] }
0x114d   :  { %13813 = vst [vmem:[#allocation20_spill] sm:$0xff] %v13323_v20  ;;  %13815 = vst [vmem:[#allocation29_spill] sm:$0xff] %v13337_v55 }
0x114e   :  { %11291 = vtanh.f32 %v7189_v58  ;;  %v13345_v58 = vld [vmem:[#allocation8 + $0x70] sm:$0xff] }
0x114f   :  { %13817 = vst [vmem:[#allocation31_spill] sm:$0xff] %v13345_v58 }
0x1155   :  { %v11288_v33 = vpop.eup %11287 }
0x1156   :  { %v7033_v48 = vadd.f32 1.0, %v11288_v33  ;;  %v11290_v49 = vpop.eup %11289  ;;  %v13350_v33 = vld [vmem:[#allocation8 + $0x48] sm:$0xff] }
0x1157   :  { %v7268_v13 = vadd.f32 1.0, %v11290_v49  ;;  %13818 = vst [vmem:[#allocation32_spill] sm:$0xff] %v13350_v33  ;;  %v13358_v49 = vld [vmem:[#allocation8 + $0x40] sm:$0xff] }
0x1158   :  { %11293 = vrcp.f32 %v7033_v48  ;;  %v13353_v48 = vld [vmem:[#allocation8 + $0x68] sm:$0xff]  ;;  %13820 = vst [vmem:[#allocation34_spill] sm:$0xff] %v13358_v49 }
0x1159   :  { %11295 = vrcp.f32 %v7268_v13  ;;  %13819 = vst [vmem:[#allocation33_spill] sm:$0xff] %v13353_v48  ;;  %v13395_v13 = vld [vmem:[%s13629_s7 + $0x8] sm:$0xff] }
0x115a   :  { %13824 = vst [vmem:[#allocation18_spill] sm:$0xff] %v13395_v13 }
0x115b   :  { %v11292_v34 = vpop.eup %11291 }
0x1165   :  { %v11294_v6 = vpop.eup %11293 }
0x1166   :  { %v7275_v19 = vmul.f32 %v11294_v6, %v11292_v34  ;;  %v11296_v37 = vpop.eup %11295  ;;  %v13363_v34 = vld [vmem:[#allocation8 + $0x60] sm:$0xff]  ;;  %v13378_v6 = vld [vmem:[%s13629_s7 + $0x18] sm:$0xff] }
0x1167   :  { %13821 = vst [vmem:[#allocation17_spill] sm:$0xff] %v13363_v34  ;;  %13822 = vst [vmem:[#allocation16_spill] sm:$0xff] %v13378_v6 }
0x1168   :  { %v13257_v7 = vadd.f32 %v7275_v19, %v7274_v57  ;;  %v13278_v57 = vld [vmem:[#allocation7 + $0x40] sm:$0xff]  ;;  %v13402_v19 = vld [vmem:[%s13629_s7] sm:$0xff] }
0x1169   :  { %13825 = vst [vmem:[#allocation21_spill] sm:$0xff] %v13402_v19 }
0x116a   :  { %11297 = vtanh.f32 %v13257_v7 }
0x1177   :  { %v11298_v42 = vpop.eup %11297 }
0x1178   :  { %v7278_v60 = vmul.f32 %v11298_v42, %v11296_v37 }
0x117a   :  { %v13260_v39 = vrot.slane %v7278_v60, 4 }
0x117c   :  { %10832 = vmatmul.mubr.msk.f32.vlgmr.msra.gmra.mxu0 %vm536_vm3, %v13260_v39  ;;  %10843 = vmatmul.mubr.msk.f32.vlgmr.msra.gmra.mxu1 %vm536_vm3, %v13260_v39 }
0x117d   :  { %10846 = vmatpush3.msra.mxu0 %v13059_v10  ;;  %10857 = vmatpush3.msra.mxu1 %v13062_v4 }
0x117e   :  { %10847 = vmatprep.subr.mxu0 %v13738_v17  ;;  %10858 = vmatprep.subr.mxu1 %v13738_v17 }
0x117f   :  { %10848 = vmatpush3.msra.mxu0 %v13067_v25  ;;  %10859 = vmatpush3.msra.mxu1 %v13070_v27 }
0x1180   :  { %10849 = vmatprep.subr.mxu0 %v13738_v17  ;;  %10860 = vmatprep.subr.mxu1 %v13738_v17 }
0x1181   :  { %10850 = vmatpush3.msra.mxu0 %v13075_v46  ;;  %10861 = vmatpush3.msra.mxu1 %v13078_v14 }
0x1182   :  { %10851 = vmatprep.subr.mxu0 %v13738_v17  ;;  %10862 = vmatprep.subr.mxu1 %v13738_v17 }
0x1183   :  { %10852 = vmatpush3.msra.mxu0 %v13278_v57  ;;  %10853 = vmatprep.mubr.msk.f32.mxu0 %vm11599_vm2, %v13738_v17 }
0x1184   :  { %10863 = vmatpush3.msra.mxu1 %v13283_v63  ;;  %10864 = vmatprep.mubr.msk.f32.mxu1 %vm11599_vm2, %v13738_v17 }
0x1185   :  { %10854 = vmatmul.mubr.msk.f32.vlgmr.msra.gmra.mxu0 %vm536_vm3, %v13260_v39  ;;  %10865 = vmatmul.mubr.msk.f32.vlgmr.msra.gmra.mxu1 %vm536_vm3, %v13260_v39 }
0x1186   :  { %10867 = vmatprep.subr.mxu0 %v13738_v17  ;;  %10878 = vmatprep.subr.mxu1 %v13738_v17 }
0x1187   :  { %10868 = vmatpush3.msra.mxu0 %v13294_v44  ;;  %10879 = vmatpush3.msra.mxu1 %v13297_v38 }
0x1188   :  { %10869 = vmatprep.subr.mxu0 %v13738_v17  ;;  %10880 = vmatprep.subr.mxu1 %v13738_v17 }
0x1189   :  { %10870 = vmatpush3.msra.mxu0 %v13302_v22  ;;  %10881 = vmatpush3.msra.mxu1 %v13305_v56 }
0x118a   :  { %10871 = vmatprep.subr.mxu0 %v13738_v17  ;;  %10882 = vmatprep.subr.mxu1 %v13738_v17 }
0x118b   :  { %10872 = vmatpush3.msra.mxu0 %v13310_v35  ;;  %10883 = vmatpush3.msra.mxu1 %v13313_v52 }
0x118c   :  { %10873 = vmatprep.subr.mxu0 %v13738_v17  ;;  %10884 = vmatprep.subr.mxu1 %v13738_v17 }
0x118d   :  { %10874 = vmatpush3.msra.mxu0 %v13318_v18  ;;  %10875 = vmatprep.mubr.msk.f32.mxu0 %vm11599_vm2, %v13738_v17 }
0x118e   :  { %10885 = vmatpush3.msra.mxu1 %v13323_v20  ;;  %10886 = vmatprep.mubr.msk.f32.mxu1 %vm11599_vm2, %v13738_v17 }
0x118f   :  { %10876 = vmatmul.mubr.msk.f32.vlgmr.msra.gmra.mxu0 %vm536_vm3, %v13163_v54  ;;  %10887 = vmatmul.mubr.msk.f32.vlgmr.msra.gmra.mxu1 %vm536_vm3, %v13163_v54 }
0x1190   :  { %10889 = vmatprep.subr.mxu0 %v13738_v17  ;;  %10900 = vmatprep.subr.mxu1 %v13738_v17 }
0x1191   :  { %10890 = vmatpush3.msra.mxu0 %v13334_v29  ;;  %10901 = vmatpush3.msra.mxu1 %v13337_v55 }
0x1192   :  { %10891 = vmatprep.subr.mxu0 %v13738_v17  ;;  %10902 = vmatprep.subr.mxu1 %v13738_v17 }
0x1193   :  { %10892 = vmatpush3.msra.mxu0 %v13342_v40  ;;  %10903 = vmatpush3.msra.mxu1 %v13345_v58 }
0x1194   :  { %10893 = vmatprep.subr.mxu0 %v13738_v17  ;;  %10904 = vmatprep.subr.mxu1 %v13738_v17 }
0x1195   :  { %10894 = vmatpush3.msra.mxu0 %v13350_v33  ;;  %10905 = vmatpush3.msra.mxu1 %v13353_v48 }
0x1196   :  { %10895 = vmatprep.subr.mxu0 %v13738_v17  ;;  %10906 = vmatprep.subr.mxu1 %v13738_v17 }
0x1197   :  { %10896 = vmatpush3.msra.mxu0 %v13358_v49  ;;  %10897 = vmatprep.mubr.msk.f32.mxu0 %vm11599_vm2, %v13738_v17 }
0x1198   :  { %10907 = vmatpush3.msra.mxu1 %v13363_v34  ;;  %10908 = vmatprep.mubr.msk.f32.mxu1 %vm11599_vm2, %v13738_v17 }
0x1199   :  { %10898 = vmatmul.mubr.msk.f32.vlgmr.msra.gmra.mxu0 %vm536_vm3, %v13163_v54  ;;  %10909 = vmatmul.mubr.msk.f32.vlgmr.msra.gmra.mxu1 %vm536_vm3, %v13163_v54  ;;  %v13388_v54 = vld [vmem:[%s13629_s7 + $0x10] sm:$0xff] }
0x119a   :  { %10911 = vmatprep.subr.mxu0 %v13738_v17  ;;  %10919 = vmatprep.mubr.msk.f32.mxu0 %vm11599_vm2, %v13738_v17  ;;  %13823 = vst [vmem:[#allocation19_spill] sm:$0xff] %v13388_v54 }
0x119b   :  { %10912 = vmatpush3.msra.mxu0 %v13378_v6  ;;  %10922 = vmatprep.subr.mxu1 %v13738_v17 }
0x119c   :  { %10913 = vmatprep.subr.mxu0 %v13738_v17  ;;  %10926 = vmatprep.mubr.msk.f32.mxu1 %vm11599_vm2, %v13738_v17 }
0x119d   :  { %10914 = vmatpush3.msra.mxu0 %v13388_v54 }
0x119e   :  { %10915 = vmatprep.subr.mxu0 %v13738_v17 }
0x119f   :  { %10916 = vmatpush3.msra.mxu0 %v13395_v13  ;;  %v13409_v13 = vld [vmem:[%s13628_s6] ss:$0 sm:$0xff] }
0x11a0   :  { %10917 = vmatprep.subr.mxu0 %v13738_v17  ;;  %13826 = vst [vmem:[#allocation22_spill] sm:$0xff] %v13409_v13 }
0x11a1   :  { %10918 = vmatpush3.msra.mxu0 %v13402_v19  ;;  %v13415_v19 = vld [vmem:[%s13628_s6 + $0x1] ss:$0 sm:$0xff] }
0x11a2   :  { %10940 = vmatprep.subr.mxu0 %v13738_v17  ;;  %13827 = vst [vmem:[#allocation23_spill] sm:$0xff] %v13415_v19 }
0x123c   :  { %v7349_v37 = vpop.f32.mrf.mxu0  ;;  %v7419_v42 = vpop.f32.mrf.mxu1 }
0x123d   :  { %v7350_v33 = vadd.f32 %v13409_v13, %v7349_v37  ;;  %v7420_v58 = vadd.f32 %v13415_v19, %v7419_v42  ;;  %v13421_v37 = vld [vmem:[%s13628_s6 + $0x3] ss:$0 sm:$0xff] }
0x123e   :  { %v10833_v60 = vpop.f32.mrf.mxu0  ;;  %v10844_v54 = vpop.f32.mrf.mxu1  ;;  %13828 = vst [vmem:[#allocation24_spill] sm:$0xff] %v13421_v37 }
0x1245   :  { %v7489_v6 = vpop.f32.mrf.mxu0  ;;  %v7559_v34 = vpop.f32.mrf.mxu1 }
0x1246   :  { %v7560_v13 = vadd.f32 %v13421_v37, %v7559_v34 }
0x1247   :  { %v10855_v49 = vpop.f32.mrf.mxu0  ;;  %v10866_v48 = vpop.f32.mrf.mxu1 }
0x124f   :  { %v7632_v60 = vpop.f32.mrf.mxu0  ;;  %v7709_v54 = vpop.f32.mrf.mxu1 }
0x1250   :  { %v7636_v40 = vadd.f32 %v7632_v60, %v7350_v33  ;;  %v7713_v55 = vadd.f32 %v7709_v54, %v7420_v58  ;;  %v13427_v58 = vld [vmem:[%s13628_s6 + $0x2] ss:$0 sm:$0xff] }
0x1251   :  { %v10877_v49 = vpop.f32.mrf.mxu0  ;;  %v10888_v48 = vpop.f32.mrf.mxu1 }
0x1252   :  { %v9274_v29 = vmul.f32 -1.442695, %v7636_v40  ;;  %v9276_v20 = vmul.f32 -1.442695, %v7713_v55 }
0x1254   :  { %11299 = vpow2.f32 %v9274_v29  ;;  %v7490_v29 = vadd.f32 %v13427_v58, %v7489_v6 }
0x1255   :  { %11301 = vpow2.f32 %v9276_v20 }
0x1259   :  { %v7786_v18 = vpop.f32.mrf.mxu0  ;;  %v7858_v52 = vpop.f32.mrf.mxu1 }
0x125a   :  { %v7862_v42 = vadd.f32 %v7858_v52, %v7560_v13  ;;  %v7790_v55 = vadd.f32 %v7786_v18, %v7490_v29 }
0x125b   :  { %v10899_v19 = vpop.f32.mrf.mxu0  ;;  %v10910_v35 = vpop.f32.mrf.mxu1 }
0x125c   :  { %v9279_v20 = vmul.f32 -1.442695, %v7862_v42 }
0x125e   :  { %11303 = vpow2.f32 %v9279_v20 }
0x125f   :  { %11305 = vtanh.f32 %v7790_v55 }
0x1261   :  { %v11300_v40 = vpop.eup %11299 }
0x1262   :  { %v11302_v33 = vpop.eup %11301  ;;  %v7640_v60 = vadd.f32 1.0, %v11300_v40 }
0x1263   :  { %v7717_v54 = vadd.f32 1.0, %v11302_v33 }
0x1264   :  { %11307 = vrcp.f32 %v7640_v60 }
0x1265   :  { %11309 = vrcp.f32 %v7717_v54 }
0x126b   :  { %v11304_v52 = vpop.eup %11303 }
0x126c   :  { %v11306_v34 = vpop.eup %11305  ;;  %v7866_v49 = vadd.f32 1.0, %v11304_v52 }
0x126e   :  { %11311 = vrcp.f32 %v7866_v49 }
0x1271   :  { %v11308_v35 = vpop.eup %11307 }
0x1272   :  { %v11310_v13 = vpop.eup %11309  ;;  %v7870_v19 = vmul.f32 %v11308_v35, %v11306_v34 }
0x1273   :  { %v7869_v48 = vmul.f32 %v11310_v13, %v13160_v43 }
0x1275   :  { %v13431_v37 = vadd.f32 %v7870_v19, %v7869_v48 }
0x1277   :  { %11313 = vtanh.f32 %v13431_v37 }
0x127b   :  { %v11312_v18 = vpop.eup %11311 }
0x1284   :  { %v11314_v6 = vpop.eup %11313 }
0x1285   :  { %v13434_v42 = vmul.f32 %v11314_v6, %v11312_v18 }
0x1287   :  { %v7874_v29 = vmax.f32 %v13434_v42, 0.0 }
0x1289   :  { %10920 = vmatmul.mubr.msk.f32.vlgmr.msra.gmra.mxu0 %vm536_vm3, %v7874_v29  ;;  %v13842_v29 = vld [vmem:[#allocation19_spill] sm:$0xff] }
0x128a   :  { %10941 = vmatpush3.msra.mxu0 %v12932_v36  ;;  %10948 = vmatprep.mubr.msk.f32.mxu0 %vm11599_vm2, %v13738_v17  ;;  %v7951_v36 = vld [vmem:[#allocation10 + $0x68] sm:$0xff] }
0x128b   :  { %10942 = vmatprep.subr.mxu0 %v13738_v17  ;;  %10923 = vmatpush3.msra.mxu1 %v7951_v36  ;;  %v13843_v36 = vld [vmem:[#allocation18_spill] sm:$0xff] }
0x128c   :  { %10943 = vmatpush3.msra.mxu0 %v12938_v11  ;;  %10924 = vmatprep.subr.mxu1 %v13738_v17  ;;  %v7950_v11 = vld [vmem:[#allocation10 + $0x60] sm:$0xff] }
0x128d   :  { %10944 = vmatprep.subr.mxu0 %v13738_v17  ;;  %10925 = vmatpush3.msra.mxu1 %v7950_v11 }
0x128e   :  { %10945 = vmatpush3.msra.mxu0 %v12942_v50  ;;  %10929 = vmatprep.subr.mxu1 %v13738_v17 }
0x128f   :  { %10946 = vmatprep.subr.mxu0 %v13738_v17 }
0x1290   :  { %10947 = vmatpush3.msra.mxu0 %v12946_v51  ;;  %v13477_v51 = vld [vmem:[%s13630_s8] ss:$0 sm:$0xff] }
0x1291   :  { %10949 = vmatmul.mubr.msk.f32.vlgmr.msra.gmra.mxu0 %vm536_vm3, %v13260_v39  ;;  %10962 = vmatprep.subr.mxu0 %v13738_v17 }
0x1292   :  { %10963 = vmatpush3.msra.mxu0 %v12952_v23  ;;  %10970 = vmatprep.mubr.msk.f32.mxu0 %vm11599_vm2, %v13738_v17 }
0x1293   :  { %10964 = vmatprep.subr.mxu0 %v13738_v17 }
0x1294   :  { %10965 = vmatpush3.msra.mxu0 %v12958_v53 }
0x1295   :  { %10966 = vmatprep.subr.mxu0 %v13738_v17 }
0x1296   :  { %10967 = vmatpush3.msra.mxu0 %v12962_v45 }
0x1297   :  { %10968 = vmatprep.subr.mxu0 %v13738_v17 }
0x1298   :  { %10969 = vmatpush3.msra.mxu0 %v13187_v31 }
0x1299   :  { %10971 = vmatmul.mubr.msk.f32.vlgmr.msra.gmra.mxu0 %vm536_vm3, %v13260_v39  ;;  %10984 = vmatprep.subr.mxu0 %v13738_v17 }
0x129a   :  { %10985 = vmatpush3.msra.mxu0 %v13193_v41  ;;  %10992 = vmatprep.mubr.msk.f32.mxu0 %vm11599_vm2, %v13738_v17 }
0x129b   :  { %10986 = vmatprep.subr.mxu0 %v13738_v17 }
0x129c   :  { %10987 = vmatpush3.msra.mxu0 %v13199_v59 }
0x129d   :  { %10988 = vmatprep.subr.mxu0 %v13738_v17 }
0x129e   :  { %10989 = vmatpush3.msra.mxu0 %v13203_v61  ;;  %v8342_v61 = vrot.slane %v13257_v7, 6 }
0x129f   :  { %10990 = vmatprep.subr.mxu0 %v13738_v17 }
0x12a0   :  { %10991 = vmatpush3.msra.mxu0 %v13207_v3 }
0x12a1   :  { %11006 = vmatprep.subr.mxu0 %v13738_v17 }
0x1349   :  { %v7944_v50 = vpop.f32.mrf.mxu0 }
0x134a   :  { %v7945_v23 = vadd.f32 %v13477_v51, %v7944_v50 }
0x134b   :  { %v10921_v53 = vpop.f32.mrf.mxu0 }
0x134c   :  { %v7948_v45 = vmax.f32 %v7945_v23, 0.0 }
0x134e   :  { %10927 = vmatmul.mubr.msk.f32.vlgmr.msra.gmra.mxu1 %vm2542_vm4, %v7948_v45 }
0x134f   :  { %10930 = vmatpush3.msra.mxu1 %v12984_v1  ;;  %10937 = vmatprep.mubr.msk.f32.mxu1 %vm11599_vm2, %v13738_v17 }
0x1350   :  { %10931 = vmatprep.subr.mxu1 %v13738_v17 }
0x1351   :  { %10932 = vmatpush3.msra.mxu1 %v12990_v2  ;;  %v8172_v43 = vpop.f32.mrf.mxu0 }
0x1352   :  { %v8177_v31 = vrot.slane %v8172_v43, 2  ;;  %10933 = vmatprep.subr.mxu1 %v13738_v17 }
0x1353   :  { %10934 = vmatpush3.msra.mxu1 %v12994_v21  ;;  %v10950_v41 = vpop.f32.mrf.mxu0 }
0x1354   :  { %v8179_v59 = vadd.f32 %v8177_v31, %v13775_v32  ;;  %10935 = vmatprep.subr.mxu1 %v13738_v17 }
0x1355   :  { %10936 = vmatpush3.msra.mxu1 %v12999_v9 }
0x1356   :  { %v9285_v1 = vmul.f32 -1.442695, %v8179_v59  ;;  %10938 = vmatmul.mubr.msk.f32.vlgmr.msra.gmra.mxu1 %vm536_vm3, %v13260_v39  ;;  %10951 = vmatprep.subr.mxu1 %v13738_v17  ;;  %v13845_v59 = vld [vmem:[#allocation22_spill] sm:$0xff] }
0x1357   :  { %10952 = vmatpush3.msra.mxu1 %v13802_v30  ;;  %10959 = vmatprep.mubr.msk.f32.mxu1 %vm11599_vm2, %v13738_v17 }
0x1358   :  { %11315 = vpow2.f32 %v9285_v1  ;;  %10953 = vmatprep.subr.mxu1 %v13738_v17 }
0x1359   :  { %10954 = vmatpush3.msra.mxu1 %v13803_v15  ;;  %v8327_v32 = vpop.f32.mrf.mxu0 }
0x135a   :  { %10955 = vmatprep.subr.mxu1 %v13738_v17 }
0x135b   :  { %10956 = vmatpush3.msra.mxu1 %v13804_v5  ;;  %v10972_v2 = vpop.f32.mrf.mxu0 }
0x135c   :  { %10957 = vmatprep.subr.mxu1 %v13738_v17 }
0x135d   :  { %10958 = vmatpush3.msra.mxu1 %v13805_v24 }
0x135e   :  { %10960 = vmatmul.mubr.msk.f32.vlgmr.msra.gmra.mxu1 %vm536_vm3, %v13260_v39  ;;  %10973 = vmatprep.subr.mxu1 %v13738_v17 }
0x135f   :  { %10974 = vmatpush3.msra.mxu1 %v13806_v16  ;;  %10981 = vmatprep.mubr.msk.f32.mxu1 %vm11599_vm2, %v13738_v17 }
0x1360   :  { %10975 = vmatprep.subr.mxu1 %v13738_v17 }
0x1361   :  { %10976 = vmatpush3.msra.mxu1 %v13807_v0 }
0x1362   :  { %10977 = vmatprep.subr.mxu1 %v13738_v17 }
0x1363   :  { %10978 = vmatpush3.msra.mxu1 %v13808_v62 }
0x1364   :  { %10979 = vmatprep.subr.mxu1 %v13738_v17 }
0x1365   :  { %v11316_v21 = vpop.eup %11315  ;;  %10980 = vmatpush3.msra.mxu1 %v13809_v8  ;;  %v8332_v8 = vrot.slane %v8327_v32, 2  ;;  %v13846_v32 = vld [vmem:[#allocation23_spill] sm:$0xff] }
0x1366   :  { %v8183_v9 = vadd.f32 1.0, %v11316_v21  ;;  %10995 = vmatprep.subr.mxu1 %v13738_v17 }
0x1367   :  { %v8334_v33 = vadd.f32 %v8332_v8, %v13777_v28 }
0x1368   :  { %11317 = vrcp.f32 %v8183_v9 }
0x1369   :  { %v9288_v60 = vmul.f32 -1.442695, %v8334_v33 }
0x1375   :  { %v11318_v3 = vpop.eup %11317 }
0x1376   :  { %v8344_v30 = vmul.f32 %v11318_v3, %v8342_v61 }
0x140e   :  { %v8021_v15 = vpop.f32.mrf.mxu1 }
0x140f   :  { %v13518_v5 = vadd.f32 %v8021_v15, %v13252_v12 }
0x1410   :  { %v10928_v24 = vpop.f32.mrf.mxu1 }
0x1416   :  { %v8092_v16 = vpop.f32.mrf.mxu1 }
0x1417   :  { %v8097_v0 = vrot.slane %v8092_v16, 2 }
0x1418   :  { %v10939_v62 = vpop.f32.mrf.mxu1 }
0x1419   :  { %v8099_v39 = vadd.f32 %v8097_v0, %v13776_v47  ;;  %v13847_v0 = vld [vmem:[#allocation24_spill] sm:$0xff] }
0x141b   :  { %v9283_v20 = vmul.f32 -1.442695, %v8099_v39 }
0x141d   :  { %11319 = vpow2.f32 %v9283_v20 }
0x141e   :  { %v8252_v55 = vpop.f32.mrf.mxu1  ;;  %11321 = vpow2.f32 %v9288_v60 }
0x141f   :  { %v8257_v7 = vrot.slane %v8252_v55, 2 }
0x1420   :  { %v10961_v40 = vpop.f32.mrf.mxu1 }
0x1421   :  { %v8259_v54 = vadd.f32 %v8257_v7, %v13778_v26  ;;  %v13829_v26 = vld [vmem:[#allocation25_spill] sm:$0xff] }
0x1423   :  { %11323 = vtanh.f32 %v8259_v54 }
0x142a   :  { %v11320_v52 = vpop.eup %11319 }
0x142b   :  { %v8103_v12 = vadd.f32 1.0, %v11320_v52  ;;  %v11322_v34 = vpop.eup %11321 }
0x142c   :  { %v8338_v47 = vadd.f32 1.0, %v11322_v34 }
0x142d   :  { %11325 = vrcp.f32 %v8103_v12 }
0x142e   :  { %11327 = vrcp.f32 %v8338_v47 }
0x1430   :  { %v11324_v35 = vpop.eup %11323 }
0x143a   :  { %v11326_v13 = vpop.eup %11325 }
0x143b   :  { %v8345_v19 = vmul.f32 %v11326_v13, %v11324_v35  ;;  %v11328_v48 = vpop.eup %11327 }
0x143d   :  { %v8346_v49 = vadd.f32 %v8345_v19, %v8344_v30 }
0x143f   :  { %11329 = vtanh.f32 %v8346_v49 }
0x144c   :  { %v11330_v18 = vpop.eup %11329 }
0x144d   :  { %v8348_v28 = vmul.f32 %v11330_v18, %v11328_v48 }
0x144f   :  { %v8350_v6 = vrot.slane %v8348_v28, 6 }
0x1451   :  { %10982 = vmatmul.mubr.msk.f32.vlgmr.msra.gmra.mxu1 %vm536_vm3, %v8350_v6  ;;  %10993 = vmatmul.mubr.msk.f32.vlgmr.msra.gmra.mxu0 %vm536_vm3, %v8350_v6 }
0x1452   :  { %10996 = vmatpush3.msra.mxu1 %v13059_v10  ;;  %11007 = vmatpush3.msra.mxu0 %v13062_v4  ;;  %v13830_v10 = vld [vmem:[#allocation26_spill] sm:$0xff]  ;;  %v13831_v4 = vld [vmem:[#allocation27_spill] sm:$0xff] }
0x1453   :  { %10997 = vmatprep.subr.mxu1 %v13738_v17  ;;  %11008 = vmatprep.subr.mxu0 %v13738_v17 }
0x1454   :  { %10998 = vmatpush3.msra.mxu1 %v13067_v25  ;;  %11009 = vmatpush3.msra.mxu0 %v13070_v27  ;;  %v13832_v25 = vld [vmem:[#allocation20_spill] sm:$0xff] }
0x1455   :  { %10999 = vmatprep.subr.mxu1 %v13738_v17  ;;  %11010 = vmatprep.subr.mxu0 %v13738_v17  ;;  %v13833_v27 = vld [vmem:[#allocation28_spill] sm:$0xff] }
0x1456   :  { %11000 = vmatpush3.msra.mxu1 %v13075_v46  ;;  %11011 = vmatpush3.msra.mxu0 %v13078_v14  ;;  %v13834_v46 = vld [vmem:[#allocation29_spill] sm:$0xff]  ;;  %v13835_v14 = vld [vmem:[#allocation30_spill] sm:$0xff] }
0x1457   :  { %11001 = vmatprep.subr.mxu1 %v13738_v17  ;;  %11012 = vmatprep.subr.mxu0 %v13738_v17 }
0x1458   :  { %11002 = vmatpush3.msra.mxu1 %v13278_v57  ;;  %11003 = vmatprep.mubr.msk.f32.mxu1 %vm11599_vm2, %v13738_v17  ;;  %v13836_v57 = vld [vmem:[#allocation31_spill] sm:$0xff] }
0x1459   :  { %11013 = vmatpush3.msra.mxu0 %v13283_v63  ;;  %11014 = vmatprep.mubr.msk.f32.mxu0 %vm11599_vm2, %v13738_v17  ;;  %v13837_v63 = vld [vmem:[#allocation32_spill] sm:$0xff] }
0x145a   :  { %11004 = vmatmul.mubr.msk.f32.vlgmr.msra.gmra.mxu1 %vm536_vm3, %v8350_v6  ;;  %11015 = vmatmul.mubr.msk.f32.vlgmr.msra.gmra.mxu0 %vm536_vm3, %v8350_v6 }
0x145b   :  { %11017 = vmatprep.subr.mxu1 %v13738_v17  ;;  %11028 = vmatprep.subr.mxu0 %v13738_v17 }
0x145c   :  { %11018 = vmatpush3.msra.mxu1 %v13294_v44  ;;  %11029 = vmatpush3.msra.mxu0 %v13297_v38  ;;  %v13838_v44 = vld [vmem:[#allocation33_spill] sm:$0xff]  ;;  %v13839_v38 = vld [vmem:[#allocation34_spill] sm:$0xff] }
0x145d   :  { %11019 = vmatprep.subr.mxu1 %v13738_v17  ;;  %11030 = vmatprep.subr.mxu0 %v13738_v17 }
0x145e   :  { %11020 = vmatpush3.msra.mxu1 %v13302_v22  ;;  %11031 = vmatpush3.msra.mxu0 %v13305_v56  ;;  %v13840_v22 = vld [vmem:[#allocation17_spill] sm:$0xff]  ;;  %v13841_v56 = vld [vmem:[#allocation16_spill] sm:$0xff] }
0x145f   :  { %11021 = vmatprep.subr.mxu1 %v13738_v17  ;;  %11032 = vmatprep.subr.mxu0 %v13738_v17 }
0x1460   :  { %11022 = vmatpush3.msra.mxu1 %v13829_v26  ;;  %11033 = vmatpush3.msra.mxu0 %v13830_v10 }
0x1461   :  { %11023 = vmatprep.subr.mxu1 %v13738_v17  ;;  %11034 = vmatprep.subr.mxu0 %v13738_v17 }
0x1462   :  { %11024 = vmatpush3.msra.mxu1 %v13831_v4  ;;  %11025 = vmatprep.mubr.msk.f32.mxu1 %vm11599_vm2, %v13738_v17  ;;  %v9021_v4 = vld [vmem:[#allocation10 + $0x78] sm:$0xff] }
0x1463   :  { %11035 = vmatpush3.msra.mxu0 %v13832_v25  ;;  %11036 = vmatprep.mubr.msk.f32.mxu0 %vm11599_vm2, %v13738_v17  ;;  %v9020_v25 = vld [vmem:[#allocation10 + $0x70] sm:$0xff] }
0x1464   :  { %11026 = vmatmul.mubr.msk.f32.vlgmr.msra.gmra.mxu1 %vm536_vm3, %v13434_v42  ;;  %11037 = vmatmul.mubr.msk.f32.vlgmr.msra.gmra.mxu0 %vm536_vm3, %v13434_v42 }
0x1465   :  { %11039 = vmatprep.subr.mxu1 %v13738_v17  ;;  %11050 = vmatprep.subr.mxu0 %v13738_v17 }
0x1466   :  { %11040 = vmatpush3.msra.mxu1 %v13833_v27  ;;  %11051 = vmatpush3.msra.mxu0 %v13834_v46 }
0x1467   :  { %11041 = vmatprep.subr.mxu1 %v13738_v17  ;;  %11052 = vmatprep.subr.mxu0 %v13738_v17 }
0x1468   :  { %11042 = vmatpush3.msra.mxu1 %v13835_v14  ;;  %11053 = vmatpush3.msra.mxu0 %v13836_v57 }
0x1469   :  { %11043 = vmatprep.subr.mxu1 %v13738_v17  ;;  %11054 = vmatprep.subr.mxu0 %v13738_v17 }
0x146a   :  { %11044 = vmatpush3.msra.mxu1 %v13837_v63  ;;  %11055 = vmatpush3.msra.mxu0 %v13838_v44  ;;  %v9302_v63 = vld [vmem:[%s13632_s10] ss:$0 sm:$0xff] }
0x146b   :  { %11045 = vmatprep.subr.mxu1 %v13738_v17  ;;  %11056 = vmatprep.subr.mxu0 %v13738_v17 }
0x146c   :  { %11046 = vmatpush3.msra.mxu1 %v13839_v38  ;;  %11047 = vmatprep.mubr.msk.f32.mxu1 %vm11599_vm2, %v13738_v17 }
0x146d   :  { %11057 = vmatpush3.msra.mxu0 %v13840_v22  ;;  %11058 = vmatprep.mubr.msk.f32.mxu0 %vm11599_vm2, %v13738_v17 }
0x146e   :  { %11048 = vmatmul.mubr.msk.f32.vlgmr.msra.gmra.mxu1 %vm536_vm3, %v13434_v42  ;;  %11059 = vmatmul.mubr.msk.f32.vlgmr.msra.gmra.mxu0 %vm536_vm3, %v13434_v42  ;;  %v13844_v42 = vld [vmem:[#allocation21_spill] sm:$0xff] }
0x146f   :  { %11061 = vmatprep.subr.mxu1 %v13738_v17  ;;  %11069 = vmatprep.mubr.msk.f32.mxu1 %vm11599_vm2, %v13738_v17 }
0x1470   :  { %11062 = vmatpush3.msra.mxu1 %v13841_v56  ;;  %11072 = vmatprep.subr.mxu0 %v13738_v17 }
0x1471   :  { %11063 = vmatprep.subr.mxu1 %v13738_v17  ;;  %11076 = vmatprep.mubr.msk.f32.mxu0 %vm11599_vm2, %v13738_v17 }
0x1472   :  { %11064 = vmatpush3.msra.mxu1 %v13842_v29  ;;  %11073 = vmatpush3.msra.mxu0 %v9021_v4 }
0x1473   :  { %11065 = vmatprep.subr.mxu1 %v13738_v17  ;;  %11074 = vmatprep.subr.mxu0 %v13738_v17 }
0x1474   :  { %11066 = vmatpush3.msra.mxu1 %v13843_v36  ;;  %11075 = vmatpush3.msra.mxu0 %v9020_v25 }
0x1475   :  { %11067 = vmatprep.subr.mxu1 %v13738_v17 }
0x1476   :  { %11068 = vmatpush3.msra.mxu1 %v13844_v42 }
0x1511   :  { %v8419_v11 = vpop.f32.mrf.mxu1  ;;  %v8489_v50 = vpop.f32.mrf.mxu0 }
0x1512   :  { %v8420_v1 = vadd.f32 %v13845_v59, %v8419_v11  ;;  %v8490_v2 = vadd.f32 %v13846_v32, %v8489_v50 }
0x1513   :  { %v10983_v23 = vpop.f32.mrf.mxu1  ;;  %v10994_v53 = vpop.f32.mrf.mxu0 }
0x151a   :  { %v8559_v45 = vpop.f32.mrf.mxu1  ;;  %v8629_v43 = vpop.f32.mrf.mxu0 }
0x151b   :  { %v8630_v62 = vadd.f32 %v13847_v0, %v8629_v43  ;;  %v8560_v33 = vadd.f32 %v13427_v58, %v8559_v45 }
0x151c   :  { %v11005_v31 = vpop.f32.mrf.mxu1  ;;  %v11016_v41 = vpop.f32.mrf.mxu0 }
0x1524   :  { %v8702_v21 = vpop.f32.mrf.mxu1  ;;  %v8779_v9 = vpop.f32.mrf.mxu0 }
0x1525   :  { %v8706_v61 = vadd.f32 %v8702_v21, %v8420_v1  ;;  %v8783_v3 = vadd.f32 %v8779_v9, %v8490_v2 }
0x1526   :  { %v11027_v30 = vpop.f32.mrf.mxu1  ;;  %v11038_v15 = vpop.f32.mrf.mxu0 }
0x1527   :  { %v9294_v24 = vmul.f32 -1.442695, %v8706_v61  ;;  %v9296_v16 = vmul.f32 -1.442695, %v8783_v3 }
0x1529   :  { %11331 = vpow2.f32 %v9294_v24 }
0x152a   :  { %11333 = vpow2.f32 %v9296_v16 }
0x152e   :  { %v8856_v39 = vpop.f32.mrf.mxu1  ;;  %v8928_v20 = vpop.f32.mrf.mxu0 }
0x152f   :  { %v8932_v8 = vadd.f32 %v8928_v20, %v8630_v62  ;;  %v8860_v60 = vadd.f32 %v8856_v39, %v8560_v33 }
0x1530   :  { %v11049_v55 = vpop.f32.mrf.mxu1  ;;  %v11060_v40 = vpop.f32.mrf.mxu0 }
0x1531   :  { %v9299_v7 = vmul.f32 -1.442695, %v8932_v8 }
0x1533   :  { %11335 = vpow2.f32 %v9299_v7 }
0x1534   :  { %11337 = vtanh.f32 %v8860_v60 }
0x1536   :  { %v11332_v54 = vpop.eup %11331 }
0x1537   :  { %v11334_v52 = vpop.eup %11333  ;;  %v8710_v12 = vadd.f32 1.0, %v11332_v54 }
0x1538   :  { %v8787_v34 = vadd.f32 1.0, %v11334_v52 }
0x1539   :  { %11339 = vrcp.f32 %v8710_v12 }
0x153a   :  { %11341 = vrcp.f32 %v8787_v34 }
0x1540   :  { %v11336_v35 = vpop.eup %11335 }
0x1541   :  { %v11338_v13 = vpop.eup %11337  ;;  %v8936_v48 = vadd.f32 1.0, %v11336_v35 }
0x1543   :  { %11343 = vrcp.f32 %v8936_v48 }
0x1546   :  { %v11340_v47 = vpop.eup %11339 }
0x1547   :  { %v11342_v19 = vpop.eup %11341  ;;  %v8940_v49 = vmul.f32 %v11340_v47, %v11338_v13 }
0x1548   :  { %v8939_v18 = vmul.f32 %v11342_v19, %v13431_v37 }
0x154a   :  { %v8941_v28 = vadd.f32 %v8940_v49, %v8939_v18 }
0x154c   :  { %11345 = vtanh.f32 %v8941_v28 }
0x1550   :  { %v11344_v58 = vpop.eup %11343 }
0x1559   :  { %v11346_v6 = vpop.eup %11345 }
0x155a   :  { %v8943_v26 = vmul.f32 %v11346_v6, %v11344_v58 }
0x155c   :  { %v8944_v10 = vmax.f32 %v8943_v26, 0.0 }
0x155e   :  { %11070 = vmatmul.mubr.msk.f32.vlgmr.msra.gmra.mxu1 %vm536_vm3, %v8944_v10 }
0x161e   :  { %v9014_v27 = vpop.f32.mrf.mxu1 }
0x161f   :  { %v9015_v46 = vadd.f32 %v13477_v51, %v9014_v27 }
0x1620   :  { %v11071_v14 = vpop.f32.mrf.mxu1 }
0x1621   :  { %v9018_v37 = vmax.f32 %v9015_v46, 0.0 }
0x1623   :  { %11077 = vmatmul.mubr.msk.f32.vlgmr.msra.gmra.mxu0 %vm2542_vm4, %v9018_v37 }
0x16e3   :  { %v9091_v57 = vpop.f32.mrf.mxu0 }
0x16e4   :  { %v9095_v44 = vadd.f32 %v9091_v57, %v13518_v5 }
0x16e5   :  { %v11078_v38 = vpop.f32.mrf.mxu0 }
0x16e6   :  { %v9103_v17 = vadd.f32 %v9302_v63, %v9095_v44 }
0x16e8   :  { %9105 = vst.msk [vmem:[#allocation11] sm:$0x3] %vm9104_vm5, %v9103_v17 }
0x16e9   :  { %11572 = shalt.err (!%p11569_p1)
}
0x16ea   :  { %9115 = dma.vmem_to_hbm [thread:$0]  %s9113_s14, 32, %s13633_s11, [#allocation4]  }
0x16eb   :  { %11587 = dma.done.wait [#allocation4], 32  }
0x16ec   :  { %11588 = vsyncadd [#allocation4], 4294967264 }
0x16ed   :  { %9119 = vsyncpa [#allocation3], 1 }
0x16ee   :  { %9120 = vsyncpa [#allocation6], 1 }
0x16ef   :  { %9121 = vsyncpa [#allocation9], 1 }
0x16f0   :  { %9122 = vsyncpa [#allocation4], 1 }

</bundles_post_ra>
